<compile_context>
chip_gen: v6e
topology: v6e:2x2x1
jax: 0.10.0
libtpu: 0.0.40
codegen_flags: <defaults>
</compile_context>

<pallas_src>
import functools

import jax
import jax.numpy as jnp
from jax.experimental import pallas as pl
from jax.experimental.pallas import tpu as pltpu

EMBED_SIZE = 64
HIDDEN_SIZE = 64
NUM_LAYERS = 2
T_BLOCK = 8        # timesteps per grid step (statically unrolled); raise to 16-32
                   # for long production sequences to amortize per-step overhead.


# ----------------------------------------------------------------------------
# Fused bidirectional LSTM layer kernel.
#
#   len_ref : (Bp, 1)  int32      sequence lengths (resident)
#   gx_ref  : (T_BLK, Bp, 8H) bf16  precomputed input gates, columns interleaved
#                                   [i_f i_b | f_f f_b | o_f o_b | g_f g_b]; the
#                                   fwd half is x[t_f]@W_ih_f+b_f, the bwd half is
#                                   x[t_b]@W_ih_b+b_b with t_b = T-1-t_f (already
#                                   time-reversed on the host side).
#   whh_ref : (2H, 8H) bf16       block-diagonal [W_hh_f ; W_hh_b], same col layout
#   [fcw_ref (2H,1), fcb_ref (1,1)]   only when with_head
#   outputs (non-head): out_f (Tp,Bp,H) bf16 streamed at block tb,
#                       out_b (Tp,Bp,H) bf16 streamed at block nt-1-tb
#   outputs (head):     prob (Bp,1) f32 = sigmoid(FC([h_n fwd | h_n bwd]))
#   scratch: h_scr, c_scr (Bp, 2H) f32 — state [fwd | bwd] carried across blocks.
# ----------------------------------------------------------------------------
def _bilstm_layer_kernel(len_ref, gx_ref, whh_ref, *rest, t_blk, hidden, total_t,
                         with_head):
    if with_head:
        fcw_ref, fcb_ref, prob_ref, h_scr, c_scr = rest
        outf_ref = outb_ref = None
    else:
        outf_ref, outb_ref, h_scr, c_scr = rest
        fcw_ref = fcb_ref = prob_ref = None

    tb = pl.program_id(0)
    nt = pl.num_programs(0)
    H = hidden
    H2 = 2 * H

    @pl.when(tb == 0)
    def _():
        h_scr[...] = jnp.zeros_like(h_scr)
        c_scr[...] = jnp.zeros_like(c_scr)

    lens = len_ref[...]                                   # (Bp, 1) int32, resident
    w_big = whh_ref[...]                                  # (2H, 8H) bf16
    lane = jax.lax.broadcasted_iota(jnp.int32, (1, H2), 1)

    # Register-carried state for the whole block: one scratch read / write per block.
    h_cat = h_scr[...]                                    # (Bp, 2H) = [h_fwd | h_bwd]
    c_cat = c_scr[...]

    for s in range(t_blk):                                # statically unrolled
        t_f = tb * t_blk + s                              # forward global time
        t_b = (total_t - 1) - t_f                         # backward global time

        # Single fused matmul for both directions: K = 2H = 128 lanes.
        gates = gx_ref[s].astype(jnp.float32) + jnp.dot(
            h_cat.astype(jnp.bfloat16), w_big, preferred_element_type=jnp.float32)

        sig = jax.nn.sigmoid(gates[:, 0:3 * H2])          # [i | f | o], 3 full vregs
        g_t = jnp.tanh(gates[:, 3 * H2:4 * H2])           # [g],        1 full vreg
        i_g = sig[:, 0:H2]
        f_g = sig[:, H2:2 * H2]
        o_g = sig[:, 2 * H2:3 * H2]

        c_new = f_g * c_cat + i_g * g_t                   # (Bp, 2H)
        h_new = o_g * jnp.tanh(c_new)

        # Per-direction padding mask built in-kernel: fwd lanes use t_f, bwd use t_b.
        t_vec = jnp.where(lane < H, t_f, t_b)             # (1, 2H) int32
        m = t_vec < lens                                  # (Bp, 2H) bool

        h_cat = jnp.where(m, h_new, h_cat)                # carry state through padding
        c_cat = jnp.where(m, c_new, c_cat)

        if not with_head:
            # zero at padded timesteps -> matches pad_packed_sequence semantics
            h_out = jnp.where(m, h_new, 0.0)
            outf_ref[pl.ds(s, 1)] = h_out[:, 0:H].astype(outf_ref.dtype)[None]
            outb_ref[pl.ds(t_blk - 1 - s, 1)] = (
                h_out[:, H:H2].astype(outb_ref.dtype)[None])

    h_scr[...] = h_cat
    c_scr[...] = c_cat

    if with_head:
        @pl.when(tb == nt - 1)
        def _():
            logits = jnp.dot(h_cat, fcw_ref[...],
                             preferred_element_type=jnp.float32) + fcb_ref[...]
            prob_ref[...] = jax.nn.sigmoid(logits)


def run_bilstm_layer(gx, len_col, w_big, *, t_blk, fc_w=None, fc_b=None):
    """gx: (Tp, Bp, 8H) bf16 interleaved input gates.  Returns
    (out_f (Tp,Bp,H) bf16, out_b (Tp,Bp,H) bf16) or prob (Bp,1) f32 when fc_w given."""
    Tp, Bp, G8 = gx.shape
    H = G8 // 8
    nt = Tp // t_blk
    with_head = fc_w is not None

    kernel = functools.partial(_bilstm_layer_kernel, t_blk=t_blk, hidden=H,
                               total_t=Tp, with_head=with_head)

    in_specs = [
        pl.BlockSpec((Bp, 1), lambda tb: (0, 0)),                  # lengths (resident)
        pl.BlockSpec((t_blk, Bp, 8 * H), lambda tb: (tb, 0, 0)),   # fused gate stream
        pl.BlockSpec((2 * H, 8 * H), lambda tb: (0, 0)),           # block-diag W_hh
    ]
    inputs = [len_col, gx, w_big]

    if with_head:
        in_specs += [pl.BlockSpec((2 * H, 1), lambda tb: (0, 0)),
                     pl.BlockSpec((1, 1), lambda tb: (0, 0))]
        inputs += [fc_w, fc_b]
        out_shape = jax.ShapeDtypeStruct((Bp, 1), jnp.float32)
        out_specs = pl.BlockSpec((Bp, 1), lambda tb: (0, 0))
    else:
        out_shape = (jax.ShapeDtypeStruct((Tp, Bp, H), jnp.bfloat16),
                     jax.ShapeDtypeStruct((Tp, Bp, H), jnp.bfloat16))
        out_specs = (pl.BlockSpec((t_blk, Bp, H), lambda tb: (tb, 0, 0)),
                     pl.BlockSpec((t_blk, Bp, H), lambda tb: (nt - 1 - tb, 0, 0)))

    # Explicit VMEM budget: double-buffered bf16 gate stream + streamed out blocks
    # + weights + resident state; generous headroom, capped well under v7x physical.
    vmem_est = (2 * t_blk * Bp * 8 * H * 2
                + 4 * t_blk * Bp * H * 2
                + 2 * H * 8 * H * 2
                + 2 * Bp * 2 * H * 4
                + Bp * 128 * 4 + 2 * H * 128 * 4)
    vmem_limit = int(min(max(3 * vmem_est, 4 << 20), 32 << 20))

    return pl.pallas_call(
        kernel,
        out_shape=out_shape,
        grid_spec=pltpu.PrefetchScalarGridSpec(
            num_scalar_prefetch=0,
            grid=(nt,),
            in_specs=in_specs,
            out_specs=out_specs,
            scratch_shapes=[pltpu.VMEM((Bp, 2 * H), jnp.float32),
                            pltpu.VMEM((Bp, 2 * H), jnp.float32)]),
        compiler_params=pltpu.CompilerParams(
            dimension_semantics=("arbitrary",),       # time axis is sequential
            vmem_limit_bytes=vmem_limit),
    )(*inputs)


# ----------------------------------------------------------------------------
# Host-side (plain XLA) weight / gate-stream preparation.
# ----------------------------------------------------------------------------
def input_gates(feats, wih, bias):
    """feats: list of time-major bf16 feature streams whose last dims sum to Din.
    Returns x @ W_ih + b in f32, gate column order [i, f, o, g]."""
    total = None
    off = 0
    for x in feats:
        d = x.shape[-1]
        w = wih[off:off + d, :].astype(jnp.bfloat16)
        part = jnp.einsum("tbd,dg->tbg", x.astype(jnp.bfloat16), w,
                          preferred_element_type=jnp.float32)
        total = part if total is None else total + part
        off += d
    return total + bias


def build_gx(gx_f, gx_b):
    """Interleave fwd gates with time-reversed bwd gates at H granularity:
    columns [i_f i_b | f_f f_b | o_f o_b | g_f g_b].  Output bf16 (Tp, Bp, 8H)."""
    Tp, Bp, G = gx_f.shape
    H = G // 4
    a = gx_f.reshape(Tp, Bp, 4, 1, H)
    b = gx_b[::-1].reshape(Tp, Bp, 4, 1, H)
    return jnp.concatenate([a, b], axis=3).reshape(Tp, Bp, 8 * H).astype(jnp.bfloat16)


def make_w_big(whh_f, whh_b):
    """Block-diagonal fused hidden->gate weight (2H, 8H) bf16 matching build_gx."""
    H = whh_f.shape[0]
    zero = jnp.zeros((H, 4, 1, H), jnp.float32)
    top = jnp.concatenate([whh_f.reshape(H, 4, 1, H), zero], axis=2).reshape(H, 8 * H)
    bot = jnp.concatenate([zero, whh_b.reshape(H, 4, 1, H)], axis=2).reshape(H, 8 * H)
    return jnp.concatenate([top, bot], axis=0).astype(jnp.bfloat16)


# ----------------------------------------------------------------------------
# Parameter init (deterministic, synthetic — shapes from the nn.Module).
# Weights stored pre-transposed (Din, 4H) / (H, 4H) with gate-column order
# [i, f, o, g] (NOTE: PyTorch nn.LSTM uses [i, f, g, o]; real checkpoints must be
# column-permuted before loading).  Bias = b_ih + b_hh, shape (1, 4H).
# ----------------------------------------------------------------------------
def init_params(key, vocab_size, embed_size, hidden_size, num_layers):
    k_emb, k_lstm, k_fc = jax.random.split(key, 3)
    params = {}
    params["embedding"] = jax.random.normal(
        k_emb, (vocab_size, embed_size), jnp.float32) * 0.1

    bound = 1.0 / jnp.sqrt(hidden_size)
    lstm_layers = []
    keys = jax.random.split(k_lstm, num_layers * 2)
    for layer in range(num_layers):
        din = embed_size if layer == 0 else 2 * hidden_size
        layer_dirs = []
        for d in range(2):  # 0 = forward, 1 = backward
            kk = jax.random.split(keys[layer * 2 + d], 3)
            w_ih_t = jax.random.uniform(kk[0], (din, 4 * hidden_size),
                                        jnp.float32, -bound, bound)
            w_hh_t = jax.random.uniform(kk[1], (hidden_size, 4 * hidden_size),
                                        jnp.float32, -bound, bound)
            bias = jax.random.uniform(kk[2], (1, 4 * hidden_size),
                                      jnp.float32, -bound, bound)
            layer_dirs.append((w_ih_t, w_hh_t, bias))
        lstm_layers.append(layer_dirs)
    params["lstm"] = lstm_layers

    fc_bound = 1.0 / jnp.sqrt(2 * hidden_size)
    kf = jax.random.split(k_fc, 2)
    params["fc_w"] = jax.random.uniform(kf[0], (2 * hidden_size, 1),
                                        jnp.float32, -fc_bound, fc_bound)
    params["fc_b"] = jax.random.uniform(kf[1], (1, 1),
                                        jnp.float32, -fc_bound, fc_bound)
    return params


# ----------------------------------------------------------------------------
# Full forward pass (mirrors LSTM.forward)
# ----------------------------------------------------------------------------
def lstm_forward(params, x_ids, lengths):
    # x_ids: (B, T) int32 token ids; lengths: (B,) int32 (sorted desc, packed-style)
    B, T = x_ids.shape
    Bp = ((B + 7) // 8) * 8                          # pad batch to f32 sublane minimum
    Tp = ((T + T_BLOCK - 1) // T_BLOCK) * T_BLOCK    # pad time to a block multiple

    x_ids_p = jnp.pad(x_ids, ((0, Bp - B), (0, Tp - T)))
    lengths_p = jnp.pad(lengths, (0, Bp - B))        # padded rows get length 0
    len_col = lengths_p.astype(jnp.int32).reshape(Bp, 1)

    # Embedding lookup (gather) is plain-JAX glue; time-major layout for the kernel.
    emb = jnp.take(params["embedding"], x_ids_p, axis=0)            # (Bp, Tp, E)
    feats = [jnp.transpose(emb, (1, 0, 2)).astype(jnp.bfloat16)]    # [(Tp, Bp, E)]

    prob = None
    for layer in range(NUM_LAYERS):
        (wih_f, whh_f, b_f), (wih_b, whh_b, b_b) = params["lstm"][layer]
        # Hoisted input projection: large bf16 MXU matmuls in plain XLA.
        gx_f = input_gates(feats, wih_f, b_f)                        # (Tp, Bp, 4H) f32
        gx_b = input_gates(feats, wih_b, b_b)
        gx = build_gx(gx_f, gx_b)                                    # (Tp, Bp, 8H) bf16
        w_big = make_w_big(whh_f, whh_b)                             # (2H, 8H) bf16
        if layer == NUM_LAYERS - 1:
            # FC(2H->1) + sigmoid is fused into the last layer's final grid step;
            # the last layer emits no per-timestep output at all.
            prob = run_bilstm_layer(gx, len_col, w_big, t_blk=T_BLOCK,
                                    fc_w=params["fc_w"], fc_b=params["fc_b"])
        else:
            out_f, out_b = run_bilstm_layer(gx, len_col, w_big, t_blk=T_BLOCK)
            feats = [out_f, out_b]                                   # bf16 streams
    return prob[:B]                                   # drop padded batch rows


if __name__ == "__main__":
    key = jax.random.PRNGKey(0)
    k_param, k_ids = jax.random.split(key)

    vocab_size = 100
    B, T = 4, 8
    params = init_params(k_param, vocab_size, EMBED_SIZE, HIDDEN_SIZE, NUM_LAYERS)

    x_ids = jax.random.randint(k_ids, (B, T), 0, vocab_size, dtype=jnp.int32)
    lengths = jnp.array([8, 6, 5, 3], dtype=jnp.int32)  # sorted desc, like pack_padded

    out = jax.jit(lstm_forward)(params, x_ids, lengths)
    out = jax.block_until_ready(out)

    assert out.shape == (B, 1), out.shape
    assert bool(jnp.all(jnp.isfinite(out)))
    assert bool(jnp.all((out > 0.0) & (out < 1.0)))
    print("KERNEL_OK")
</pallas_src>

<mosaic_0001>
module attributes {stable_mosaic.version = 11 : i64} {
  func.func @_bilstm_layer_kernel(%arg0: i32, %arg1: memref<8x1xi32, #tpu.memory_space<vmem>>, %arg2: memref<8x8x512xbf16, #tpu.memory_space<vmem>>, %arg3: memref<128x512xbf16, #tpu.memory_space<vmem>>, %arg4: memref<8x8x64xbf16, #tpu.memory_space<vmem>>, %arg5: memref<8x8x64xbf16, #tpu.memory_space<vmem>>, %arg6: memref<8x128xf32, #tpu.memory_space<vmem>>, %arg7: memref<8x128xf32, #tpu.memory_space<vmem>>) attributes {dimension_semantics = [#tpu.dimension_semantics<arbitrary>], iteration_bounds = array<i64: 1>, scalar_prefetch = 0 : i64, scratch_operands = 2 : i64, tpu.core_type = #tpu.core_type<tc>, window_params = [{pipeline_mode = #tpu.pipeline_mode<synchronous>, transform_indices = @transform_0, window_bounds = array<i64: 8, 1>}, {transform_indices = @transform_1, window_bounds = array<i64: 8, 8, 512>}, {pipeline_mode = #tpu.pipeline_mode<synchronous>, transform_indices = @transform_2, window_bounds = array<i64: 128, 512>}, {transform_indices = @transform_3, window_bounds = array<i64: 8, 8, 64>}, {transform_indices = @transform_4, window_bounds = array<i64: 8, 8, 64>}]} {
    %c0_i32 = arith.constant 0 : i32
    %0 = arith.cmpi eq, %arg0, %c0_i32 : i32
    %1 = arith.extui %0 : i1 to i32
    %c0_i32_0 = arith.constant 0 : i32
    %2 = arith.cmpi ne, %1, %c0_i32_0 : i32
    scf.if %2 {
      %cst_123 = arith.constant 0.000000e+00 : f32
      %370 = vector.broadcast %cst_123 : f32 to vector<8x128xf32>
      %c0_124 = arith.constant 0 : index
      %c0_125 = arith.constant 0 : index
      %371 = vector.load %arg6[%c0_124, %c0_125] : memref<8x128xf32, #tpu.memory_space<vmem>>, vector<8x128xf32>
      tpu.vector_store %arg6[%c0_124, %c0_125], %370 {strides = array<i32>} : memref<8x128xf32, #tpu.memory_space<vmem>>, vector<8x128xf32>,
      %cst_126 = arith.constant 0.000000e+00 : f32
      %372 = vector.broadcast %cst_126 : f32 to vector<8x128xf32>
      %c0_127 = arith.constant 0 : index
      %c0_128 = arith.constant 0 : index
      %373 = vector.load %arg7[%c0_127, %c0_128] : memref<8x128xf32, #tpu.memory_space<vmem>>, vector<8x128xf32>
      tpu.vector_store %arg7[%c0_127, %c0_128], %372 {strides = array<i32>} : memref<8x128xf32, #tpu.memory_space<vmem>>, vector<8x128xf32>,
    } else {
    }
    %c0 = arith.constant 0 : index
    %c0_1 = arith.constant 0 : index
    %3 = vector.load %arg1[%c0, %c0_1] : memref<8x1xi32, #tpu.memory_space<vmem>>, vector<8x1xi32>
    %c0_2 = arith.constant 0 : index
    %c0_3 = arith.constant 0 : index
    %4 = vector.load %arg3[%c0_2, %c0_3] : memref<128x512xbf16, #tpu.memory_space<vmem>>, vector<128x512xbf16>
    %5 = tpu.iota {dimensions = array<i32: 1>} : vector<1x128xi32>
    %c0_4 = arith.constant 0 : index
    %c0_5 = arith.constant 0 : index
    %6 = vector.load %arg6[%c0_4, %c0_5] : memref<8x128xf32, #tpu.memory_space<vmem>>, vector<8x128xf32>
    %c0_6 = arith.constant 0 : index
    %c0_7 = arith.constant 0 : index
    %7 = vector.load %arg7[%c0_6, %c0_7] : memref<8x128xf32, #tpu.memory_space<vmem>>, vector<8x128xf32>
    %c8_i32 = arith.constant 8 : i32
    %8 = arith.muli %arg0, %c8_i32 : i32
    %c0_i32_8 = arith.constant 0 : i32
    %9 = arith.addi %8, %c0_i32_8 : i32
    %c7_i32 = arith.constant 7 : i32
    %10 = arith.subi %c7_i32, %9 : i32
    %c0_9 = arith.constant 0 : index
    %c0_10 = arith.constant 0 : index
    %c0_11 = arith.constant 0 : index
    %11 = vector.load %arg2[%c0_9, %c0_10, %c0_11] : memref<8x8x512xbf16, #tpu.memory_space<vmem>>, vector<1x8x512xbf16>
    %12 = vector.shape_cast %11 : vector<1x8x512xbf16> to vector<8x512xbf16>
    %13 = arith.extf %12 : vector<8x512xbf16> to vector<8x512xf32>
    %14 = arith.truncf %6 : vector<8x128xf32> to vector<8x128xbf16>
    %cst = arith.constant dense<0.000000e+00> : vector<8x512xf32>
    %15 = tpu.matmul %14, %4, %cst {dimension_numbers = #tpu.dot_dimension_numbers<[1], [0], [0], [1], [0, 0, 1, 1], [], []>} : vector<8x128xbf16>, vector<128x512xbf16>, vector<8x512xf32> -> vector<8x512xf32>
    %16 = arith.addf %13, %15 : vector<8x512xf32>
    %17 = vector.extract_strided_slice %16 {offsets = [0, 0], sizes = [8, 384], strides = [1, 1]} : vector<8x512xf32> to vector<8x384xf32>
    %18 = arith.negf %17 : vector<8x384xf32>
    %19 = math.exp %18 : vector<8x384xf32>
    %cst_12 = arith.constant 1.000000e+00 : f32
    %20 = vector.broadcast %cst_12 : f32 to vector<8x384xf32>
    %21 = arith.addf %20, %19 : vector<8x384xf32>
    %22 = arith.divf %20, %21 : vector<8x384xf32>
    %23 = vector.extract_strided_slice %16 {offsets = [0, 384], sizes = [8, 128], strides = [1, 1]} : vector<8x512xf32> to vector<8x128xf32>
    %24 = math.tanh %23 : vector<8x128xf32>
    %25 = vector.extract_strided_slice %22 {offsets = [0, 0], sizes = [8, 128], strides = [1, 1]} : vector<8x384xf32> to vector<8x128xf32>
    %26 = vector.extract_strided_slice %22 {offsets = [0, 128], sizes = [8, 128], strides = [1, 1]} : vector<8x384xf32> to vector<8x128xf32>
    %27 = vector.extract_strided_slice %22 {offsets = [0, 256], sizes = [8, 128], strides = [1, 1]} : vector<8x384xf32> to vector<8x128xf32>
    %28 = arith.mulf %26, %7 : vector<8x128xf32>
    %29 = arith.mulf %25, %24 : vector<8x128xf32>
    %30 = arith.addf %28, %29 : vector<8x128xf32>
    %31 = math.tanh %30 : vector<8x128xf32>
    %32 = arith.mulf %27, %31 : vector<8x128xf32>
    %c64_i32 = arith.constant 64 : i32
    %33 = vector.broadcast %c64_i32 : i32 to vector<1x128xi32>
    %34 = arith.cmpi slt, %5, %33 : vector<1x128xi32>
    %35 = vector.broadcast %9 : i32 to vector<1x128xi32>
    %36 = vector.broadcast %10 : i32 to vector<1x128xi32>
    %37 = arith.select %34, %35, %36 : vector<1x128xi1>, vector<1x128xi32>
    %38 = vector.broadcast %37 : vector<1x128xi32> to vector<8x128xi32>
    %39 = vector.broadcast %3 : vector<8x1xi32> to vector<8x128xi32>
    %40 = arith.cmpi slt, %38, %39 : vector<8x128xi32>
    %41 = arith.select %40, %32, %6 : vector<8x128xi1>, vector<8x128xf32>
    %42 = arith.select %40, %30, %7 : vector<8x128xi1>, vector<8x128xf32>
    %cst_13 = arith.constant 0.000000e+00 : f32
    %43 = vector.broadcast %cst_13 : f32 to vector<8x128xf32>
    %44 = arith.select %40, %32, %43 : vector<8x128xi1>, vector<8x128xf32>
    %45 = vector.extract_strided_slice %44 {offsets = [0, 0], sizes = [8, 64], strides = [1, 1]} : vector<8x128xf32> to vector<8x64xf32>
    %46 = arith.truncf %45 : vector<8x64xf32> to vector<8x64xbf16>
    %47 = vector.shape_cast %46 : vector<8x64xbf16> to vector<1x8x64xbf16>
    %c0_14 = arith.constant 0 : index
    %c0_15 = arith.constant 0 : index
    %c0_16 = arith.constant 0 : index
    %48 = vector.load %arg4[%c0_14, %c0_15, %c0_16] : memref<8x8x64xbf16, #tpu.memory_space<vmem>>, vector<1x8x64xbf16>
    tpu.vector_store %arg4[%c0_14, %c0_15, %c0_16], %47 {strides = array<i32>} : memref<8x8x64xbf16, #tpu.memory_space<vmem>>, vector<1x8x64xbf16>,
    %49 = vector.extract_strided_slice %44 {offsets = [0, 64], sizes = [8, 64], strides = [1, 1]} : vector<8x128xf32> to vector<8x64xf32>
    %50 = arith.truncf %49 : vector<8x64xf32> to vector<8x64xbf16>
    %51 = vector.shape_cast %50 : vector<8x64xbf16> to vector<1x8x64xbf16>
    %c7 = arith.constant 7 : index
    %c0_17 = arith.constant 0 : index
    %c0_18 = arith.constant 0 : index
    %52 = vector.load %arg5[%c7, %c0_17, %c0_18] : memref<8x8x64xbf16, #tpu.memory_space<vmem>>, vector<1x8x64xbf16>
    tpu.vector_store %arg5[%c7, %c0_17, %c0_18], %51 {strides = array<i32>} : memref<8x8x64xbf16, #tpu.memory_space<vmem>>, vector<1x8x64xbf16>,
    %c8_i32_19 = arith.constant 8 : i32
    %53 = arith.muli %arg0, %c8_i32_19 : i32
    %c1_i32 = arith.constant 1 : i32
    %54 = arith.addi %53, %c1_i32 : i32
    %c7_i32_20 = arith.constant 7 : i32
    %55 = arith.subi %c7_i32_20, %54 : i32
    %c1 = arith.constant 1 : index
    %c0_21 = arith.constant 0 : index
    %c0_22 = arith.constant 0 : index
    %56 = vector.load %arg2[%c1, %c0_21, %c0_22] : memref<8x8x512xbf16, #tpu.memory_space<vmem>>, vector<1x8x512xbf16>
    %57 = vector.shape_cast %56 : vector<1x8x512xbf16> to vector<8x512xbf16>
    %58 = arith.extf %57 : vector<8x512xbf16> to vector<8x512xf32>
    %59 = arith.truncf %41 : vector<8x128xf32> to vector<8x128xbf16>
    %cst_23 = arith.constant dense<0.000000e+00> : vector<8x512xf32>
    %60 = tpu.matmul %59, %4, %cst_23 {dimension_numbers = #tpu.dot_dimension_numbers<[1], [0], [0], [1], [0, 0, 1, 1], [], []>} : vector<8x128xbf16>, vector<128x512xbf16>, vector<8x512xf32> -> vector<8x512xf32>
    %61 = arith.addf %58, %60 : vector<8x512xf32>
    %62 = vector.extract_strided_slice %61 {offsets = [0, 0], sizes = [8, 384], strides = [1, 1]} : vector<8x512xf32> to vector<8x384xf32>
    %63 = arith.negf %62 : vector<8x384xf32>
    %64 = math.exp %63 : vector<8x384xf32>
    %cst_24 = arith.constant 1.000000e+00 : f32
    %65 = vector.broadcast %cst_24 : f32 to vector<8x384xf32>
    %66 = arith.addf %65, %64 : vector<8x384xf32>
    %67 = arith.divf %65, %66 : vector<8x384xf32>
    %68 = vector.extract_strided_slice %61 {offsets = [0, 384], sizes = [8, 128], strides = [1, 1]} : vector<8x512xf32> to vector<8x128xf32>
    %69 = math.tanh %68 : vector<8x128xf32>
    %70 = vector.extract_strided_slice %67 {offsets = [0, 0], sizes = [8, 128], strides = [1, 1]} : vector<8x384xf32> to vector<8x128xf32>
    %71 = vector.extract_strided_slice %67 {offsets = [0, 128], sizes = [8, 128], strides = [1, 1]} : vector<8x384xf32> to vector<8x128xf32>
    %72 = vector.extract_strided_slice %67 {offsets = [0, 256], sizes = [8, 128], strides = [1, 1]} : vector<8x384xf32> to vector<8x128xf32>
    %73 = arith.mulf %71, %42 : vector<8x128xf32>
    %74 = arith.mulf %70, %69 : vector<8x128xf32>
    %75 = arith.addf %73, %74 : vector<8x128xf32>
    %76 = math.tanh %75 : vector<8x128xf32>
    %77 = arith.mulf %72, %76 : vector<8x128xf32>
    %c64_i32_25 = arith.constant 64 : i32
    %78 = vector.broadcast %c64_i32_25 : i32 to vector<1x128xi32>
    %79 = arith.cmpi slt, %5, %78 : vector<1x128xi32>
    %80 = vector.broadcast %54 : i32 to vector<1x128xi32>
    %81 = vector.broadcast %55 : i32 to vector<1x128xi32>
    %82 = arith.select %79, %80, %81 : vector<1x128xi1>, vector<1x128xi32>
    %83 = vector.broadcast %82 : vector<1x128xi32> to vector<8x128xi32>
    %84 = vector.broadcast %3 : vector<8x1xi32> to vector<8x128xi32>
    %85 = arith.cmpi slt, %83, %84 : vector<8x128xi32>
    %86 = arith.select %85, %77, %41 : vector<8x128xi1>, vector<8x128xf32>
    %87 = arith.select %85, %75, %42 : vector<8x128xi1>, vector<8x128xf32>
    %cst_26 = arith.constant 0.000000e+00 : f32
    %88 = vector.broadcast %cst_26 : f32 to vector<8x128xf32>
    %89 = arith.select %85, %77, %88 : vector<8x128xi1>, vector<8x128xf32>
    %90 = vector.extract_strided_slice %89 {offsets = [0, 0], sizes = [8, 64], strides = [1, 1]} : vector<8x128xf32> to vector<8x64xf32>
    %91 = arith.truncf %90 : vector<8x64xf32> to vector<8x64xbf16>
    %92 = vector.shape_cast %91 : vector<8x64xbf16> to vector<1x8x64xbf16>
    %c1_27 = arith.constant 1 : index
    %c0_28 = arith.constant 0 : index
    %c0_29 = arith.constant 0 : index
    %93 = vector.load %arg4[%c1_27, %c0_28, %c0_29] : memref<8x8x64xbf16, #tpu.memory_space<vmem>>, vector<1x8x64xbf16>
    tpu.vector_store %arg4[%c1_27, %c0_28, %c0_29], %92 {strides = array<i32>} : memref<8x8x64xbf16, #tpu.memory_space<vmem>>, vector<1x8x64xbf16>,
    %94 = vector.extract_strided_slice %89 {offsets = [0, 64], sizes = [8, 64], strides = [1, 1]} : vector<8x128xf32> to vector<8x64xf32>
    %95 = arith.truncf %94 : vector<8x64xf32> to vector<8x64xbf16>
    %96 = vector.shape_cast %95 : vector<8x64xbf16> to vector<1x8x64xbf16>
    %c6 = arith.constant 6 : index
    %c0_30 = arith.constant 0 : index
    %c0_31 = arith.constant 0 : index
    %97 = vector.load %arg5[%c6, %c0_30, %c0_31] : memref<8x8x64xbf16, #tpu.memory_space<vmem>>, vector<1x8x64xbf16>
    tpu.vector_store %arg5[%c6, %c0_30, %c0_31], %96 {strides = array<i32>} : memref<8x8x64xbf16, #tpu.memory_space<vmem>>, vector<1x8x64xbf16>,
    %c8_i32_32 = arith.constant 8 : i32
    %98 = arith.muli %arg0, %c8_i32_32 : i32
    %c2_i32 = arith.constant 2 : i32
    %99 = arith.addi %98, %c2_i32 : i32
    %c7_i32_33 = arith.constant 7 : i32
    %100 = arith.subi %c7_i32_33, %99 : i32
    %c2 = arith.constant 2 : index
    %c0_34 = arith.constant 0 : index
    %c0_35 = arith.constant 0 : index
    %101 = vector.load %arg2[%c2, %c0_34, %c0_35] : memref<8x8x512xbf16, #tpu.memory_space<vmem>>, vector<1x8x512xbf16>
    %102 = vector.shape_cast %101 : vector<1x8x512xbf16> to vector<8x512xbf16>
    %103 = arith.extf %102 : vector<8x512xbf16> to vector<8x512xf32>
    %104 = arith.truncf %86 : vector<8x128xf32> to vector<8x128xbf16>
    %cst_36 = arith.constant dense<0.000000e+00> : vector<8x512xf32>
    %105 = tpu.matmul %104, %4, %cst_36 {dimension_numbers = #tpu.dot_dimension_numbers<[1], [0], [0], [1], [0, 0, 1, 1], [], []>} : vector<8x128xbf16>, vector<128x512xbf16>, vector<8x512xf32> -> vector<8x512xf32>
    %106 = arith.addf %103, %105 : vector<8x512xf32>
    %107 = vector.extract_strided_slice %106 {offsets = [0, 0], sizes = [8, 384], strides = [1, 1]} : vector<8x512xf32> to vector<8x384xf32>
    %108 = arith.negf %107 : vector<8x384xf32>
    %109 = math.exp %108 : vector<8x384xf32>
    %cst_37 = arith.constant 1.000000e+00 : f32
    %110 = vector.broadcast %cst_37 : f32 to vector<8x384xf32>
    %111 = arith.addf %110, %109 : vector<8x384xf32>
    %112 = arith.divf %110, %111 : vector<8x384xf32>
    %113 = vector.extract_strided_slice %106 {offsets = [0, 384], sizes = [8, 128], strides = [1, 1]} : vector<8x512xf32> to vector<8x128xf32>
    %114 = math.tanh %113 : vector<8x128xf32>
    %115 = vector.extract_strided_slice %112 {offsets = [0, 0], sizes = [8, 128], strides = [1, 1]} : vector<8x384xf32> to vector<8x128xf32>
    %116 = vector.extract_strided_slice %112 {offsets = [0, 128], sizes = [8, 128], strides = [1, 1]} : vector<8x384xf32> to vector<8x128xf32>
    %117 = vector.extract_strided_slice %112 {offsets = [0, 256], sizes = [8, 128], strides = [1, 1]} : vector<8x384xf32> to vector<8x128xf32>
    %118 = arith.mulf %116, %87 : vector<8x128xf32>
    %119 = arith.mulf %115, %114 : vector<8x128xf32>
    %120 = arith.addf %118, %119 : vector<8x128xf32>
    %121 = math.tanh %120 : vector<8x128xf32>
    %122 = arith.mulf %117, %121 : vector<8x128xf32>
    %c64_i32_38 = arith.constant 64 : i32
    %123 = vector.broadcast %c64_i32_38 : i32 to vector<1x128xi32>
    %124 = arith.cmpi slt, %5, %123 : vector<1x128xi32>
    %125 = vector.broadcast %99 : i32 to vector<1x128xi32>
    %126 = vector.broadcast %100 : i32 to vector<1x128xi32>
    %127 = arith.select %124, %125, %126 : vector<1x128xi1>, vector<1x128xi32>
    %128 = vector.broadcast %127 : vector<1x128xi32> to vector<8x128xi32>
    %129 = vector.broadcast %3 : vector<8x1xi32> to vector<8x128xi32>
    %130 = arith.cmpi slt, %128, %129 : vector<8x128xi32>
    %131 = arith.select %130, %122, %86 : vector<8x128xi1>, vector<8x128xf32>
    %132 = arith.select %130, %120, %87 : vector<8x128xi1>, vector<8x128xf32>
    %cst_39 = arith.constant 0.000000e+00 : f32
    %133 = vector.broadcast %cst_39 : f32 to vector<8x128xf32>
    %134 = arith.select %130, %122, %133 : vector<8x128xi1>, vector<8x128xf32>
    %135 = vector.extract_strided_slice %134 {offsets = [0, 0], sizes = [8, 64], strides = [1, 1]} : vector<8x128xf32> to vector<8x64xf32>
    %136 = arith.truncf %135 : vector<8x64xf32> to vector<8x64xbf16>
    %137 = vector.shape_cast %136 : vector<8x64xbf16> to vector<1x8x64xbf16>
    %c2_40 = arith.constant 2 : index
    %c0_41 = arith.constant 0 : index
    %c0_42 = arith.constant 0 : index
    %138 = vector.load %arg4[%c2_40, %c0_41, %c0_42] : memref<8x8x64xbf16, #tpu.memory_space<vmem>>, vector<1x8x64xbf16>
    tpu.vector_store %arg4[%c2_40, %c0_41, %c0_42], %137 {strides = array<i32>} : memref<8x8x64xbf16, #tpu.memory_space<vmem>>, vector<1x8x64xbf16>,
    %139 = vector.extract_strided_slice %134 {offsets = [0, 64], sizes = [8, 64], strides = [1, 1]} : vector<8x128xf32> to vector<8x64xf32>
    %140 = arith.truncf %139 : vector<8x64xf32> to vector<8x64xbf16>
    %141 = vector.shape_cast %140 : vector<8x64xbf16> to vector<1x8x64xbf16>
    %c5 = arith.constant 5 : index
    %c0_43 = arith.constant 0 : index
    %c0_44 = arith.constant 0 : index
    %142 = vector.load %arg5[%c5, %c0_43, %c0_44] : memref<8x8x64xbf16, #tpu.memory_space<vmem>>, vector<1x8x64xbf16>
    tpu.vector_store %arg5[%c5, %c0_43, %c0_44], %141 {strides = array<i32>} : memref<8x8x64xbf16, #tpu.memory_space<vmem>>, vector<1x8x64xbf16>,
    %c8_i32_45 = arith.constant 8 : i32
    %143 = arith.muli %arg0, %c8_i32_45 : i32
    %c3_i32 = arith.constant 3 : i32
    %144 = arith.addi %143, %c3_i32 : i32
    %c7_i32_46 = arith.constant 7 : i32
    %145 = arith.subi %c7_i32_46, %144 : i32
    %c3 = arith.constant 3 : index
    %c0_47 = arith.constant 0 : index
    %c0_48 = arith.constant 0 : index
    %146 = vector.load %arg2[%c3, %c0_47, %c0_48] : memref<8x8x512xbf16, #tpu.memory_space<vmem>>, vector<1x8x512xbf16>
    %147 = vector.shape_cast %146 : vector<1x8x512xbf16> to vector<8x512xbf16>
    %148 = arith.extf %147 : vector<8x512xbf16> to vector<8x512xf32>
    %149 = arith.truncf %131 : vector<8x128xf32> to vector<8x128xbf16>
    %cst_49 = arith.constant dense<0.000000e+00> : vector<8x512xf32>
    %150 = tpu.matmul %149, %4, %cst_49 {dimension_numbers = #tpu.dot_dimension_numbers<[1], [0], [0], [1], [0, 0, 1, 1], [], []>} : vector<8x128xbf16>, vector<128x512xbf16>, vector<8x512xf32> -> vector<8x512xf32>
    %151 = arith.addf %148, %150 : vector<8x512xf32>
    %152 = vector.extract_strided_slice %151 {offsets = [0, 0], sizes = [8, 384], strides = [1, 1]} : vector<8x512xf32> to vector<8x384xf32>
    %153 = arith.negf %152 : vector<8x384xf32>
    %154 = math.exp %153 : vector<8x384xf32>
    %cst_50 = arith.constant 1.000000e+00 : f32
    %155 = vector.broadcast %cst_50 : f32 to vector<8x384xf32>
    %156 = arith.addf %155, %154 : vector<8x384xf32>
    %157 = arith.divf %155, %156 : vector<8x384xf32>
    %158 = vector.extract_strided_slice %151 {offsets = [0, 384], sizes = [8, 128], strides = [1, 1]} : vector<8x512xf32> to vector<8x128xf32>
    %159 = math.tanh %158 : vector<8x128xf32>
    %160 = vector.extract_strided_slice %157 {offsets = [0, 0], sizes = [8, 128], strides = [1, 1]} : vector<8x384xf32> to vector<8x128xf32>
    %161 = vector.extract_strided_slice %157 {offsets = [0, 128], sizes = [8, 128], strides = [1, 1]} : vector<8x384xf32> to vector<8x128xf32>
    %162 = vector.extract_strided_slice %157 {offsets = [0, 256], sizes = [8, 128], strides = [1, 1]} : vector<8x384xf32> to vector<8x128xf32>
    %163 = arith.mulf %161, %132 : vector<8x128xf32>
    %164 = arith.mulf %160, %159 : vector<8x128xf32>
    %165 = arith.addf %163, %164 : vector<8x128xf32>
    %166 = math.tanh %165 : vector<8x128xf32>
    %167 = arith.mulf %162, %166 : vector<8x128xf32>
    %c64_i32_51 = arith.constant 64 : i32
    %168 = vector.broadcast %c64_i32_51 : i32 to vector<1x128xi32>
    %169 = arith.cmpi slt, %5, %168 : vector<1x128xi32>
    %170 = vector.broadcast %144 : i32 to vector<1x128xi32>
    %171 = vector.broadcast %145 : i32 to vector<1x128xi32>
    %172 = arith.select %169, %170, %171 : vector<1x128xi1>, vector<1x128xi32>
    %173 = vector.broadcast %172 : vector<1x128xi32> to vector<8x128xi32>
    %174 = vector.broadcast %3 : vector<8x1xi32> to vector<8x128xi32>
    %175 = arith.cmpi slt, %173, %174 : vector<8x128xi32>
    %176 = arith.select %175, %167, %131 : vector<8x128xi1>, vector<8x128xf32>
    %177 = arith.select %175, %165, %132 : vector<8x128xi1>, vector<8x128xf32>
    %cst_52 = arith.constant 0.000000e+00 : f32
    %178 = vector.broadcast %cst_52 : f32 to vector<8x128xf32>
    %179 = arith.select %175, %167, %178 : vector<8x128xi1>, vector<8x128xf32>
    %180 = vector.extract_strided_slice %179 {offsets = [0, 0], sizes = [8, 64], strides = [1, 1]} : vector<8x128xf32> to vector<8x64xf32>
    %181 = arith.truncf %180 : vector<8x64xf32> to vector<8x64xbf16>
    %182 = vector.shape_cast %181 : vector<8x64xbf16> to vector<1x8x64xbf16>
    %c3_53 = arith.constant 3 : index
    %c0_54 = arith.constant 0 : index
    %c0_55 = arith.constant 0 : index
    %183 = vector.load %arg4[%c3_53, %c0_54, %c0_55] : memref<8x8x64xbf16, #tpu.memory_space<vmem>>, vector<1x8x64xbf16>
    tpu.vector_store %arg4[%c3_53, %c0_54, %c0_55], %182 {strides = array<i32>} : memref<8x8x64xbf16, #tpu.memory_space<vmem>>, vector<1x8x64xbf16>,
    %184 = vector.extract_strided_slice %179 {offsets = [0, 64], sizes = [8, 64], strides = [1, 1]} : vector<8x128xf32> to vector<8x64xf32>
    %185 = arith.truncf %184 : vector<8x64xf32> to vector<8x64xbf16>
    %186 = vector.shape_cast %185 : vector<8x64xbf16> to vector<1x8x64xbf16>
    %c4 = arith.constant 4 : index
    %c0_56 = arith.constant 0 : index
    %c0_57 = arith.constant 0 : index
    %187 = vector.load %arg5[%c4, %c0_56, %c0_57] : memref<8x8x64xbf16, #tpu.memory_space<vmem>>, vector<1x8x64xbf16>
    tpu.vector_store %arg5[%c4, %c0_56, %c0_57], %186 {strides = array<i32>} : memref<8x8x64xbf16, #tpu.memory_space<vmem>>, vector<1x8x64xbf16>,
    %c8_i32_58 = arith.constant 8 : i32
    %188 = arith.muli %arg0, %c8_i32_58 : i32
    %c4_i32 = arith.constant 4 : i32
    %189 = arith.addi %188, %c4_i32 : i32
    %c7_i32_59 = arith.constant 7 : i32
    %190 = arith.subi %c7_i32_59, %189 : i32
    %c4_60 = arith.constant 4 : index
    %c0_61 = arith.constant 0 : index
    %c0_62 = arith.constant 0 : index
    %191 = vector.load %arg2[%c4_60, %c0_61, %c0_62] : memref<8x8x512xbf16, #tpu.memory_space<vmem>>, vector<1x8x512xbf16>
    %192 = vector.shape_cast %191 : vector<1x8x512xbf16> to vector<8x512xbf16>
    %193 = arith.extf %192 : vector<8x512xbf16> to vector<8x512xf32>
    %194 = arith.truncf %176 : vector<8x128xf32> to vector<8x128xbf16>
    %cst_63 = arith.constant dense<0.000000e+00> : vector<8x512xf32>
    %195 = tpu.matmul %194, %4, %cst_63 {dimension_numbers = #tpu.dot_dimension_numbers<[1], [0], [0], [1], [0, 0, 1, 1], [], []>} : vector<8x128xbf16>, vector<128x512xbf16>, vector<8x512xf32> -> vector<8x512xf32>
    %196 = arith.addf %193, %195 : vector<8x512xf32>
    %197 = vector.extract_strided_slice %196 {offsets = [0, 0], sizes = [8, 384], strides = [1, 1]} : vector<8x512xf32> to vector<8x384xf32>
    %198 = arith.negf %197 : vector<8x384xf32>
    %199 = math.exp %198 : vector<8x384xf32>
    %cst_64 = arith.constant 1.000000e+00 : f32
    %200 = vector.broadcast %cst_64 : f32 to vector<8x384xf32>
    %201 = arith.addf %200, %199 : vector<8x384xf32>
    %202 = arith.divf %200, %201 : vector<8x384xf32>
    %203 = vector.extract_strided_slice %196 {offsets = [0, 384], sizes = [8, 128], strides = [1, 1]} : vector<8x512xf32> to vector<8x128xf32>
    %204 = math.tanh %203 : vector<8x128xf32>
    %205 = vector.extract_strided_slice %202 {offsets = [0, 0], sizes = [8, 128], strides = [1, 1]} : vector<8x384xf32> to vector<8x128xf32>
    %206 = vector.extract_strided_slice %202 {offsets = [0, 128], sizes = [8, 128], strides = [1, 1]} : vector<8x384xf32> to vector<8x128xf32>
    %207 = vector.extract_strided_slice %202 {offsets = [0, 256], sizes = [8, 128], strides = [1, 1]} : vector<8x384xf32> to vector<8x128xf32>
    %208 = arith.mulf %206, %177 : vector<8x128xf32>
    %209 = arith.mulf %205, %204 : vector<8x128xf32>
    %210 = arith.addf %208, %209 : vector<8x128xf32>
    %211 = math.tanh %210 : vector<8x128xf32>
    %212 = arith.mulf %207, %211 : vector<8x128xf32>
    %c64_i32_65 = arith.constant 64 : i32
    %213 = vector.broadcast %c64_i32_65 : i32 to vector<1x128xi32>
    %214 = arith.cmpi slt, %5, %213 : vector<1x128xi32>
    %215 = vector.broadcast %189 : i32 to vector<1x128xi32>
    %216 = vector.broadcast %190 : i32 to vector<1x128xi32>
    %217 = arith.select %214, %215, %216 : vector<1x128xi1>, vector<1x128xi32>
    %218 = vector.broadcast %217 : vector<1x128xi32> to vector<8x128xi32>
    %219 = vector.broadcast %3 : vector<8x1xi32> to vector<8x128xi32>
    %220 = arith.cmpi slt, %218, %219 : vector<8x128xi32>
    %221 = arith.select %220, %212, %176 : vector<8x128xi1>, vector<8x128xf32>
    %222 = arith.select %220, %210, %177 : vector<8x128xi1>, vector<8x128xf32>
    %cst_66 = arith.constant 0.000000e+00 : f32
    %223 = vector.broadcast %cst_66 : f32 to vector<8x128xf32>
    %224 = arith.select %220, %212, %223 : vector<8x128xi1>, vector<8x128xf32>
    %225 = vector.extract_strided_slice %224 {offsets = [0, 0], sizes = [8, 64], strides = [1, 1]} : vector<8x128xf32> to vector<8x64xf32>
    %226 = arith.truncf %225 : vector<8x64xf32> to vector<8x64xbf16>
    %227 = vector.shape_cast %226 : vector<8x64xbf16> to vector<1x8x64xbf16>
    %c4_67 = arith.constant 4 : index
    %c0_68 = arith.constant 0 : index
    %c0_69 = arith.constant 0 : index
    %228 = vector.load %arg4[%c4_67, %c0_68, %c0_69] : memref<8x8x64xbf16, #tpu.memory_space<vmem>>, vector<1x8x64xbf16>
    tpu.vector_store %arg4[%c4_67, %c0_68, %c0_69], %227 {strides = array<i32>} : memref<8x8x64xbf16, #tpu.memory_space<vmem>>, vector<1x8x64xbf16>,
    %229 = vector.extract_strided_slice %224 {offsets = [0, 64], sizes = [8, 64], strides = [1, 1]} : vector<8x128xf32> to vector<8x64xf32>
    %230 = arith.truncf %229 : vector<8x64xf32> to vector<8x64xbf16>
    %231 = vector.shape_cast %230 : vector<8x64xbf16> to vector<1x8x64xbf16>
    %c3_70 = arith.constant 3 : index
    %c0_71 = arith.constant 0 : index
    %c0_72 = arith.constant 0 : index
    %232 = vector.load %arg5[%c3_70, %c0_71, %c0_72] : memref<8x8x64xbf16, #tpu.memory_space<vmem>>, vector<1x8x64xbf16>
    tpu.vector_store %arg5[%c3_70, %c0_71, %c0_72], %231 {strides = array<i32>} : memref<8x8x64xbf16, #tpu.memory_space<vmem>>, vector<1x8x64xbf16>,
    %c8_i32_73 = arith.constant 8 : i32
    %233 = arith.muli %arg0, %c8_i32_73 : i32
    %c5_i32 = arith.constant 5 : i32
    %234 = arith.addi %233, %c5_i32 : i32
    %c7_i32_74 = arith.constant 7 : i32
    %235 = arith.subi %c7_i32_74, %234 : i32
    %c5_75 = arith.constant 5 : index
    %c0_76 = arith.constant 0 : index
    %c0_77 = arith.constant 0 : index
    %236 = vector.load %arg2[%c5_75, %c0_76, %c0_77] : memref<8x8x512xbf16, #tpu.memory_space<vmem>>, vector<1x8x512xbf16>
    %237 = vector.shape_cast %236 : vector<1x8x512xbf16> to vector<8x512xbf16>
    %238 = arith.extf %237 : vector<8x512xbf16> to vector<8x512xf32>
    %239 = arith.truncf %221 : vector<8x128xf32> to vector<8x128xbf16>
    %cst_78 = arith.constant dense<0.000000e+00> : vector<8x512xf32>
    %240 = tpu.matmul %239, %4, %cst_78 {dimension_numbers = #tpu.dot_dimension_numbers<[1], [0], [0], [1], [0, 0, 1, 1], [], []>} : vector<8x128xbf16>, vector<128x512xbf16>, vector<8x512xf32> -> vector<8x512xf32>
    %241 = arith.addf %238, %240 : vector<8x512xf32>
    %242 = vector.extract_strided_slice %241 {offsets = [0, 0], sizes = [8, 384], strides = [1, 1]} : vector<8x512xf32> to vector<8x384xf32>
    %243 = arith.negf %242 : vector<8x384xf32>
    %244 = math.exp %243 : vector<8x384xf32>
    %cst_79 = arith.constant 1.000000e+00 : f32
    %245 = vector.broadcast %cst_79 : f32 to vector<8x384xf32>
    %246 = arith.addf %245, %244 : vector<8x384xf32>
    %247 = arith.divf %245, %246 : vector<8x384xf32>
    %248 = vector.extract_strided_slice %241 {offsets = [0, 384], sizes = [8, 128], strides = [1, 1]} : vector<8x512xf32> to vector<8x128xf32>
    %249 = math.tanh %248 : vector<8x128xf32>
    %250 = vector.extract_strided_slice %247 {offsets = [0, 0], sizes = [8, 128], strides = [1, 1]} : vector<8x384xf32> to vector<8x128xf32>
    %251 = vector.extract_strided_slice %247 {offsets = [0, 128], sizes = [8, 128], strides = [1, 1]} : vector<8x384xf32> to vector<8x128xf32>
    %252 = vector.extract_strided_slice %247 {offsets = [0, 256], sizes = [8, 128], strides = [1, 1]} : vector<8x384xf32> to vector<8x128xf32>
    %253 = arith.mulf %251, %222 : vector<8x128xf32>
    %254 = arith.mulf %250, %249 : vector<8x128xf32>
    %255 = arith.addf %253, %254 : vector<8x128xf32>
    %256 = math.tanh %255 : vector<8x128xf32>
    %257 = arith.mulf %252, %256 : vector<8x128xf32>
    %c64_i32_80 = arith.constant 64 : i32
    %258 = vector.broadcast %c64_i32_80 : i32 to vector<1x128xi32>
    %259 = arith.cmpi slt, %5, %258 : vector<1x128xi32>
    %260 = vector.broadcast %234 : i32 to vector<1x128xi32>
    %261 = vector.broadcast %235 : i32 to vector<1x128xi32>
    %262 = arith.select %259, %260, %261 : vector<1x128xi1>, vector<1x128xi32>
    %263 = vector.broadcast %262 : vector<1x128xi32> to vector<8x128xi32>
    %264 = vector.broadcast %3 : vector<8x1xi32> to vector<8x128xi32>
    %265 = arith.cmpi slt, %263, %264 : vector<8x128xi32>
    %266 = arith.select %265, %257, %221 : vector<8x128xi1>, vector<8x128xf32>
    %267 = arith.select %265, %255, %222 : vector<8x128xi1>, vector<8x128xf32>
    %cst_81 = arith.constant 0.000000e+00 : f32
    %268 = vector.broadcast %cst_81 : f32 to vector<8x128xf32>
    %269 = arith.select %265, %257, %268 : vector<8x128xi1>, vector<8x128xf32>
    %270 = vector.extract_strided_slice %269 {offsets = [0, 0], sizes = [8, 64], strides = [1, 1]} : vector<8x128xf32> to vector<8x64xf32>
    %271 = arith.truncf %270 : vector<8x64xf32> to vector<8x64xbf16>
    %272 = vector.shape_cast %271 : vector<8x64xbf16> to vector<1x8x64xbf16>
    %c5_82 = arith.constant 5 : index
    %c0_83 = arith.constant 0 : index
    %c0_84 = arith.constant 0 : index
    %273 = vector.load %arg4[%c5_82, %c0_83, %c0_84] : memref<8x8x64xbf16, #tpu.memory_space<vmem>>, vector<1x8x64xbf16>
    tpu.vector_store %arg4[%c5_82, %c0_83, %c0_84], %272 {strides = array<i32>} : memref<8x8x64xbf16, #tpu.memory_space<vmem>>, vector<1x8x64xbf16>,
    %274 = vector.extract_strided_slice %269 {offsets = [0, 64], sizes = [8, 64], strides = [1, 1]} : vector<8x128xf32> to vector<8x64xf32>
    %275 = arith.truncf %274 : vector<8x64xf32> to vector<8x64xbf16>
    %276 = vector.shape_cast %275 : vector<8x64xbf16> to vector<1x8x64xbf16>
    %c2_85 = arith.constant 2 : index
    %c0_86 = arith.constant 0 : index
    %c0_87 = arith.constant 0 : index
    %277 = vector.load %arg5[%c2_85, %c0_86, %c0_87] : memref<8x8x64xbf16, #tpu.memory_space<vmem>>, vector<1x8x64xbf16>
    tpu.vector_store %arg5[%c2_85, %c0_86, %c0_87], %276 {strides = array<i32>} : memref<8x8x64xbf16, #tpu.memory_space<vmem>>, vector<1x8x64xbf16>,
    %c8_i32_88 = arith.constant 8 : i32
    %278 = arith.muli %arg0, %c8_i32_88 : i32
    %c6_i32 = arith.constant 6 : i32
    %279 = arith.addi %278, %c6_i32 : i32
    %c7_i32_89 = arith.constant 7 : i32
    %280 = arith.subi %c7_i32_89, %279 : i32
    %c6_90 = arith.constant 6 : index
    %c0_91 = arith.constant 0 : index
    %c0_92 = arith.constant 0 : index
    %281 = vector.load %arg2[%c6_90, %c0_91, %c0_92] : memref<8x8x512xbf16, #tpu.memory_space<vmem>>, vector<1x8x512xbf16>
    %282 = vector.shape_cast %281 : vector<1x8x512xbf16> to vector<8x512xbf16>
    %283 = arith.extf %282 : vector<8x512xbf16> to vector<8x512xf32>
    %284 = arith.truncf %266 : vector<8x128xf32> to vector<8x128xbf16>
    %cst_93 = arith.constant dense<0.000000e+00> : vector<8x512xf32>
    %285 = tpu.matmul %284, %4, %cst_93 {dimension_numbers = #tpu.dot_dimension_numbers<[1], [0], [0], [1], [0, 0, 1, 1], [], []>} : vector<8x128xbf16>, vector<128x512xbf16>, vector<8x512xf32> -> vector<8x512xf32>
    %286 = arith.addf %283, %285 : vector<8x512xf32>
    %287 = vector.extract_strided_slice %286 {offsets = [0, 0], sizes = [8, 384], strides = [1, 1]} : vector<8x512xf32> to vector<8x384xf32>
    %288 = arith.negf %287 : vector<8x384xf32>
    %289 = math.exp %288 : vector<8x384xf32>
    %cst_94 = arith.constant 1.000000e+00 : f32
    %290 = vector.broadcast %cst_94 : f32 to vector<8x384xf32>
    %291 = arith.addf %290, %289 : vector<8x384xf32>
    %292 = arith.divf %290, %291 : vector<8x384xf32>
    %293 = vector.extract_strided_slice %286 {offsets = [0, 384], sizes = [8, 128], strides = [1, 1]} : vector<8x512xf32> to vector<8x128xf32>
    %294 = math.tanh %293 : vector<8x128xf32>
    %295 = vector.extract_strided_slice %292 {offsets = [0, 0], sizes = [8, 128], strides = [1, 1]} : vector<8x384xf32> to vector<8x128xf32>
    %296 = vector.extract_strided_slice %292 {offsets = [0, 128], sizes = [8, 128], strides = [1, 1]} : vector<8x384xf32> to vector<8x128xf32>
    %297 = vector.extract_strided_slice %292 {offsets = [0, 256], sizes = [8, 128], strides = [1, 1]} : vector<8x384xf32> to vector<8x128xf32>
    %298 = arith.mulf %296, %267 : vector<8x128xf32>
    %299 = arith.mulf %295, %294 : vector<8x128xf32>
    %300 = arith.addf %298, %299 : vector<8x128xf32>
    %301 = math.tanh %300 : vector<8x128xf32>
    %302 = arith.mulf %297, %301 : vector<8x128xf32>
    %c64_i32_95 = arith.constant 64 : i32
    %303 = vector.broadcast %c64_i32_95 : i32 to vector<1x128xi32>
    %304 = arith.cmpi slt, %5, %303 : vector<1x128xi32>
    %305 = vector.broadcast %279 : i32 to vector<1x128xi32>
    %306 = vector.broadcast %280 : i32 to vector<1x128xi32>
    %307 = arith.select %304, %305, %306 : vector<1x128xi1>, vector<1x128xi32>
    %308 = vector.broadcast %307 : vector<1x128xi32> to vector<8x128xi32>
    %309 = vector.broadcast %3 : vector<8x1xi32> to vector<8x128xi32>
    %310 = arith.cmpi slt, %308, %309 : vector<8x128xi32>
    %311 = arith.select %310, %302, %266 : vector<8x128xi1>, vector<8x128xf32>
    %312 = arith.select %310, %300, %267 : vector<8x128xi1>, vector<8x128xf32>
    %cst_96 = arith.constant 0.000000e+00 : f32
    %313 = vector.broadcast %cst_96 : f32 to vector<8x128xf32>
    %314 = arith.select %310, %302, %313 : vector<8x128xi1>, vector<8x128xf32>
    %315 = vector.extract_strided_slice %314 {offsets = [0, 0], sizes = [8, 64], strides = [1, 1]} : vector<8x128xf32> to vector<8x64xf32>
    %316 = arith.truncf %315 : vector<8x64xf32> to vector<8x64xbf16>
    %317 = vector.shape_cast %316 : vector<8x64xbf16> to vector<1x8x64xbf16>
    %c6_97 = arith.constant 6 : index
    %c0_98 = arith.constant 0 : index
    %c0_99 = arith.constant 0 : index
    %318 = vector.load %arg4[%c6_97, %c0_98, %c0_99] : memref<8x8x64xbf16, #tpu.memory_space<vmem>>, vector<1x8x64xbf16>
    tpu.vector_store %arg4[%c6_97, %c0_98, %c0_99], %317 {strides = array<i32>} : memref<8x8x64xbf16, #tpu.memory_space<vmem>>, vector<1x8x64xbf16>,
    %319 = vector.extract_strided_slice %314 {offsets = [0, 64], sizes = [8, 64], strides = [1, 1]} : vector<8x128xf32> to vector<8x64xf32>
    %320 = arith.truncf %319 : vector<8x64xf32> to vector<8x64xbf16>
    %321 = vector.shape_cast %320 : vector<8x64xbf16> to vector<1x8x64xbf16>
    %c1_100 = arith.constant 1 : index
    %c0_101 = arith.constant 0 : index
    %c0_102 = arith.constant 0 : index
    %322 = vector.load %arg5[%c1_100, %c0_101, %c0_102] : memref<8x8x64xbf16, #tpu.memory_space<vmem>>, vector<1x8x64xbf16>
    tpu.vector_store %arg5[%c1_100, %c0_101, %c0_102], %321 {strides = array<i32>} : memref<8x8x64xbf16, #tpu.memory_space<vmem>>, vector<1x8x64xbf16>,
    %c8_i32_103 = arith.constant 8 : i32
    %323 = arith.muli %arg0, %c8_i32_103 : i32
    %c7_i32_104 = arith.constant 7 : i32
    %324 = arith.addi %323, %c7_i32_104 : i32
    %c7_i32_105 = arith.constant 7 : i32
    %325 = arith.subi %c7_i32_105, %324 : i32
    %c7_106 = arith.constant 7 : index
    %c0_107 = arith.constant 0 : index
    %c0_108 = arith.constant 0 : index
    %326 = vector.load %arg2[%c7_106, %c0_107, %c0_108] : memref<8x8x512xbf16, #tpu.memory_space<vmem>>, vector<1x8x512xbf16>
    %327 = vector.shape_cast %326 : vector<1x8x512xbf16> to vector<8x512xbf16>
    %328 = arith.extf %327 : vector<8x512xbf16> to vector<8x512xf32>
    %329 = arith.truncf %311 : vector<8x128xf32> to vector<8x128xbf16>
    %cst_109 = arith.constant dense<0.000000e+00> : vector<8x512xf32>
    %330 = tpu.matmul %329, %4, %cst_109 {dimension_numbers = #tpu.dot_dimension_numbers<[1], [0], [0], [1], [0, 0, 1, 1], [], []>} : vector<8x128xbf16>, vector<128x512xbf16>, vector<8x512xf32> -> vector<8x512xf32>
    %331 = arith.addf %328, %330 : vector<8x512xf32>
    %332 = vector.extract_strided_slice %331 {offsets = [0, 0], sizes = [8, 384], strides = [1, 1]} : vector<8x512xf32> to vector<8x384xf32>
    %333 = arith.negf %332 : vector<8x384xf32>
    %334 = math.exp %333 : vector<8x384xf32>
    %cst_110 = arith.constant 1.000000e+00 : f32
    %335 = vector.broadcast %cst_110 : f32 to vector<8x384xf32>
    %336 = arith.addf %335, %334 : vector<8x384xf32>
    %337 = arith.divf %335, %336 : vector<8x384xf32>
    %338 = vector.extract_strided_slice %331 {offsets = [0, 384], sizes = [8, 128], strides = [1, 1]} : vector<8x512xf32> to vector<8x128xf32>
    %339 = math.tanh %338 : vector<8x128xf32>
    %340 = vector.extract_strided_slice %337 {offsets = [0, 0], sizes = [8, 128], strides = [1, 1]} : vector<8x384xf32> to vector<8x128xf32>
    %341 = vector.extract_strided_slice %337 {offsets = [0, 128], sizes = [8, 128], strides = [1, 1]} : vector<8x384xf32> to vector<8x128xf32>
    %342 = vector.extract_strided_slice %337 {offsets = [0, 256], sizes = [8, 128], strides = [1, 1]} : vector<8x384xf32> to vector<8x128xf32>
    %343 = arith.mulf %341, %312 : vector<8x128xf32>
    %344 = arith.mulf %340, %339 : vector<8x128xf32>
    %345 = arith.addf %343, %344 : vector<8x128xf32>
    %346 = math.tanh %345 : vector<8x128xf32>
    %347 = arith.mulf %342, %346 : vector<8x128xf32>
    %c64_i32_111 = arith.constant 64 : i32
    %348 = vector.broadcast %c64_i32_111 : i32 to vector<1x128xi32>
    %349 = arith.cmpi slt, %5, %348 : vector<1x128xi32>
    %350 = vector.broadcast %324 : i32 to vector<1x128xi32>
    %351 = vector.broadcast %325 : i32 to vector<1x128xi32>
    %352 = arith.select %349, %350, %351 : vector<1x128xi1>, vector<1x128xi32>
    %353 = vector.broadcast %352 : vector<1x128xi32> to vector<8x128xi32>
    %354 = vector.broadcast %3 : vector<8x1xi32> to vector<8x128xi32>
    %355 = arith.cmpi slt, %353, %354 : vector<8x128xi32>
    %356 = arith.select %355, %347, %311 : vector<8x128xi1>, vector<8x128xf32>
    %357 = arith.select %355, %345, %312 : vector<8x128xi1>, vector<8x128xf32>
    %cst_112 = arith.constant 0.000000e+00 : f32
    %358 = vector.broadcast %cst_112 : f32 to vector<8x128xf32>
    %359 = arith.select %355, %347, %358 : vector<8x128xi1>, vector<8x128xf32>
    %360 = vector.extract_strided_slice %359 {offsets = [0, 0], sizes = [8, 64], strides = [1, 1]} : vector<8x128xf32> to vector<8x64xf32>
    %361 = arith.truncf %360 : vector<8x64xf32> to vector<8x64xbf16>
    %362 = vector.shape_cast %361 : vector<8x64xbf16> to vector<1x8x64xbf16>
    %c7_113 = arith.constant 7 : index
    %c0_114 = arith.constant 0 : index
    %c0_115 = arith.constant 0 : index
    %363 = vector.load %arg4[%c7_113, %c0_114, %c0_115] : memref<8x8x64xbf16, #tpu.memory_space<vmem>>, vector<1x8x64xbf16>
    tpu.vector_store %arg4[%c7_113, %c0_114, %c0_115], %362 {strides = array<i32>} : memref<8x8x64xbf16, #tpu.memory_space<vmem>>, vector<1x8x64xbf16>,
    %364 = vector.extract_strided_slice %359 {offsets = [0, 64], sizes = [8, 64], strides = [1, 1]} : vector<8x128xf32> to vector<8x64xf32>
    %365 = arith.truncf %364 : vector<8x64xf32> to vector<8x64xbf16>
    %366 = vector.shape_cast %365 : vector<8x64xbf16> to vector<1x8x64xbf16>
    %c0_116 = arith.constant 0 : index
    %c0_117 = arith.constant 0 : index
    %c0_118 = arith.constant 0 : index
    %367 = vector.load %arg5[%c0_116, %c0_117, %c0_118] : memref<8x8x64xbf16, #tpu.memory_space<vmem>>, vector<1x8x64xbf16>
    tpu.vector_store %arg5[%c0_116, %c0_117, %c0_118], %366 {strides = array<i32>} : memref<8x8x64xbf16, #tpu.memory_space<vmem>>, vector<1x8x64xbf16>,
    %c0_119 = arith.constant 0 : index
    %c0_120 = arith.constant 0 : index
    %368 = vector.load %arg6[%c0_119, %c0_120] : memref<8x128xf32, #tpu.memory_space<vmem>>, vector<8x128xf32>
    tpu.vector_store %arg6[%c0_119, %c0_120], %356 {strides = array<i32>} : memref<8x128xf32, #tpu.memory_space<vmem>>, vector<8x128xf32>,
    %c0_121 = arith.constant 0 : index
    %c0_122 = arith.constant 0 : index
    %369 = vector.load %arg7[%c0_121, %c0_122] : memref<8x128xf32, #tpu.memory_space<vmem>>, vector<8x128xf32>
    tpu.vector_store %arg7[%c0_121, %c0_122], %357 {strides = array<i32>} : memref<8x128xf32, #tpu.memory_space<vmem>>, vector<8x128xf32>,
    return
  }
  func.func @transform_0(%arg0: i32) -> (i32, i32) {
    %c0_i32 = arith.constant 0 : i32
    %c0_i32_0 = arith.constant 0 : i32
    %c0_i32_1 = arith.constant 0 : i32
    return %c0_i32, %c0_i32_0 : i32, i32
  }
  func.func @transform_1(%arg0: i32) -> (i32, i32, i32) {
    %c0_i32 = arith.constant 0 : i32
    %c0_i32_0 = arith.constant 0 : i32
    %c0_i32_1 = arith.constant 0 : i32
    return %arg0, %c0_i32, %c0_i32_0 : i32, i32, i32
  }
  func.func @transform_2(%arg0: i32) -> (i32, i32) {
    %c0_i32 = arith.constant 0 : i32
    %c0_i32_0 = arith.constant 0 : i32
    %c0_i32_1 = arith.constant 0 : i32
    return %c0_i32, %c0_i32_0 : i32, i32
  }
  func.func @transform_3(%arg0: i32) -> (i32, i32, i32) {
    %c0_i32 = arith.constant 0 : i32
    %c0_i32_0 = arith.constant 0 : i32
    %c0_i32_1 = arith.constant 0 : i32
    return %arg0, %c0_i32, %c0_i32_0 : i32, i32, i32
  }
  func.func @transform_4(%arg0: i32) -> (i32, i32, i32) {
    %c0_i32 = arith.constant 0 : i32
    %0 = arith.subi %c0_i32, %arg0 : i32
    %c0_i32_0 = arith.constant 0 : i32
    %c0_i32_1 = arith.constant 0 : i32
    %c0_i32_2 = arith.constant 0 : i32
    return %0, %c0_i32_0, %c0_i32_1 : i32, i32, i32
  }
}

module attributes {stable_mosaic.version = 11 : i64} {
  func.func @_bilstm_layer_kernel(%arg0: i32, %arg1: memref<8x1xi32, #tpu.memory_space<vmem>>, %arg2: memref<8x8x512xbf16, #tpu.memory_space<vmem>>, %arg3: memref<128x512xbf16, #tpu.memory_space<vmem>>, %arg4: memref<128x1xf32, #tpu.memory_space<vmem>>, %arg5: memref<1x1xf32, #tpu.memory_space<vmem>>, %arg6: memref<8x1xf32, #tpu.memory_space<vmem>>, %arg7: memref<8x128xf32, #tpu.memory_space<vmem>>, %arg8: memref<8x128xf32, #tpu.memory_space<vmem>>) attributes {dimension_semantics = [#tpu.dimension_semantics<arbitrary>], iteration_bounds = array<i64: 1>, scalar_prefetch = 0 : i64, scratch_operands = 2 : i64, tpu.core_type = #tpu.core_type<tc>, window_params = [{pipeline_mode = #tpu.pipeline_mode<synchronous>, transform_indices = @transform_0, window_bounds = array<i64: 8, 1>}, {transform_indices = @transform_1, window_bounds = array<i64: 8, 8, 512>}, {pipeline_mode = #tpu.pipeline_mode<synchronous>, transform_indices = @transform_2, window_bounds = array<i64: 128, 512>}, {pipeline_mode = #tpu.pipeline_mode<synchronous>, transform_indices = @transform_3, window_bounds = array<i64: 128, 1>}, {pipeline_mode = #tpu.pipeline_mode<synchronous>, transform_indices = @transform_4, window_bounds = array<i64: 1, 1>}, {pipeline_mode = #tpu.pipeline_mode<synchronous>, transform_indices = @transform_5, window_bounds = array<i64: 8, 1>}]} {
    %c0_i32 = arith.constant 0 : i32
    %0 = arith.cmpi eq, %arg0, %c0_i32 : i32
    %1 = arith.extui %0 : i1 to i32
    %c0_i32_0 = arith.constant 0 : i32
    %2 = arith.cmpi ne, %1, %c0_i32_0 : i32
    scf.if %2 {
      %cst_69 = arith.constant 0.000000e+00 : f32
      %293 = vector.broadcast %cst_69 : f32 to vector<8x128xf32>
      %c0_70 = arith.constant 0 : index
      %c0_71 = arith.constant 0 : index
      %294 = vector.load %arg7[%c0_70, %c0_71] : memref<8x128xf32, #tpu.memory_space<vmem>>, vector<8x128xf32>
      tpu.vector_store %arg7[%c0_70, %c0_71], %293 {strides = array<i32>} : memref<8x128xf32, #tpu.memory_space<vmem>>, vector<8x128xf32>,
      %cst_72 = arith.constant 0.000000e+00 : f32
      %295 = vector.broadcast %cst_72 : f32 to vector<8x128xf32>
      %c0_73 = arith.constant 0 : index
      %c0_74 = arith.constant 0 : index
      %296 = vector.load %arg8[%c0_73, %c0_74] : memref<8x128xf32, #tpu.memory_space<vmem>>, vector<8x128xf32>
      tpu.vector_store %arg8[%c0_73, %c0_74], %295 {strides = array<i32>} : memref<8x128xf32, #tpu.memory_space<vmem>>, vector<8x128xf32>,
    } else {
    }
    %c0 = arith.constant 0 : index
    %c0_1 = arith.constant 0 : index
    %3 = vector.load %arg1[%c0, %c0_1] : memref<8x1xi32, #tpu.memory_space<vmem>>, vector<8x1xi32>
    %c0_2 = arith.constant 0 : index
    %c0_3 = arith.constant 0 : index
    %4 = vector.load %arg3[%c0_2, %c0_3] : memref<128x512xbf16, #tpu.memory_space<vmem>>, vector<128x512xbf16>
    %5 = tpu.iota {dimensions = array<i32: 1>} : vector<1x128xi32>
    %c0_4 = arith.constant 0 : index
    %c0_5 = arith.constant 0 : index
    %6 = vector.load %arg7[%c0_4, %c0_5] : memref<8x128xf32, #tpu.memory_space<vmem>>, vector<8x128xf32>
    %c0_6 = arith.constant 0 : index
    %c0_7 = arith.constant 0 : index
    %7 = vector.load %arg8[%c0_6, %c0_7] : memref<8x128xf32, #tpu.memory_space<vmem>>, vector<8x128xf32>
    %c8_i32 = arith.constant 8 : i32
    %8 = arith.muli %arg0, %c8_i32 : i32
    %c0_i32_8 = arith.constant 0 : i32
    %9 = arith.addi %8, %c0_i32_8 : i32
    %c7_i32 = arith.constant 7 : i32
    %10 = arith.subi %c7_i32, %9 : i32
    %c0_9 = arith.constant 0 : index
    %c0_10 = arith.constant 0 : index
    %c0_11 = arith.constant 0 : index
    %11 = vector.load %arg2[%c0_9, %c0_10, %c0_11] : memref<8x8x512xbf16, #tpu.memory_space<vmem>>, vector<1x8x512xbf16>
    %12 = vector.shape_cast %11 : vector<1x8x512xbf16> to vector<8x512xbf16>
    %13 = arith.extf %12 : vector<8x512xbf16> to vector<8x512xf32>
    %14 = arith.truncf %6 : vector<8x128xf32> to vector<8x128xbf16>
    %cst = arith.constant dense<0.000000e+00> : vector<8x512xf32>
    %15 = tpu.matmul %14, %4, %cst {dimension_numbers = #tpu.dot_dimension_numbers<[1], [0], [0], [1], [0, 0, 1, 1], [], []>} : vector<8x128xbf16>, vector<128x512xbf16>, vector<8x512xf32> -> vector<8x512xf32>
    %16 = arith.addf %13, %15 : vector<8x512xf32>
    %17 = vector.extract_strided_slice %16 {offsets = [0, 0], sizes = [8, 384], strides = [1, 1]} : vector<8x512xf32> to vector<8x384xf32>
    %18 = arith.negf %17 : vector<8x384xf32>
    %19 = math.exp %18 : vector<8x384xf32>
    %cst_12 = arith.constant 1.000000e+00 : f32
    %20 = vector.broadcast %cst_12 : f32 to vector<8x384xf32>
    %21 = arith.addf %20, %19 : vector<8x384xf32>
    %22 = arith.divf %20, %21 : vector<8x384xf32>
    %23 = vector.extract_strided_slice %16 {offsets = [0, 384], sizes = [8, 128], strides = [1, 1]} : vector<8x512xf32> to vector<8x128xf32>
    %24 = math.tanh %23 : vector<8x128xf32>
    %25 = vector.extract_strided_slice %22 {offsets = [0, 0], sizes = [8, 128], strides = [1, 1]} : vector<8x384xf32> to vector<8x128xf32>
    %26 = vector.extract_strided_slice %22 {offsets = [0, 128], sizes = [8, 128], strides = [1, 1]} : vector<8x384xf32> to vector<8x128xf32>
    %27 = vector.extract_strided_slice %22 {offsets = [0, 256], sizes = [8, 128], strides = [1, 1]} : vector<8x384xf32> to vector<8x128xf32>
    %28 = arith.mulf %26, %7 : vector<8x128xf32>
    %29 = arith.mulf %25, %24 : vector<8x128xf32>
    %30 = arith.addf %28, %29 : vector<8x128xf32>
    %31 = math.tanh %30 : vector<8x128xf32>
    %32 = arith.mulf %27, %31 : vector<8x128xf32>
    %c64_i32 = arith.constant 64 : i32
    %33 = vector.broadcast %c64_i32 : i32 to vector<1x128xi32>
    %34 = arith.cmpi slt, %5, %33 : vector<1x128xi32>
    %35 = vector.broadcast %9 : i32 to vector<1x128xi32>
    %36 = vector.broadcast %10 : i32 to vector<1x128xi32>
    %37 = arith.select %34, %35, %36 : vector<1x128xi1>, vector<1x128xi32>
    %38 = vector.broadcast %37 : vector<1x128xi32> to vector<8x128xi32>
    %39 = vector.broadcast %3 : vector<8x1xi32> to vector<8x128xi32>
    %40 = arith.cmpi slt, %38, %39 : vector<8x128xi32>
    %41 = arith.select %40, %32, %6 : vector<8x128xi1>, vector<8x128xf32>
    %42 = arith.select %40, %30, %7 : vector<8x128xi1>, vector<8x128xf32>
    %c8_i32_13 = arith.constant 8 : i32
    %43 = arith.muli %arg0, %c8_i32_13 : i32
    %c1_i32 = arith.constant 1 : i32
    %44 = arith.addi %43, %c1_i32 : i32
    %c7_i32_14 = arith.constant 7 : i32
    %45 = arith.subi %c7_i32_14, %44 : i32
    %c1 = arith.constant 1 : index
    %c0_15 = arith.constant 0 : index
    %c0_16 = arith.constant 0 : index
    %46 = vector.load %arg2[%c1, %c0_15, %c0_16] : memref<8x8x512xbf16, #tpu.memory_space<vmem>>, vector<1x8x512xbf16>
    %47 = vector.shape_cast %46 : vector<1x8x512xbf16> to vector<8x512xbf16>
    %48 = arith.extf %47 : vector<8x512xbf16> to vector<8x512xf32>
    %49 = arith.truncf %41 : vector<8x128xf32> to vector<8x128xbf16>
    %cst_17 = arith.constant dense<0.000000e+00> : vector<8x512xf32>
    %50 = tpu.matmul %49, %4, %cst_17 {dimension_numbers = #tpu.dot_dimension_numbers<[1], [0], [0], [1], [0, 0, 1, 1], [], []>} : vector<8x128xbf16>, vector<128x512xbf16>, vector<8x512xf32> -> vector<8x512xf32>
    %51 = arith.addf %48, %50 : vector<8x512xf32>
    %52 = vector.extract_strided_slice %51 {offsets = [0, 0], sizes = [8, 384], strides = [1, 1]} : vector<8x512xf32> to vector<8x384xf32>
    %53 = arith.negf %52 : vector<8x384xf32>
    %54 = math.exp %53 : vector<8x384xf32>
    %cst_18 = arith.constant 1.000000e+00 : f32
    %55 = vector.broadcast %cst_18 : f32 to vector<8x384xf32>
    %56 = arith.addf %55, %54 : vector<8x384xf32>
    %57 = arith.divf %55, %56 : vector<8x384xf32>
    %58 = vector.extract_strided_slice %51 {offsets = [0, 384], sizes = [8, 128], strides = [1, 1]} : vector<8x512xf32> to vector<8x128xf32>
    %59 = math.tanh %58 : vector<8x128xf32>
    %60 = vector.extract_strided_slice %57 {offsets = [0, 0], sizes = [8, 128], strides = [1, 1]} : vector<8x384xf32> to vector<8x128xf32>
    %61 = vector.extract_strided_slice %57 {offsets = [0, 128], sizes = [8, 128], strides = [1, 1]} : vector<8x384xf32> to vector<8x128xf32>
    %62 = vector.extract_strided_slice %57 {offsets = [0, 256], sizes = [8, 128], strides = [1, 1]} : vector<8x384xf32> to vector<8x128xf32>
    %63 = arith.mulf %61, %42 : vector<8x128xf32>
    %64 = arith.mulf %60, %59 : vector<8x128xf32>
    %65 = arith.addf %63, %64 : vector<8x128xf32>
    %66 = math.tanh %65 : vector<8x128xf32>
    %67 = arith.mulf %62, %66 : vector<8x128xf32>
    %c64_i32_19 = arith.constant 64 : i32
    %68 = vector.broadcast %c64_i32_19 : i32 to vector<1x128xi32>
    %69 = arith.cmpi slt, %5, %68 : vector<1x128xi32>
    %70 = vector.broadcast %44 : i32 to vector<1x128xi32>
    %71 = vector.broadcast %45 : i32 to vector<1x128xi32>
    %72 = arith.select %69, %70, %71 : vector<1x128xi1>, vector<1x128xi32>
    %73 = vector.broadcast %72 : vector<1x128xi32> to vector<8x128xi32>
    %74 = vector.broadcast %3 : vector<8x1xi32> to vector<8x128xi32>
    %75 = arith.cmpi slt, %73, %74 : vector<8x128xi32>
    %76 = arith.select %75, %67, %41 : vector<8x128xi1>, vector<8x128xf32>
    %77 = arith.select %75, %65, %42 : vector<8x128xi1>, vector<8x128xf32>
    %c8_i32_20 = arith.constant 8 : i32
    %78 = arith.muli %arg0, %c8_i32_20 : i32
    %c2_i32 = arith.constant 2 : i32
    %79 = arith.addi %78, %c2_i32 : i32
    %c7_i32_21 = arith.constant 7 : i32
    %80 = arith.subi %c7_i32_21, %79 : i32
    %c2 = arith.constant 2 : index
    %c0_22 = arith.constant 0 : index
    %c0_23 = arith.constant 0 : index
    %81 = vector.load %arg2[%c2, %c0_22, %c0_23] : memref<8x8x512xbf16, #tpu.memory_space<vmem>>, vector<1x8x512xbf16>
    %82 = vector.shape_cast %81 : vector<1x8x512xbf16> to vector<8x512xbf16>
    %83 = arith.extf %82 : vector<8x512xbf16> to vector<8x512xf32>
    %84 = arith.truncf %76 : vector<8x128xf32> to vector<8x128xbf16>
    %cst_24 = arith.constant dense<0.000000e+00> : vector<8x512xf32>
    %85 = tpu.matmul %84, %4, %cst_24 {dimension_numbers = #tpu.dot_dimension_numbers<[1], [0], [0], [1], [0, 0, 1, 1], [], []>} : vector<8x128xbf16>, vector<128x512xbf16>, vector<8x512xf32> -> vector<8x512xf32>
    %86 = arith.addf %83, %85 : vector<8x512xf32>
    %87 = vector.extract_strided_slice %86 {offsets = [0, 0], sizes = [8, 384], strides = [1, 1]} : vector<8x512xf32> to vector<8x384xf32>
    %88 = arith.negf %87 : vector<8x384xf32>
    %89 = math.exp %88 : vector<8x384xf32>
    %cst_25 = arith.constant 1.000000e+00 : f32
    %90 = vector.broadcast %cst_25 : f32 to vector<8x384xf32>
    %91 = arith.addf %90, %89 : vector<8x384xf32>
    %92 = arith.divf %90, %91 : vector<8x384xf32>
    %93 = vector.extract_strided_slice %86 {offsets = [0, 384], sizes = [8, 128], strides = [1, 1]} : vector<8x512xf32> to vector<8x128xf32>
    %94 = math.tanh %93 : vector<8x128xf32>
    %95 = vector.extract_strided_slice %92 {offsets = [0, 0], sizes = [8, 128], strides = [1, 1]} : vector<8x384xf32> to vector<8x128xf32>
    %96 = vector.extract_strided_slice %92 {offsets = [0, 128], sizes = [8, 128], strides = [1, 1]} : vector<8x384xf32> to vector<8x128xf32>
    %97 = vector.extract_strided_slice %92 {offsets = [0, 256], sizes = [8, 128], strides = [1, 1]} : vector<8x384xf32> to vector<8x128xf32>
    %98 = arith.mulf %96, %77 : vector<8x128xf32>
    %99 = arith.mulf %95, %94 : vector<8x128xf32>
    %100 = arith.addf %98, %99 : vector<8x128xf32>
    %101 = math.tanh %100 : vector<8x128xf32>
    %102 = arith.mulf %97, %101 : vector<8x128xf32>
    %c64_i32_26 = arith.constant 64 : i32
    %103 = vector.broadcast %c64_i32_26 : i32 to vector<1x128xi32>
    %104 = arith.cmpi slt, %5, %103 : vector<1x128xi32>
    %105 = vector.broadcast %79 : i32 to vector<1x128xi32>
    %106 = vector.broadcast %80 : i32 to vector<1x128xi32>
    %107 = arith.select %104, %105, %106 : vector<1x128xi1>, vector<1x128xi32>
    %108 = vector.broadcast %107 : vector<1x128xi32> to vector<8x128xi32>
    %109 = vector.broadcast %3 : vector<8x1xi32> to vector<8x128xi32>
    %110 = arith.cmpi slt, %108, %109 : vector<8x128xi32>
    %111 = arith.select %110, %102, %76 : vector<8x128xi1>, vector<8x128xf32>
    %112 = arith.select %110, %100, %77 : vector<8x128xi1>, vector<8x128xf32>
    %c8_i32_27 = arith.constant 8 : i32
    %113 = arith.muli %arg0, %c8_i32_27 : i32
    %c3_i32 = arith.constant 3 : i32
    %114 = arith.addi %113, %c3_i32 : i32
    %c7_i32_28 = arith.constant 7 : i32
    %115 = arith.subi %c7_i32_28, %114 : i32
    %c3 = arith.constant 3 : index
    %c0_29 = arith.constant 0 : index
    %c0_30 = arith.constant 0 : index
    %116 = vector.load %arg2[%c3, %c0_29, %c0_30] : memref<8x8x512xbf16, #tpu.memory_space<vmem>>, vector<1x8x512xbf16>
    %117 = vector.shape_cast %116 : vector<1x8x512xbf16> to vector<8x512xbf16>
    %118 = arith.extf %117 : vector<8x512xbf16> to vector<8x512xf32>
    %119 = arith.truncf %111 : vector<8x128xf32> to vector<8x128xbf16>
    %cst_31 = arith.constant dense<0.000000e+00> : vector<8x512xf32>
    %120 = tpu.matmul %119, %4, %cst_31 {dimension_numbers = #tpu.dot_dimension_numbers<[1], [0], [0], [1], [0, 0, 1, 1], [], []>} : vector<8x128xbf16>, vector<128x512xbf16>, vector<8x512xf32> -> vector<8x512xf32>
    %121 = arith.addf %118, %120 : vector<8x512xf32>
    %122 = vector.extract_strided_slice %121 {offsets = [0, 0], sizes = [8, 384], strides = [1, 1]} : vector<8x512xf32> to vector<8x384xf32>
    %123 = arith.negf %122 : vector<8x384xf32>
    %124 = math.exp %123 : vector<8x384xf32>
    %cst_32 = arith.constant 1.000000e+00 : f32
    %125 = vector.broadcast %cst_32 : f32 to vector<8x384xf32>
    %126 = arith.addf %125, %124 : vector<8x384xf32>
    %127 = arith.divf %125, %126 : vector<8x384xf32>
    %128 = vector.extract_strided_slice %121 {offsets = [0, 384], sizes = [8, 128], strides = [1, 1]} : vector<8x512xf32> to vector<8x128xf32>
    %129 = math.tanh %128 : vector<8x128xf32>
    %130 = vector.extract_strided_slice %127 {offsets = [0, 0], sizes = [8, 128], strides = [1, 1]} : vector<8x384xf32> to vector<8x128xf32>
    %131 = vector.extract_strided_slice %127 {offsets = [0, 128], sizes = [8, 128], strides = [1, 1]} : vector<8x384xf32> to vector<8x128xf32>
    %132 = vector.extract_strided_slice %127 {offsets = [0, 256], sizes = [8, 128], strides = [1, 1]} : vector<8x384xf32> to vector<8x128xf32>
    %133 = arith.mulf %131, %112 : vector<8x128xf32>
    %134 = arith.mulf %130, %129 : vector<8x128xf32>
    %135 = arith.addf %133, %134 : vector<8x128xf32>
    %136 = math.tanh %135 : vector<8x128xf32>
    %137 = arith.mulf %132, %136 : vector<8x128xf32>
    %c64_i32_33 = arith.constant 64 : i32
    %138 = vector.broadcast %c64_i32_33 : i32 to vector<1x128xi32>
    %139 = arith.cmpi slt, %5, %138 : vector<1x128xi32>
    %140 = vector.broadcast %114 : i32 to vector<1x128xi32>
    %141 = vector.broadcast %115 : i32 to vector<1x128xi32>
    %142 = arith.select %139, %140, %141 : vector<1x128xi1>, vector<1x128xi32>
    %143 = vector.broadcast %142 : vector<1x128xi32> to vector<8x128xi32>
    %144 = vector.broadcast %3 : vector<8x1xi32> to vector<8x128xi32>
    %145 = arith.cmpi slt, %143, %144 : vector<8x128xi32>
    %146 = arith.select %145, %137, %111 : vector<8x128xi1>, vector<8x128xf32>
    %147 = arith.select %145, %135, %112 : vector<8x128xi1>, vector<8x128xf32>
    %c8_i32_34 = arith.constant 8 : i32
    %148 = arith.muli %arg0, %c8_i32_34 : i32
    %c4_i32 = arith.constant 4 : i32
    %149 = arith.addi %148, %c4_i32 : i32
    %c7_i32_35 = arith.constant 7 : i32
    %150 = arith.subi %c7_i32_35, %149 : i32
    %c4 = arith.constant 4 : index
    %c0_36 = arith.constant 0 : index
    %c0_37 = arith.constant 0 : index
    %151 = vector.load %arg2[%c4, %c0_36, %c0_37] : memref<8x8x512xbf16, #tpu.memory_space<vmem>>, vector<1x8x512xbf16>
    %152 = vector.shape_cast %151 : vector<1x8x512xbf16> to vector<8x512xbf16>
    %153 = arith.extf %152 : vector<8x512xbf16> to vector<8x512xf32>
    %154 = arith.truncf %146 : vector<8x128xf32> to vector<8x128xbf16>
    %cst_38 = arith.constant dense<0.000000e+00> : vector<8x512xf32>
    %155 = tpu.matmul %154, %4, %cst_38 {dimension_numbers = #tpu.dot_dimension_numbers<[1], [0], [0], [1], [0, 0, 1, 1], [], []>} : vector<8x128xbf16>, vector<128x512xbf16>, vector<8x512xf32> -> vector<8x512xf32>
    %156 = arith.addf %153, %155 : vector<8x512xf32>
    %157 = vector.extract_strided_slice %156 {offsets = [0, 0], sizes = [8, 384], strides = [1, 1]} : vector<8x512xf32> to vector<8x384xf32>
    %158 = arith.negf %157 : vector<8x384xf32>
    %159 = math.exp %158 : vector<8x384xf32>
    %cst_39 = arith.constant 1.000000e+00 : f32
    %160 = vector.broadcast %cst_39 : f32 to vector<8x384xf32>
    %161 = arith.addf %160, %159 : vector<8x384xf32>
    %162 = arith.divf %160, %161 : vector<8x384xf32>
    %163 = vector.extract_strided_slice %156 {offsets = [0, 384], sizes = [8, 128], strides = [1, 1]} : vector<8x512xf32> to vector<8x128xf32>
    %164 = math.tanh %163 : vector<8x128xf32>
    %165 = vector.extract_strided_slice %162 {offsets = [0, 0], sizes = [8, 128], strides = [1, 1]} : vector<8x384xf32> to vector<8x128xf32>
    %166 = vector.extract_strided_slice %162 {offsets = [0, 128], sizes = [8, 128], strides = [1, 1]} : vector<8x384xf32> to vector<8x128xf32>
    %167 = vector.extract_strided_slice %162 {offsets = [0, 256], sizes = [8, 128], strides = [1, 1]} : vector<8x384xf32> to vector<8x128xf32>
    %168 = arith.mulf %166, %147 : vector<8x128xf32>
    %169 = arith.mulf %165, %164 : vector<8x128xf32>
    %170 = arith.addf %168, %169 : vector<8x128xf32>
    %171 = math.tanh %170 : vector<8x128xf32>
    %172 = arith.mulf %167, %171 : vector<8x128xf32>
    %c64_i32_40 = arith.constant 64 : i32
    %173 = vector.broadcast %c64_i32_40 : i32 to vector<1x128xi32>
    %174 = arith.cmpi slt, %5, %173 : vector<1x128xi32>
    %175 = vector.broadcast %149 : i32 to vector<1x128xi32>
    %176 = vector.broadcast %150 : i32 to vector<1x128xi32>
    %177 = arith.select %174, %175, %176 : vector<1x128xi1>, vector<1x128xi32>
    %178 = vector.broadcast %177 : vector<1x128xi32> to vector<8x128xi32>
    %179 = vector.broadcast %3 : vector<8x1xi32> to vector<8x128xi32>
    %180 = arith.cmpi slt, %178, %179 : vector<8x128xi32>
    %181 = arith.select %180, %172, %146 : vector<8x128xi1>, vector<8x128xf32>
    %182 = arith.select %180, %170, %147 : vector<8x128xi1>, vector<8x128xf32>
    %c8_i32_41 = arith.constant 8 : i32
    %183 = arith.muli %arg0, %c8_i32_41 : i32
    %c5_i32 = arith.constant 5 : i32
    %184 = arith.addi %183, %c5_i32 : i32
    %c7_i32_42 = arith.constant 7 : i32
    %185 = arith.subi %c7_i32_42, %184 : i32
    %c5 = arith.constant 5 : index
    %c0_43 = arith.constant 0 : index
    %c0_44 = arith.constant 0 : index
    %186 = vector.load %arg2[%c5, %c0_43, %c0_44] : memref<8x8x512xbf16, #tpu.memory_space<vmem>>, vector<1x8x512xbf16>
    %187 = vector.shape_cast %186 : vector<1x8x512xbf16> to vector<8x512xbf16>
    %188 = arith.extf %187 : vector<8x512xbf16> to vector<8x512xf32>
    %189 = arith.truncf %181 : vector<8x128xf32> to vector<8x128xbf16>
    %cst_45 = arith.constant dense<0.000000e+00> : vector<8x512xf32>
    %190 = tpu.matmul %189, %4, %cst_45 {dimension_numbers = #tpu.dot_dimension_numbers<[1], [0], [0], [1], [0, 0, 1, 1], [], []>} : vector<8x128xbf16>, vector<128x512xbf16>, vector<8x512xf32> -> vector<8x512xf32>
    %191 = arith.addf %188, %190 : vector<8x512xf32>
    %192 = vector.extract_strided_slice %191 {offsets = [0, 0], sizes = [8, 384], strides = [1, 1]} : vector<8x512xf32> to vector<8x384xf32>
    %193 = arith.negf %192 : vector<8x384xf32>
    %194 = math.exp %193 : vector<8x384xf32>
    %cst_46 = arith.constant 1.000000e+00 : f32
    %195 = vector.broadcast %cst_46 : f32 to vector<8x384xf32>
    %196 = arith.addf %195, %194 : vector<8x384xf32>
    %197 = arith.divf %195, %196 : vector<8x384xf32>
    %198 = vector.extract_strided_slice %191 {offsets = [0, 384], sizes = [8, 128], strides = [1, 1]} : vector<8x512xf32> to vector<8x128xf32>
    %199 = math.tanh %198 : vector<8x128xf32>
    %200 = vector.extract_strided_slice %197 {offsets = [0, 0], sizes = [8, 128], strides = [1, 1]} : vector<8x384xf32> to vector<8x128xf32>
    %201 = vector.extract_strided_slice %197 {offsets = [0, 128], sizes = [8, 128], strides = [1, 1]} : vector<8x384xf32> to vector<8x128xf32>
    %202 = vector.extract_strided_slice %197 {offsets = [0, 256], sizes = [8, 128], strides = [1, 1]} : vector<8x384xf32> to vector<8x128xf32>
    %203 = arith.mulf %201, %182 : vector<8x128xf32>
    %204 = arith.mulf %200, %199 : vector<8x128xf32>
    %205 = arith.addf %203, %204 : vector<8x128xf32>
    %206 = math.tanh %205 : vector<8x128xf32>
    %207 = arith.mulf %202, %206 : vector<8x128xf32>
    %c64_i32_47 = arith.constant 64 : i32
    %208 = vector.broadcast %c64_i32_47 : i32 to vector<1x128xi32>
    %209 = arith.cmpi slt, %5, %208 : vector<1x128xi32>
    %210 = vector.broadcast %184 : i32 to vector<1x128xi32>
    %211 = vector.broadcast %185 : i32 to vector<1x128xi32>
    %212 = arith.select %209, %210, %211 : vector<1x128xi1>, vector<1x128xi32>
    %213 = vector.broadcast %212 : vector<1x128xi32> to vector<8x128xi32>
    %214 = vector.broadcast %3 : vector<8x1xi32> to vector<8x128xi32>
    %215 = arith.cmpi slt, %213, %214 : vector<8x128xi32>
    %216 = arith.select %215, %207, %181 : vector<8x128xi1>, vector<8x128xf32>
    %217 = arith.select %215, %205, %182 : vector<8x128xi1>, vector<8x128xf32>
    %c8_i32_48 = arith.constant 8 : i32
    %218 = arith.muli %arg0, %c8_i32_48 : i32
    %c6_i32 = arith.constant 6 : i32
    %219 = arith.addi %218, %c6_i32 : i32
    %c7_i32_49 = arith.constant 7 : i32
    %220 = arith.subi %c7_i32_49, %219 : i32
    %c6 = arith.constant 6 : index
    %c0_50 = arith.constant 0 : index
    %c0_51 = arith.constant 0 : index
    %221 = vector.load %arg2[%c6, %c0_50, %c0_51] : memref<8x8x512xbf16, #tpu.memory_space<vmem>>, vector<1x8x512xbf16>
    %222 = vector.shape_cast %221 : vector<1x8x512xbf16> to vector<8x512xbf16>
    %223 = arith.extf %222 : vector<8x512xbf16> to vector<8x512xf32>
    %224 = arith.truncf %216 : vector<8x128xf32> to vector<8x128xbf16>
    %cst_52 = arith.constant dense<0.000000e+00> : vector<8x512xf32>
    %225 = tpu.matmul %224, %4, %cst_52 {dimension_numbers = #tpu.dot_dimension_numbers<[1], [0], [0], [1], [0, 0, 1, 1], [], []>} : vector<8x128xbf16>, vector<128x512xbf16>, vector<8x512xf32> -> vector<8x512xf32>
    %226 = arith.addf %223, %225 : vector<8x512xf32>
    %227 = vector.extract_strided_slice %226 {offsets = [0, 0], sizes = [8, 384], strides = [1, 1]} : vector<8x512xf32> to vector<8x384xf32>
    %228 = arith.negf %227 : vector<8x384xf32>
    %229 = math.exp %228 : vector<8x384xf32>
    %cst_53 = arith.constant 1.000000e+00 : f32
    %230 = vector.broadcast %cst_53 : f32 to vector<8x384xf32>
    %231 = arith.addf %230, %229 : vector<8x384xf32>
    %232 = arith.divf %230, %231 : vector<8x384xf32>
    %233 = vector.extract_strided_slice %226 {offsets = [0, 384], sizes = [8, 128], strides = [1, 1]} : vector<8x512xf32> to vector<8x128xf32>
    %234 = math.tanh %233 : vector<8x128xf32>
    %235 = vector.extract_strided_slice %232 {offsets = [0, 0], sizes = [8, 128], strides = [1, 1]} : vector<8x384xf32> to vector<8x128xf32>
    %236 = vector.extract_strided_slice %232 {offsets = [0, 128], sizes = [8, 128], strides = [1, 1]} : vector<8x384xf32> to vector<8x128xf32>
    %237 = vector.extract_strided_slice %232 {offsets = [0, 256], sizes = [8, 128], strides = [1, 1]} : vector<8x384xf32> to vector<8x128xf32>
    %238 = arith.mulf %236, %217 : vector<8x128xf32>
    %239 = arith.mulf %235, %234 : vector<8x128xf32>
    %240 = arith.addf %238, %239 : vector<8x128xf32>
    %241 = math.tanh %240 : vector<8x128xf32>
    %242 = arith.mulf %237, %241 : vector<8x128xf32>
    %c64_i32_54 = arith.constant 64 : i32
    %243 = vector.broadcast %c64_i32_54 : i32 to vector<1x128xi32>
    %244 = arith.cmpi slt, %5, %243 : vector<1x128xi32>
    %245 = vector.broadcast %219 : i32 to vector<1x128xi32>
    %246 = vector.broadcast %220 : i32 to vector<1x128xi32>
    %247 = arith.select %244, %245, %246 : vector<1x128xi1>, vector<1x128xi32>
    %248 = vector.broadcast %247 : vector<1x128xi32> to vector<8x128xi32>
    %249 = vector.broadcast %3 : vector<8x1xi32> to vector<8x128xi32>
    %250 = arith.cmpi slt, %248, %249 : vector<8x128xi32>
    %251 = arith.select %250, %242, %216 : vector<8x128xi1>, vector<8x128xf32>
    %252 = arith.select %250, %240, %217 : vector<8x128xi1>, vector<8x128xf32>
    %c8_i32_55 = arith.constant 8 : i32
    %253 = arith.muli %arg0, %c8_i32_55 : i32
    %c7_i32_56 = arith.constant 7 : i32
    %254 = arith.addi %253, %c7_i32_56 : i32
    %c7_i32_57 = arith.constant 7 : i32
    %255 = arith.subi %c7_i32_57, %254 : i32
    %c7 = arith.constant 7 : index
    %c0_58 = arith.constant 0 : index
    %c0_59 = arith.constant 0 : index
    %256 = vector.load %arg2[%c7, %c0_58, %c0_59] : memref<8x8x512xbf16, #tpu.memory_space<vmem>>, vector<1x8x512xbf16>
    %257 = vector.shape_cast %256 : vector<1x8x512xbf16> to vector<8x512xbf16>
    %258 = arith.extf %257 : vector<8x512xbf16> to vector<8x512xf32>
    %259 = arith.truncf %251 : vector<8x128xf32> to vector<8x128xbf16>
    %cst_60 = arith.constant dense<0.000000e+00> : vector<8x512xf32>
    %260 = tpu.matmul %259, %4, %cst_60 {dimension_numbers = #tpu.dot_dimension_numbers<[1], [0], [0], [1], [0, 0, 1, 1], [], []>} : vector<8x128xbf16>, vector<128x512xbf16>, vector<8x512xf32> -> vector<8x512xf32>
    %261 = arith.addf %258, %260 : vector<8x512xf32>
    %262 = vector.extract_strided_slice %261 {offsets = [0, 0], sizes = [8, 384], strides = [1, 1]} : vector<8x512xf32> to vector<8x384xf32>
    %263 = arith.negf %262 : vector<8x384xf32>
    %264 = math.exp %263 : vector<8x384xf32>
    %cst_61 = arith.constant 1.000000e+00 : f32
    %265 = vector.broadcast %cst_61 : f32 to vector<8x384xf32>
    %266 = arith.addf %265, %264 : vector<8x384xf32>
    %267 = arith.divf %265, %266 : vector<8x384xf32>
    %268 = vector.extract_strided_slice %261 {offsets = [0, 384], sizes = [8, 128], strides = [1, 1]} : vector<8x512xf32> to vector<8x128xf32>
    %269 = math.tanh %268 : vector<8x128xf32>
    %270 = vector.extract_strided_slice %267 {offsets = [0, 0], sizes = [8, 128], strides = [1, 1]} : vector<8x384xf32> to vector<8x128xf32>
    %271 = vector.extract_strided_slice %267 {offsets = [0, 128], sizes = [8, 128], strides = [1, 1]} : vector<8x384xf32> to vector<8x128xf32>
    %272 = vector.extract_strided_slice %267 {offsets = [0, 256], sizes = [8, 128], strides = [1, 1]} : vector<8x384xf32> to vector<8x128xf32>
    %273 = arith.mulf %271, %252 : vector<8x128xf32>
    %274 = arith.mulf %270, %269 : vector<8x128xf32>
    %275 = arith.addf %273, %274 : vector<8x128xf32>
    %276 = math.tanh %275 : vector<8x128xf32>
    %277 = arith.mulf %272, %276 : vector<8x128xf32>
    %c64_i32_62 = arith.constant 64 : i32
    %278 = vector.broadcast %c64_i32_62 : i32 to vector<1x128xi32>
    %279 = arith.cmpi slt, %5, %278 : vector<1x128xi32>
    %280 = vector.broadcast %254 : i32 to vector<1x128xi32>
    %281 = vector.broadcast %255 : i32 to vector<1x128xi32>
    %282 = arith.select %279, %280, %281 : vector<1x128xi1>, vector<1x128xi32>
    %283 = vector.broadcast %282 : vector<1x128xi32> to vector<8x128xi32>
    %284 = vector.broadcast %3 : vector<8x1xi32> to vector<8x128xi32>
    %285 = arith.cmpi slt, %283, %284 : vector<8x128xi32>
    %286 = arith.select %285, %277, %251 : vector<8x128xi1>, vector<8x128xf32>
    %287 = arith.select %285, %275, %252 : vector<8x128xi1>, vector<8x128xf32>
    %c0_63 = arith.constant 0 : index
    %c0_64 = arith.constant 0 : index
    %288 = vector.load %arg7[%c0_63, %c0_64] : memref<8x128xf32, #tpu.memory_space<vmem>>, vector<8x128xf32>
    tpu.vector_store %arg7[%c0_63, %c0_64], %286 {strides = array<i32>} : memref<8x128xf32, #tpu.memory_space<vmem>>, vector<8x128xf32>,
    %c0_65 = arith.constant 0 : index
    %c0_66 = arith.constant 0 : index
    %289 = vector.load %arg8[%c0_65, %c0_66] : memref<8x128xf32, #tpu.memory_space<vmem>>, vector<8x128xf32>
    tpu.vector_store %arg8[%c0_65, %c0_66], %287 {strides = array<i32>} : memref<8x128xf32, #tpu.memory_space<vmem>>, vector<8x128xf32>,
    %c0_i32_67 = arith.constant 0 : i32
    %290 = arith.cmpi eq, %arg0, %c0_i32_67 : i32
    %291 = arith.extui %290 : i1 to i32
    %c0_i32_68 = arith.constant 0 : i32
    %292 = arith.cmpi ne, %291, %c0_i32_68 : i32
    scf.if %292 {
      %c0_69 = arith.constant 0 : index
      %c0_70 = arith.constant 0 : index
      %293 = vector.load %arg4[%c0_69, %c0_70] : memref<128x1xf32, #tpu.memory_space<vmem>>, vector<128x1xf32>
      %cst_71 = arith.constant dense<0.000000e+00> : vector<8x1xf32>
      %294 = tpu.matmul %286, %293, %cst_71 {dimension_numbers = #tpu.dot_dimension_numbers<[1], [0], [0], [1], [0, 0, 1, 1], [], []>} : vector<8x128xf32>, vector<128x1xf32>, vector<8x1xf32> -> vector<8x1xf32>
      %c0_72 = arith.constant 0 : index
      %c0_73 = arith.constant 0 : index
      %295 = vector.load %arg5[%c0_72, %c0_73] : memref<1x1xf32, #tpu.memory_space<vmem>>, vector<1x1xf32>
      %296 = vector.broadcast %295 : vector<1x1xf32> to vector<8x1xf32>
      %297 = arith.addf %294, %296 : vector<8x1xf32>
      %298 = arith.negf %297 : vector<8x1xf32>
      %299 = math.exp %298 : vector<8x1xf32>
      %cst_74 = arith.constant 1.000000e+00 : f32
      %300 = vector.broadcast %cst_74 : f32 to vector<8x1xf32>
      %301 = arith.addf %300, %299 : vector<8x1xf32>
      %302 = arith.divf %300, %301 : vector<8x1xf32>
      %c0_75 = arith.constant 0 : index
      %c0_76 = arith.constant 0 : index
      %303 = vector.load %arg6[%c0_75, %c0_76] : memref<8x1xf32, #tpu.memory_space<vmem>>, vector<8x1xf32>
      tpu.vector_store %arg6[%c0_75, %c0_76], %302 {strides = array<i32>} : memref<8x1xf32, #tpu.memory_space<vmem>>, vector<8x1xf32>,
    } else {
    }
    return
  }
  func.func @transform_0(%arg0: i32) -> (i32, i32) {
    %c0_i32 = arith.constant 0 : i32
    %c0_i32_0 = arith.constant 0 : i32
    %c0_i32_1 = arith.constant 0 : i32
    return %c0_i32, %c0_i32_0 : i32, i32
  }
  func.func @transform_1(%arg0: i32) -> (i32, i32, i32) {
    %c0_i32 = arith.constant 0 : i32
    %c0_i32_0 = arith.constant 0 : i32
    %c0_i32_1 = arith.constant 0 : i32
    return %arg0, %c0_i32, %c0_i32_0 : i32, i32, i32
  }
  func.func @transform_2(%arg0: i32) -> (i32, i32) {
    %c0_i32 = arith.constant 0 : i32
    %c0_i32_0 = arith.constant 0 : i32
    %c0_i32_1 = arith.constant 0 : i32
    return %c0_i32, %c0_i32_0 : i32, i32
  }
  func.func @transform_3(%arg0: i32) -> (i32, i32) {
    %c0_i32 = arith.constant 0 : i32
    %c0_i32_0 = arith.constant 0 : i32
    %c0_i32_1 = arith.constant 0 : i32
    return %c0_i32, %c0_i32_0 : i32, i32
  }
  func.func @transform_4(%arg0: i32) -> (i32, i32) {
    %c0_i32 = arith.constant 0 : i32
    %c0_i32_0 = arith.constant 0 : i32
    %c0_i32_1 = arith.constant 0 : i32
    return %c0_i32, %c0_i32_0 : i32, i32
  }
  func.func @transform_5(%arg0: i32) -> (i32, i32) {
    %c0_i32 = arith.constant 0 : i32
    %c0_i32_0 = arith.constant 0 : i32
    %c0_i32_1 = arith.constant 0 : i32
    return %c0_i32, %c0_i32_0 : i32, i32
  }
}

</mosaic_0001>

<bundles_post_ra>
// kernel: lstm_forward.3
= control target key start
LH: loop header
LB: loop body
LE: loop exit
PB: predicated region body
PF: predicated region fallthrough
CT: control target
= control target key end

     0   :  { %v1701_v1 = vmov 0   ;;  %v1702_v34 = vmov 0.0|0.0   ;;  %v62_v35 = vlaneseq  ;;  %v1703_v38 = vmov 6   ;;  %s2557_s2 = inlined_call_operand.vmem [shape: bf16[128,512], index: 2, kind: input, shape index: {}]   ;;  %s2558_s0 = inlined_call_operand.vmem [shape: s32[8,1], index: 0, kind: input, shape index: {}]   ;;  %s2559_s1 = inlined_call_operand.vmem [shape: bf16[8,8,512], index: 1, kind: input, shape index: {}]   ;;  %s2560_s3 = inlined_call_operand.vmem [shape: f32[128,1], index: 3, kind: input, shape index: {}]   ;;  %s2561_s4 = inlined_call_operand.<no memory space> [shape: f32[1,1], index: 4, kind: input, shape index: {}]   ;;  %s2562_s5 = inlined_call_operand.vmem [shape: f32[8,1], index: 5, kind: output, shape index: {}]  }
   0x1   :  { %v1745_v0 = vld [vmem:[%s2557_s2 + $0xe4] ss:$16 sps:$4 sm:$0xff]   ;;  %267 = vmatprep.mubr.bf16.mxu0 %v1701_v1  ;;  %308 = vmatprep.mubr.bf16.mxu1 %v1701_v1  ;;  %v1752_v2 = vld [vmem:[%s2557_s2 + $0xe0] ss:$16 sps:$4 sm:$0xff]   ;;  %v1776_v6 = vld [vmem:[%s2557_s2 + $0xec] ss:$16 sps:$4 sm:$0xff]  }
   0x2   :  { %1488 = vset.pattern.permute.xlu0 %v1701_v1  ;;  %235 = vmatprep.subr.bf16.mxu0 %v1745_v0  ;;  %v1759_v3 = vld [vmem:[%s2557_s2 + $0xc4] ss:$16 sps:$4 sm:$0xff]   ;;  %v1765_v4 = vld [vmem:[%s2557_s2 + $0xc0] ss:$16 sps:$4 sm:$0xff]   ;;  %v1781_v7 = vld [vmem:[%s2557_s2 + $0xe8] ss:$16 sps:$4 sm:$0xff]  }
   0x3   :  { %236 = vmatpush1.bf16.msra.mxu0 %v1752_v2  ;;  %v1771_v5 = vld [vmem:[%s2557_s2 + $0xa4] ss:$16 sps:$4 sm:$0xff]   ;;  %v1787_v8 = vld [vmem:[%s2557_s2 + $0xa0] ss:$16 sps:$4 sm:$0xff]   ;;  %276 = vmatprep.subr.bf16.mxu1 %v1776_v6  ;;  %v1800_v10 = vld [vmem:[%s2557_s2 + $0xcc] ss:$16 sps:$4 sm:$0xff]  }
   0x4   :  { %237 = vmatprep.subr.bf16.mxu0 %v1759_v3  ;;  %v1794_v9 = vld [vmem:[%s2557_s2 + $0x84] ss:$16 sps:$4 sm:$0xff]   ;;  %277 = vmatpush1.bf16.msra.mxu1 %v1781_v7  ;;  %v1805_v11 = vld [vmem:[%s2557_s2 + $0xc8] ss:$16 sps:$4 sm:$0xff]   ;;  %v1812_v12 = vld [vmem:[%s2557_s2 + $0x80] ss:$16 sps:$4 sm:$0xff]  }
   0x5   :  { %278 = vmatprep.subr.bf16.mxu1 %v1800_v10  ;;  %v1817_v13 = vld [vmem:[%s2557_s2 + $0x64] ss:$16 sps:$4 sm:$0xff]   ;;  %v1822_v14 = vld [vmem:[%s2557_s2 + $0xac] ss:$16 sps:$4 sm:$0xff]   ;;  %v1829_v15 = vld [vmem:[%s2557_s2 + $0xa8] ss:$16 sps:$4 sm:$0xff]  }
   0x6   :  { %v1835_v16 = vld [vmem:[%s2557_s2 + $0x8c] ss:$16 sps:$4 sm:$0xff]   ;;  %v1841_v17 = vld [vmem:[%s2557_s2 + $0x60] ss:$16 sps:$4 sm:$0xff]   ;;  %v1847_v18 = vld [vmem:[%s2557_s2 + $0x44] ss:$16 sps:$4 sm:$0xff]  }
   0x7   :  { %238 = vmatpush1.bf16.msra.mxu0 %v1765_v4  ;;  %v1853_v19 = vld [vmem:[%s2557_s2 + $0x88] ss:$16 sps:$4 sm:$0xff]   ;;  %v1859_v20 = vld [vmem:[%s2557_s2 + $0x6c] ss:$16 sps:$4 sm:$0xff]   ;;  %v1865_v21 = vld [vmem:[%s2557_s2 + $0x40] ss:$16 sps:$4 sm:$0xff]  }
   0x8   :  { %239 = vmatprep.subr.bf16.mxu0 %v1771_v5  ;;  %279 = vmatpush1.bf16.msra.mxu1 %v1805_v11  ;;  %v1870_v22 = vld [vmem:[%s2557_s2 + $0x24] ss:$16 sps:$4 sm:$0xff]   ;;  %v1877_v23 = vld [vmem:[%s2557_s2 + $0x68] ss:$16 sps:$4 sm:$0xff]   ;;  %v1883_v24 = vld [vmem:[%s2557_s2 + $0x4c] ss:$16 sps:$4 sm:$0xff]  }
   0x9   :  { %280 = vmatprep.subr.bf16.mxu1 %v1822_v14  ;;  %v29_v25 = vld [vmem:[%s2558_s0] sm:$0xff]  ;;  %v1904_v28 = vld [vmem:[%s2557_s2 + $0x48] ss:$16 sps:$4 sm:$0xff]   ;;  %v1910_v29 = vld [vmem:[%s2557_s2 + $0x2c] ss:$16 sps:$4 sm:$0xff]   ;;  %v1976_v36 = vand.u32 127, %v62_v35 }
   0xa   :  { %350 = vperm.xlu0 %1488, %v29_v25   ;;  %v1892_v26 = vld [vmem:[%s2557_s2 + $0x20] ss:$16 sps:$4 sm:$0xff]   ;;  %v1898_v27 = vld [vmem:[%s2557_s2 + $0x4] ss:$16 sps:$4 sm:$0xff]   ;;  %v1923_v31 = vld [vmem:[%s2557_s2 + $0x28] ss:$16 sps:$4 sm:$0xff]  }
   0xb   :  { %240 = vmatpush1.bf16.msra.mxu0 %v1787_v8  ;;  %v1916_v30 = vld [vmem:[%s2557_s2] ss:$16 sps:$4 sm:$0xff]   ;;  %v1929_v32 = vld [vmem:[%s2557_s2 + $0xc] ss:$16 sps:$4 sm:$0xff]   ;;  %v1936_v33 = vld [vmem:[%s2557_s2 + $0x8] ss:$16 sps:$4 sm:$0xff]  }
   0xc   :  { %241 = vmatprep.subr.bf16.mxu0 %v1794_v9  ;;  %281 = vmatpush1.bf16.msra.mxu1 %v1829_v15  ;;  %vm345_vm0 = vcmp.lt.s32.totalorder %v1976_v36, 64  ;;  %v1704_v40 = vmov 5   ;;  %v1705_v42 = vmov 4   ;;  %v1706_v44 = vmov 3   ;;  %v68_v51 = vld [vmem:[%s2559_s1] sm:$0xff]  ;;  %v69_v60 = vld [vmem:[%s2559_s1 + $0x8] sm:$0xff] }
   0xd   :  { %282 = vmatprep.subr.bf16.mxu1 %v1835_v16  ;;  %v1983_v39 = vsel %vm345_vm0, 1, %v1703_v38  ;;  %v1987_v41 = vsel %vm345_vm0, 2, %v1704_v40  ;;  %v1991_v43 = vsel %vm345_vm0, 3, %v1705_v42  ;;  %v1995_v45 = vsel %vm345_vm0, 4, %v1706_v44  ;;  %v1382_v36 = vld [vmem:[%s2559_s1 + $0x10] sm:$0xff] }
   0xe   :  { %v2008_v46 = vsel %vm345_vm0, 7, %v1701_v1  ;;  %v1707_v47 = vmov 2   ;;  %v1708_v49 = vmov 1   ;;  %v70_v52 = vunpack.c.l.bf16 %v68_v51 }
   0xf   :  { %242 = vmatpush1.bf16.msra.mxu0 %v1812_v12  ;;  %v2012_v48 = vsel %vm345_vm0, 5, %v1707_v47  ;;  %v2016_v50 = vsel %vm345_vm0, 6, %v1708_v49  ;;  %v71_v53 = vunpack.c.h.bf16 %v68_v51  ;;  %v72_v25 = vunpack.c.l.bf16 %v69_v60 }
  0x10   :  { %243 = vmatprep.subr.bf16.mxu0 %v1817_v13  ;;  %283 = vmatpush1.bf16.msra.mxu1 %v1853_v19  ;;  %v73_v42 = vunpack.c.h.bf16 %v69_v60  ;;  %v1709_v60 = vmov 7   ;;  %vm1711_vm10 = vmmov 0   ;;  %vm1341_vm11 = vcmask 7168  }
  0x11   :  { %284 = vmatprep.subr.bf16.mxu1 %v1859_v20 }
  0x13   :  { %244 = vmatpush1.bf16.msra.mxu0 %v1841_v17 }
  0x14   :  { %245 = vmatprep.subr.bf16.mxu0 %v1847_v18  ;;  %285 = vmatpush1.bf16.msra.mxu1 %v1877_v23 }
  0x15   :  { %286 = vmatprep.subr.bf16.mxu1 %v1883_v24 }
  0x17   :  { %246 = vmatpush1.bf16.msra.mxu0 %v1865_v21 }
  0x18   :  { %247 = vmatprep.subr.bf16.mxu0 %v1870_v22  ;;  %287 = vmatpush1.bf16.msra.mxu1 %v1904_v28 }
  0x19   :  { %288 = vmatprep.subr.bf16.mxu1 %v1910_v29 }
  0x1b   :  { %248 = vmatpush1.bf16.msra.mxu0 %v1892_v26 }
  0x1c   :  { %249 = vmatprep.subr.bf16.mxu0 %v1898_v27  ;;  %289 = vmatpush1.bf16.msra.mxu1 %v1923_v31 }
  0x1d   :  { %290 = vmatprep.subr.bf16.mxu1 %v1929_v32 }
  0x1f   :  { %250 = vmatpush1.bf16.msra.mxu0 %v1916_v30 }
  0x20   :  { %365 = vmatprep.subr.bf16.mxu0 %v1745_v0  ;;  %291 = vmatpush1.bf16.msra.mxu1 %v1936_v33 }
  0x21   :  { %406 = vmatprep.subr.bf16.mxu1 %v1776_v6 }
  0x22   :  { %268 = vmatmul.mubr.bf16.vlgmr.msra.gmra.mxu0 %v1702_v34 }
  0x23   :  { %366 = vmatpush1.bf16.msra.mxu0 %v1752_v2  ;;  %397 = vmatprep.mubr.bf16.mxu0 %v1701_v1 }
  0x24   :  { %367 = vmatprep.subr.bf16.mxu0 %v1759_v3  ;;  %309 = vmatmul.mubr.bf16.vlgmr.msra.gmra.mxu1 %v1702_v34 }
  0x25   :  { %407 = vmatpush1.bf16.msra.mxu1 %v1781_v7  ;;  %438 = vmatprep.mubr.bf16.mxu1 %v1701_v1 }
  0x26   :  { %408 = vmatprep.subr.bf16.mxu1 %v1800_v10 }
  0x27   :  { %368 = vmatpush1.bf16.msra.mxu0 %v1765_v4 }
  0x28   :  { %369 = vmatprep.subr.bf16.mxu0 %v1771_v5 }
  0x29   :  { %409 = vmatpush1.bf16.msra.mxu1 %v1805_v11 }
  0x2a   :  { %410 = vmatprep.subr.bf16.mxu1 %v1822_v14 }
  0x2b   :  { %370 = vmatpush1.bf16.msra.mxu0 %v1787_v8 }
  0x2c   :  { %371 = vmatprep.subr.bf16.mxu0 %v1794_v9 }
  0x2d   :  { %411 = vmatpush1.bf16.msra.mxu1 %v1829_v15 }
  0x2e   :  { %412 = vmatprep.subr.bf16.mxu1 %v1835_v16 }
  0x2f   :  { %372 = vmatpush1.bf16.msra.mxu0 %v1812_v12 }
  0x30   :  { %373 = vmatprep.subr.bf16.mxu0 %v1817_v13 }
  0x31   :  { %413 = vmatpush1.bf16.msra.mxu1 %v1853_v19 }
  0x32   :  { %414 = vmatprep.subr.bf16.mxu1 %v1859_v20 }
  0x33   :  { %374 = vmatpush1.bf16.msra.mxu0 %v1841_v17 }
  0x34   :  { %375 = vmatprep.subr.bf16.mxu0 %v1847_v18 }
  0x35   :  { %415 = vmatpush1.bf16.msra.mxu1 %v1877_v23 }
  0x36   :  { %416 = vmatprep.subr.bf16.mxu1 %v1883_v24 }
  0x37   :  { %376 = vmatpush1.bf16.msra.mxu0 %v1865_v21 }
  0x38   :  { %377 = vmatprep.subr.bf16.mxu0 %v1870_v22 }
  0x39   :  { %417 = vmatpush1.bf16.msra.mxu1 %v1904_v28 }
  0x3a   :  { %418 = vmatprep.subr.bf16.mxu1 %v1910_v29 }
  0x3b   :  { %378 = vmatpush1.bf16.msra.mxu0 %v1892_v26 }
  0x3c   :  { %379 = vmatprep.subr.bf16.mxu0 %v1898_v27 }
  0x3d   :  { %419 = vmatpush1.bf16.msra.mxu1 %v1923_v31 }
  0x3e   :  { %420 = vmatprep.subr.bf16.mxu1 %v1929_v32 }
  0x3f   :  { %380 = vmatpush1.bf16.msra.mxu0 %v1916_v30 }
  0x40   :  { %491 = vmatprep.subr.bf16.mxu0 %v1745_v0 }
  0x41   :  { %421 = vmatpush1.bf16.msra.mxu1 %v1936_v33 }
  0x42   :  { %532 = vmatprep.subr.bf16.mxu1 %v1776_v6 }
  0x85   :  { %v1979_v37 = vpop.permute.xlu0 %350 }
  0x86   :  { %vm478_vm1 = vcmp.lt.s32.totalorder %v1983_v39, %v1979_v37  ;;  %vm604_vm2 = vcmp.lt.s32.totalorder %v1987_v41, %v1979_v37  ;;  %vm730_vm3 = vcmp.lt.s32.totalorder %v1991_v43, %v1979_v37  ;;  %vm856_vm4 = vcmp.lt.s32.totalorder %v1995_v45, %v1979_v37  ;;  %v1387_v39 = vld [vmem:[%s2559_s1 + $0x20] sm:$0xff]  ;;  %v1392_v41 = vld [vmem:[%s2559_s1 + $0x30] sm:$0xff] }
  0x87   :  { %vm1234_vm5 = vcmp.lt.s32.totalorder %v2008_v46, %v1979_v37  ;;  %vm982_vm6 = vcmp.lt.s32.totalorder %v2012_v48, %v1979_v37  ;;  %vm1108_vm7 = vcmp.lt.s32.totalorder %v2016_v50, %v1979_v37  ;;  %v2287_v45 = vld [vmem:[%s2557_s2 + $0xc4] ss:$16 sps:$4 sm:$0xff]   ;;  %v1688_v48 = vld [vmem:[%s2557_s2 + $0x6c] ss:$16 sps:$4 sm:$0xff]  }
  0x88   :  { %v1255_v50 = vld [vmem:[%s2560_s3 + $0x68] sm:$0xff] }
  0xe2   :  { %v269_v54 = vpop.f32.mrf.mxu0 }
  0xe3   :  { %v317_v55 = vadd.f32 %v269_v54, %v70_v52 }
  0xe4   :  { %v271_v56 = vpop.f32.mrf.mxu0  ;;  %v310_v62 = vpop.f32.mrf.mxu1 }
  0xe5   :  { %v1379_v57 = vmul.f32 -1.442695, %v317_v55  ;;  %v318_v58 = vadd.f32 %v271_v56, %v71_v53  ;;  %v319_v38 = vadd.f32 %v310_v62, %v72_v25 }
  0xe6   :  { %v273_v59 = vpop.f32.mrf.mxu0  ;;  %v312_v34 = vpop.f32.mrf.mxu1 }
  0xe7   :  { %1537 = vpow2.f32 %v1379_v57  ;;  %v1380_v61 = vmul.f32 -1.442695, %v318_v58  ;;  %v1381_v44 = vmul.f32 -1.442695, %v319_v38  ;;  %v320_v47 = vadd.f32 %v312_v34, %v73_v42 }
  0xe8   :  { %v274_v63 = vpop.f32.mrf.mxu0  ;;  %v314_v35 = vpop.f32.mrf.mxu1  ;;  %v361_v42 = vunpack.c.h.bf16 %v1382_v36 }
  0xe9   :  { %1539 = vpow2.f32 %v1380_v61  ;;  %v2035_v63 = vsel %vm345_vm0, 0, %v1709_v60 }
  0xea   :  { %v315_v40 = vpop.f32.mrf.mxu1  ;;  %1541 = vpow2.f32 %v1381_v44  ;;  %vm352_vm8 = vcmp.lt.s32.totalorder %v2035_v63, %v1979_v37  ;;  %v486_v63 = vunpack.c.l.bf16 %v1387_v39 }
  0xeb   :  { %1543 = vtanh.f32 %v320_v47  ;;  %vm1419_vm9 = vmpackc.low %vm352_vm8, %vm352_vm8  ;;  %v360_v40 = vunpack.c.l.bf16 %v1382_v36 }
  0xf4   :  { %v1538_v49 = vpop.eup %1537 }
  0xf5   :  { %v330_v51 = vadd.f32 1.0, %v1538_v49 }
  0xf6   :  { %v1540_v52 = vpop.eup %1539 }
  0xf7   :  { %1545 = vrcp.f32 %v330_v51  ;;  %v331_v53 = vadd.f32 1.0, %v1540_v52  ;;  %v1542_v54 = vpop.eup %1541 }
  0xf8   :  { %v1544_v55 = vpop.eup %1543  ;;  %v332_v58 = vadd.f32 1.0, %v1542_v54 }
  0xf9   :  { %1547 = vrcp.f32 %v331_v53 }
  0xfa   :  { %1549 = vrcp.f32 %v332_v58 }
 0x104   :  { %v1546_v56 = vpop.eup %1545 }
 0x105   :  { %v341_v61 = vmul.f32 %v1546_v56, %v1544_v55 }
 0x106   :  { %v1548_v57 = vpop.eup %1547 }
 0x107   :  { %v340_v59 = vmul.f32 0.0, %v1548_v57  ;;  %v1550_v25 = vpop.eup %1549  ;;  %v1383_v57 = vld [vmem:[%s2559_s1 + $0x18] sm:$0xff] }
 0x108   :  { %v362_v60 = vunpack.c.l.bf16 %v1383_v57 }
 0x109   :  { %v2030_v62 = vadd.f32 %v341_v61, %v340_v59 }
 0x10b   :  { %1551 = vtanh.f32 %v2030_v62 }
 0x118   :  { %v1552_v34 = vpop.eup %1551 }
 0x119   :  { %v2037_v35 = vmul.f32 %v1552_v34, %v1550_v25  ;;  %v363_v34 = vunpack.c.h.bf16 %v1383_v57 }
 0x11b   :  { %v1420_v38 = vpack.c.bf16 %v2037_v35, %v2037_v35 }
 0x11d   :  { %1421 = vmatmul.mubr.msk.bf16.vlgmr.msra.gmra.mxu0 %vm1419_vm9, %v1420_v38  ;;  %1424 = vmatmul.mubr.msk.bf16.vlgmr.msra.gmra.mxu1 %vm1419_vm9, %v1420_v38 }
 0x11e   :  { %492 = vmatpush1.bf16.msra.mxu0 %v1752_v2  ;;  %533 = vmatpush1.bf16.msra.mxu1 %v1781_v7 }
 0x11f   :  { %493 = vmatprep.subr.bf16.mxu0 %v1759_v3  ;;  %534 = vmatprep.subr.bf16.mxu1 %v1800_v10 }
 0x120   :  { %523 = vmatprep.mubr.bf16.mxu0 %v1701_v1  ;;  %564 = vmatprep.mubr.bf16.mxu1 %v1701_v1 }
 0x122   :  { %494 = vmatpush1.bf16.msra.mxu0 %v1765_v4  ;;  %535 = vmatpush1.bf16.msra.mxu1 %v1805_v11 }
 0x123   :  { %495 = vmatprep.subr.bf16.mxu0 %v1771_v5  ;;  %536 = vmatprep.subr.bf16.mxu1 %v1822_v14 }
 0x126   :  { %496 = vmatpush1.bf16.msra.mxu0 %v1787_v8  ;;  %537 = vmatpush1.bf16.msra.mxu1 %v1829_v15 }
 0x127   :  { %497 = vmatprep.subr.bf16.mxu0 %v1794_v9  ;;  %538 = vmatprep.subr.bf16.mxu1 %v1835_v16 }
 0x12a   :  { %498 = vmatpush1.bf16.msra.mxu0 %v1812_v12  ;;  %539 = vmatpush1.bf16.msra.mxu1 %v1853_v19 }
 0x12b   :  { %499 = vmatprep.subr.bf16.mxu0 %v1817_v13  ;;  %540 = vmatprep.subr.bf16.mxu1 %v1859_v20 }
 0x12e   :  { %500 = vmatpush1.bf16.msra.mxu0 %v1841_v17  ;;  %541 = vmatpush1.bf16.msra.mxu1 %v1877_v23 }
 0x12f   :  { %501 = vmatprep.subr.bf16.mxu0 %v1847_v18  ;;  %542 = vmatprep.subr.bf16.mxu1 %v1883_v24 }
 0x132   :  { %502 = vmatpush1.bf16.msra.mxu0 %v1865_v21  ;;  %543 = vmatpush1.bf16.msra.mxu1 %v1904_v28 }
 0x133   :  { %503 = vmatprep.subr.bf16.mxu0 %v1870_v22  ;;  %544 = vmatprep.subr.bf16.mxu1 %v1910_v29 }
 0x136   :  { %504 = vmatpush1.bf16.msra.mxu0 %v1892_v26  ;;  %545 = vmatpush1.bf16.msra.mxu1 %v1923_v31 }
 0x137   :  { %505 = vmatprep.subr.bf16.mxu0 %v1898_v27  ;;  %546 = vmatprep.subr.bf16.mxu1 %v1929_v32 }
 0x13a   :  { %506 = vmatpush1.bf16.msra.mxu0 %v1916_v30  ;;  %547 = vmatpush1.bf16.msra.mxu1 %v1936_v33 }
 0x13b   :  { %617 = vmatprep.subr.bf16.mxu0 %v1745_v0  ;;  %658 = vmatprep.subr.bf16.mxu1 %v1776_v6 }
 0x1dd   :  { %v399_v44 = vpop.f32.mrf.mxu0  ;;  %v440_v47 = vpop.f32.mrf.mxu1 }
 0x1de   :  { %v447_v49 = vadd.f32 %v399_v44, %v360_v40  ;;  %v449_v25 = vadd.f32 %v440_v47, %v362_v60  ;;  %v354_v47 = vsel %vm352_vm8, %v2030_v62, 0.0 }
 0x1df   :  { %v401_v51 = vpop.f32.mrf.mxu0  ;;  %v442_v52 = vpop.f32.mrf.mxu1 }
 0x1e0   :  { %v1384_v53 = vmul.f32 -1.442695, %v447_v49  ;;  %v448_v54 = vadd.f32 %v401_v51, %v361_v42  ;;  %v1386_v38 = vmul.f32 -1.442695, %v449_v25  ;;  %v450_v40 = vadd.f32 %v442_v52, %v363_v34 }
 0x1e1   :  { %v403_v55 = vpop.f32.mrf.mxu0  ;;  %v444_v56 = vpop.f32.mrf.mxu1  ;;  %v353_v34 = vsel %vm352_vm8, %v2037_v35, 0.0  ;;  %v487_v35 = vunpack.c.h.bf16 %v1387_v39 }
 0x1e2   :  { %1553 = vpow2.f32 %v1384_v53  ;;  %v1385_v58 = vmul.f32 -1.442695, %v448_v54 }
 0x1e3   :  { %v404_v59 = vpop.f32.mrf.mxu0  ;;  %v445_v61 = vpop.f32.mrf.mxu1 }
 0x1e4   :  { %1555 = vpow2.f32 %v1385_v58 }
 0x1e5   :  { %1557 = vpow2.f32 %v1386_v38 }
 0x1ef   :  { %v1554_v36 = vpop.eup %1553 }
 0x1f0   :  { %v460_v44 = vadd.f32 1.0, %v1554_v36 }
 0x1f1   :  { %v1556_v49 = vpop.eup %1555 }
 0x1f2   :  { %1559 = vrcp.f32 %v460_v44  ;;  %v461_v42 = vadd.f32 1.0, %v1556_v49  ;;  %v1558_v51 = vpop.eup %1557 }
 0x1f3   :  { %1561 = vtanh.f32 %v450_v40  ;;  %v462_v56 = vadd.f32 1.0, %v1558_v51 }
 0x1f4   :  { %1563 = vrcp.f32 %v461_v42 }
 0x1f5   :  { %1565 = vrcp.f32 %v462_v56 }
 0x1ff   :  { %v1560_v53 = vpop.eup %1559 }
 0x200   :  { %v1562_v55 = vpop.eup %1561 }
 0x201   :  { %v1564_v54 = vpop.eup %1563  ;;  %v471_v58 = vmul.f32 %v1562_v55, %v1560_v53 }
 0x202   :  { %v470_v57 = vmul.f32 %v1564_v54, %v354_v47  ;;  %v1566_v61 = vpop.eup %1565 }
 0x204   :  { %v472_v52 = vadd.f32 %v471_v58, %v470_v57 }
 0x206   :  { %1567 = vtanh.f32 %v472_v52  ;;  %v2094_v59 = vsel %vm478_vm1, %v472_v52, %v354_v47  ;;  %v1388_v47 = vld [vmem:[%s2559_s1 + $0x28] sm:$0xff] }
 0x207   :  { %v488_v52 = vunpack.c.l.bf16 %v1388_v47 }
 0x213   :  { %v1568_v60 = vpop.eup %1567 }
 0x214   :  { %v474_v25 = vmul.f32 %v1568_v60, %v1566_v61  ;;  %v489_v60 = vunpack.c.h.bf16 %v1388_v47 }
 0x216   :  { %v2103_v62 = vsel %vm478_vm1, %v474_v25, %v353_v34 }
 0x217   :  { %v490_v38 = vpack.c.bf16 %v2103_v62, %v2103_v62 }
 0x219   :  { %524 = vmatmul.mubr.bf16.vlgmr.msra.gmra.mxu0 %v490_v38  ;;  %565 = vmatmul.mubr.bf16.vlgmr.msra.gmra.mxu1 %v490_v38 }
 0x21a   :  { %618 = vmatpush1.bf16.msra.mxu0 %v1752_v2  ;;  %659 = vmatpush1.bf16.msra.mxu1 %v1781_v7 }
 0x21b   :  { %619 = vmatprep.subr.bf16.mxu0 %v1759_v3  ;;  %660 = vmatprep.subr.bf16.mxu1 %v1800_v10 }
 0x21c   :  { %649 = vmatprep.mubr.bf16.mxu0 %v1701_v1  ;;  %690 = vmatprep.mubr.bf16.mxu1 %v1701_v1 }
 0x21e   :  { %620 = vmatpush1.bf16.msra.mxu0 %v1765_v4  ;;  %661 = vmatpush1.bf16.msra.mxu1 %v1805_v11 }
 0x21f   :  { %621 = vmatprep.subr.bf16.mxu0 %v1771_v5  ;;  %662 = vmatprep.subr.bf16.mxu1 %v1822_v14 }
 0x222   :  { %622 = vmatpush1.bf16.msra.mxu0 %v1787_v8  ;;  %663 = vmatpush1.bf16.msra.mxu1 %v1829_v15 }
 0x223   :  { %623 = vmatprep.subr.bf16.mxu0 %v1794_v9  ;;  %664 = vmatprep.subr.bf16.mxu1 %v1835_v16 }
 0x226   :  { %624 = vmatpush1.bf16.msra.mxu0 %v1812_v12  ;;  %665 = vmatpush1.bf16.msra.mxu1 %v1853_v19 }
 0x227   :  { %625 = vmatprep.subr.bf16.mxu0 %v1817_v13  ;;  %666 = vmatprep.subr.bf16.mxu1 %v1859_v20 }
 0x22a   :  { %626 = vmatpush1.bf16.msra.mxu0 %v1841_v17  ;;  %667 = vmatpush1.bf16.msra.mxu1 %v1877_v23 }
 0x22b   :  { %627 = vmatprep.subr.bf16.mxu0 %v1847_v18  ;;  %668 = vmatprep.subr.bf16.mxu1 %v1883_v24 }
 0x22e   :  { %628 = vmatpush1.bf16.msra.mxu0 %v1865_v21  ;;  %669 = vmatpush1.bf16.msra.mxu1 %v1904_v28 }
 0x22f   :  { %629 = vmatprep.subr.bf16.mxu0 %v1870_v22  ;;  %670 = vmatprep.subr.bf16.mxu1 %v1910_v29 }
 0x232   :  { %630 = vmatpush1.bf16.msra.mxu0 %v1892_v26  ;;  %671 = vmatpush1.bf16.msra.mxu1 %v1923_v31 }
 0x233   :  { %631 = vmatprep.subr.bf16.mxu0 %v1898_v27  ;;  %672 = vmatprep.subr.bf16.mxu1 %v1929_v32 }
 0x236   :  { %632 = vmatpush1.bf16.msra.mxu0 %v1916_v30  ;;  %673 = vmatpush1.bf16.msra.mxu1 %v1936_v33 }
 0x237   :  { %743 = vmatprep.subr.bf16.mxu0 %v1745_v0  ;;  %784 = vmatprep.subr.bf16.mxu1 %v1776_v6 }
 0x2d9   :  { %v525_v36 = vpop.f32.mrf.mxu0  ;;  %v566_v40 = vpop.f32.mrf.mxu1 }
 0x2da   :  { %v573_v44 = vadd.f32 %v525_v36, %v486_v63  ;;  %v575_v61 = vadd.f32 %v566_v40, %v488_v52 }
 0x2db   :  { %v527_v49 = vpop.f32.mrf.mxu0  ;;  %v568_v42 = vpop.f32.mrf.mxu1 }
 0x2dc   :  { %v1389_v51 = vmul.f32 -1.442695, %v573_v44  ;;  %v574_v53 = vadd.f32 %v527_v49, %v487_v35  ;;  %v1391_v25 = vmul.f32 -1.442695, %v575_v61  ;;  %v576_v38 = vadd.f32 %v568_v42, %v489_v60 }
 0x2dd   :  { %v529_v55 = vpop.f32.mrf.mxu0  ;;  %v570_v54 = vpop.f32.mrf.mxu1 }
 0x2de   :  { %1569 = vpow2.f32 %v1389_v51  ;;  %v1390_v56 = vmul.f32 -1.442695, %v574_v53 }
 0x2df   :  { %v530_v57 = vpop.f32.mrf.mxu0  ;;  %v571_v58 = vpop.f32.mrf.mxu1 }
 0x2e0   :  { %1571 = vpow2.f32 %v1390_v56 }
 0x2e1   :  { %1573 = vpow2.f32 %v1391_v25 }
 0x2eb   :  { %v1570_v34 = vpop.eup %1569 }
 0x2ec   :  { %v586_v39 = vadd.f32 1.0, %v1570_v34 }
 0x2ed   :  { %v1572_v63 = vpop.eup %1571 }
 0x2ee   :  { %1575 = vrcp.f32 %v586_v39  ;;  %v587_v35 = vadd.f32 1.0, %v1572_v63  ;;  %v1574_v36 = vpop.eup %1573 }
 0x2ef   :  { %1577 = vtanh.f32 %v576_v38  ;;  %v588_v53 = vadd.f32 1.0, %v1574_v36 }
 0x2f0   :  { %1579 = vrcp.f32 %v587_v35 }
 0x2f1   :  { %1581 = vrcp.f32 %v588_v53 }
 0x2fb   :  { %v1576_v44 = vpop.eup %1575 }
 0x2fc   :  { %v1578_v49 = vpop.eup %1577 }
 0x2fd   :  { %v1580_v51 = vpop.eup %1579  ;;  %v597_v54 = vmul.f32 %v1578_v49, %v1576_v44  ;;  %v1393_v44 = vld [vmem:[%s2559_s1 + $0x38] sm:$0xff] }
 0x2fe   :  { %v596_v55 = vmul.f32 %v1580_v51, %v2094_v59  ;;  %v1582_v47 = vpop.eup %1581 }
 0x300   :  { %v598_v40 = vadd.f32 %v597_v54, %v596_v55  ;;  %v614_v55 = vunpack.c.l.bf16 %v1393_v44 }
 0x302   :  { %1583 = vtanh.f32 %v598_v40  ;;  %v2152_v42 = vsel %vm604_vm2, %v598_v40, %v2094_v59  ;;  %v612_v59 = vunpack.c.l.bf16 %v1392_v41  ;;  %v615_v40 = vunpack.c.h.bf16 %v1393_v44 }
 0x30f   :  { %v1584_v56 = vpop.eup %1583 }
 0x310   :  { %v600_v57 = vmul.f32 %v1584_v56, %v1582_v47 }
 0x312   :  { %v2158_v58 = vsel %vm604_vm2, %v600_v57, %v2103_v62  ;;  %v613_v62 = vunpack.c.h.bf16 %v1392_v41 }
 0x313   :  { %v616_v52 = vpack.c.bf16 %v2158_v58, %v2158_v58 }
 0x315   :  { %650 = vmatmul.mubr.bf16.vlgmr.msra.gmra.mxu0 %v616_v52  ;;  %691 = vmatmul.mubr.bf16.vlgmr.msra.gmra.mxu1 %v616_v52 }
 0x316   :  { %744 = vmatpush1.bf16.msra.mxu0 %v1752_v2  ;;  %785 = vmatpush1.bf16.msra.mxu1 %v1781_v7 }
 0x317   :  { %745 = vmatprep.subr.bf16.mxu0 %v1759_v3  ;;  %786 = vmatprep.subr.bf16.mxu1 %v1800_v10 }
 0x318   :  { %775 = vmatprep.mubr.bf16.mxu0 %v1701_v1  ;;  %816 = vmatprep.mubr.bf16.mxu1 %v1701_v1 }
 0x31a   :  { %746 = vmatpush1.bf16.msra.mxu0 %v1765_v4  ;;  %787 = vmatpush1.bf16.msra.mxu1 %v1805_v11 }
 0x31b   :  { %747 = vmatprep.subr.bf16.mxu0 %v1771_v5  ;;  %788 = vmatprep.subr.bf16.mxu1 %v1822_v14 }
 0x31e   :  { %748 = vmatpush1.bf16.msra.mxu0 %v1787_v8  ;;  %789 = vmatpush1.bf16.msra.mxu1 %v1829_v15 }
 0x31f   :  { %749 = vmatprep.subr.bf16.mxu0 %v1794_v9  ;;  %790 = vmatprep.subr.bf16.mxu1 %v1835_v16 }
 0x322   :  { %750 = vmatpush1.bf16.msra.mxu0 %v1812_v12  ;;  %791 = vmatpush1.bf16.msra.mxu1 %v1853_v19 }
 0x323   :  { %751 = vmatprep.subr.bf16.mxu0 %v1817_v13  ;;  %792 = vmatprep.subr.bf16.mxu1 %v1859_v20 }
 0x326   :  { %752 = vmatpush1.bf16.msra.mxu0 %v1841_v17  ;;  %793 = vmatpush1.bf16.msra.mxu1 %v1877_v23 }
 0x327   :  { %753 = vmatprep.subr.bf16.mxu0 %v1847_v18  ;;  %794 = vmatprep.subr.bf16.mxu1 %v1883_v24 }
 0x32a   :  { %754 = vmatpush1.bf16.msra.mxu0 %v1865_v21  ;;  %795 = vmatpush1.bf16.msra.mxu1 %v1904_v28 }
 0x32b   :  { %755 = vmatprep.subr.bf16.mxu0 %v1870_v22  ;;  %796 = vmatprep.subr.bf16.mxu1 %v1910_v29 }
 0x32e   :  { %756 = vmatpush1.bf16.msra.mxu0 %v1892_v26  ;;  %797 = vmatpush1.bf16.msra.mxu1 %v1923_v31 }
 0x32f   :  { %757 = vmatprep.subr.bf16.mxu0 %v1898_v27  ;;  %798 = vmatprep.subr.bf16.mxu1 %v1929_v32 }
 0x332   :  { %758 = vmatpush1.bf16.msra.mxu0 %v1916_v30  ;;  %799 = vmatpush1.bf16.msra.mxu1 %v1936_v33 }
 0x333   :  { %869 = vmatprep.subr.bf16.mxu0 %v1745_v0  ;;  %910 = vmatprep.subr.bf16.mxu1 %v1776_v6 }
 0x3d5   :  { %v651_v61 = vpop.f32.mrf.mxu0  ;;  %v692_v60 = vpop.f32.mrf.mxu1 }
 0x3d6   :  { %v699_v25 = vadd.f32 %v651_v61, %v612_v59  ;;  %v701_v54 = vadd.f32 %v692_v60, %v614_v55 }
 0x3d7   :  { %v653_v34 = vpop.f32.mrf.mxu0  ;;  %v694_v38 = vpop.f32.mrf.mxu1 }
 0x3d8   :  { %v1394_v39 = vmul.f32 -1.442695, %v699_v25  ;;  %v700_v63 = vadd.f32 %v653_v34, %v613_v62  ;;  %v1396_v47 = vmul.f32 -1.442695, %v701_v54  ;;  %v702_v57 = vadd.f32 %v694_v38, %v615_v40 }
 0x3d9   :  { %v655_v35 = vpop.f32.mrf.mxu0  ;;  %v696_v36 = vpop.f32.mrf.mxu1 }
 0x3da   :  { %1585 = vpow2.f32 %v1394_v39  ;;  %v1395_v49 = vmul.f32 -1.442695, %v700_v63 }
 0x3db   :  { %v656_v51 = vpop.f32.mrf.mxu0  ;;  %v697_v53 = vpop.f32.mrf.mxu1 }
 0x3dc   :  { %1587 = vpow2.f32 %v1395_v49 }
 0x3dd   :  { %1589 = vpow2.f32 %v1396_v47 }
 0x3e7   :  { %v1586_v56 = vpop.eup %1585 }
 0x3e8   :  { %v712_v52 = vadd.f32 1.0, %v1586_v56 }
 0x3e9   :  { %v1588_v41 = vpop.eup %1587 }
 0x3ea   :  { %1591 = vrcp.f32 %v712_v52  ;;  %v713_v59 = vadd.f32 1.0, %v1588_v41  ;;  %v1590_v62 = vpop.eup %1589 }
 0x3eb   :  { %1593 = vtanh.f32 %v702_v57  ;;  %v714_v39 = vadd.f32 1.0, %v1590_v62 }
 0x3ec   :  { %1595 = vrcp.f32 %v713_v59 }
 0x3ed   :  { %1597 = vrcp.f32 %v714_v39 }
 0x3f7   :  { %v1592_v61 = vpop.eup %1591 }
 0x3f8   :  { %v1594_v25 = vpop.eup %1593 }
 0x3f9   :  { %v1596_v34 = vpop.eup %1595  ;;  %v723_v35 = vmul.f32 %v1594_v25, %v1592_v61 }
 0x3fa   :  { %v722_v63 = vmul.f32 %v1596_v34, %v2152_v42  ;;  %v1598_v36 = vpop.eup %1597 }
 0x3fc   :  { %v724_v60 = vadd.f32 %v723_v35, %v722_v63 }
 0x3fe   :  { %1599 = vtanh.f32 %v724_v60  ;;  %v2207_v38 = vsel %vm730_vm3, %v724_v60, %v2152_v42 }
 0x40b   :  { %v1600_v44 = vpop.eup %1599 }
 0x40c   :  { %v726_v49 = vmul.f32 %v1600_v44, %v1598_v36  ;;  %v2275_v44 = vld [vmem:[%s2557_s2 + $0xe0] ss:$16 sps:$4 sm:$0xff]  }
 0x40e   :  { %v2213_v51 = vsel %vm730_vm3, %v726_v49, %v2158_v58  ;;  %v2293_v49 = vld [vmem:[%s2557_s2 + $0xcc] ss:$16 sps:$4 sm:$0xff]  }
 0x40f   :  { %v742_v53 = vpack.c.bf16 %v2213_v51, %v2213_v51 }
 0x411   :  { %776 = vmatmul.mubr.bf16.vlgmr.msra.gmra.mxu0 %v742_v53  ;;  %817 = vmatmul.mubr.bf16.vlgmr.msra.gmra.mxu1 %v742_v53  ;;  %v2307_v53 = vld [vmem:[%s2557_s2 + $0xc8] ss:$16 sps:$4 sm:$0xff]  }
 0x412   :  { %870 = vmatpush1.bf16.msra.mxu0 %v1752_v2  ;;  %911 = vmatpush1.bf16.msra.mxu1 %v1781_v7  ;;  %v1397_v2 = vld [vmem:[%s2559_s1 + $0x40] sm:$0xff] }
 0x413   :  { %871 = vmatprep.subr.bf16.mxu0 %v1759_v3  ;;  %912 = vmatprep.subr.bf16.mxu1 %v1800_v10  ;;  %v738_v3 = vunpack.c.l.bf16 %v1397_v2 }
 0x414   :  { %901 = vmatprep.mubr.bf16.mxu0 %v1701_v1  ;;  %942 = vmatprep.mubr.bf16.mxu1 %v1701_v1 }
 0x416   :  { %872 = vmatpush1.bf16.msra.mxu0 %v1765_v4  ;;  %913 = vmatpush1.bf16.msra.mxu1 %v1805_v11  ;;  %v739_v4 = vunpack.c.h.bf16 %v1397_v2  ;;  %v2313_v2 = vld [vmem:[%s2557_s2 + $0xa4] ss:$16 sps:$4 sm:$0xff]  }
 0x417   :  { %873 = vmatprep.subr.bf16.mxu0 %v1771_v5  ;;  %914 = vmatprep.subr.bf16.mxu1 %v1822_v14 }
 0x41a   :  { %874 = vmatpush1.bf16.msra.mxu0 %v1787_v8  ;;  %915 = vmatpush1.bf16.msra.mxu1 %v1829_v15 }
 0x41b   :  { %875 = vmatprep.subr.bf16.mxu0 %v1794_v9  ;;  %916 = vmatprep.subr.bf16.mxu1 %v1835_v16 }
 0x41e   :  { %876 = vmatpush1.bf16.msra.mxu0 %v1812_v12  ;;  %917 = vmatpush1.bf16.msra.mxu1 %v1853_v19 }
 0x41f   :  { %877 = vmatprep.subr.bf16.mxu0 %v1817_v13  ;;  %918 = vmatprep.subr.bf16.mxu1 %v1859_v20 }
 0x422   :  { %878 = vmatpush1.bf16.msra.mxu0 %v1841_v17  ;;  %919 = vmatpush1.bf16.msra.mxu1 %v1877_v23 }
 0x423   :  { %879 = vmatprep.subr.bf16.mxu0 %v1847_v18  ;;  %920 = vmatprep.subr.bf16.mxu1 %v1883_v24 }
 0x426   :  { %880 = vmatpush1.bf16.msra.mxu0 %v1865_v21  ;;  %921 = vmatpush1.bf16.msra.mxu1 %v1904_v28 }
 0x427   :  { %881 = vmatprep.subr.bf16.mxu0 %v1870_v22  ;;  %922 = vmatprep.subr.bf16.mxu1 %v1910_v29 }
 0x42a   :  { %882 = vmatpush1.bf16.msra.mxu0 %v1892_v26  ;;  %923 = vmatpush1.bf16.msra.mxu1 %v1923_v31 }
 0x42b   :  { %883 = vmatprep.subr.bf16.mxu0 %v1898_v27  ;;  %924 = vmatprep.subr.bf16.mxu1 %v1929_v32 }
 0x42e   :  { %884 = vmatpush1.bf16.msra.mxu0 %v1916_v30  ;;  %925 = vmatpush1.bf16.msra.mxu1 %v1936_v33 }
 0x42f   :  { %995 = vmatprep.subr.bf16.mxu0 %v1745_v0  ;;  %1036 = vmatprep.subr.bf16.mxu1 %v1776_v6  ;;  %v1398_v0 = vld [vmem:[%s2559_s1 + $0x48] sm:$0xff] }
 0x430   :  { %v740_v17 = vunpack.c.l.bf16 %v1398_v0  ;;  %v741_v43 = vunpack.c.h.bf16 %v1398_v0 }
 0x4d1   :  { %v777_v5 = vpop.f32.mrf.mxu0  ;;  %v818_v7 = vpop.f32.mrf.mxu1 }
 0x4d2   :  { %v825_v8 = vadd.f32 %v777_v5, %v738_v3  ;;  %v827_v18 = vadd.f32 %v818_v7, %v740_v17  ;;  %v2319_v3 = vld [vmem:[%s2557_s2 + $0xac] ss:$16 sps:$4 sm:$0xff]   ;;  %v2331_v5 = vld [vmem:[%s2557_s2 + $0xa8] ss:$16 sps:$4 sm:$0xff]   ;;  %v2337_v7 = vld [vmem:[%s2557_s2 + $0x84] ss:$16 sps:$4 sm:$0xff]  }
 0x4d3   :  { %v779_v9 = vpop.f32.mrf.mxu0  ;;  %v820_v10 = vpop.f32.mrf.mxu1 }
 0x4d4   :  { %v1399_v11 = vmul.f32 -1.442695, %v825_v8  ;;  %v826_v12 = vadd.f32 %v779_v9, %v739_v4  ;;  %v1401_v42 = vmul.f32 -1.442695, %v827_v18  ;;  %v828_v55 = vadd.f32 %v820_v10, %v741_v43  ;;  %v2325_v4 = vld [vmem:[%s2557_s2 + $0xa0] ss:$16 sps:$4 sm:$0xff]  }
 0x4d5   :  { %v781_v13 = vpop.f32.mrf.mxu0  ;;  %v822_v14 = vpop.f32.mrf.mxu1  ;;  %v2343_v8 = vld [vmem:[%s2557_s2 + $0x8c] ss:$16 sps:$4 sm:$0xff]   ;;  %v2349_v9 = vld [vmem:[%s2557_s2 + $0x80] ss:$16 sps:$4 sm:$0xff]   ;;  %v2356_v10 = vld [vmem:[%s2557_s2 + $0x64] ss:$16 sps:$4 sm:$0xff]  }
 0x4d6   :  { %1601 = vpow2.f32 %v1399_v11  ;;  %v1400_v6 = vmul.f32 -1.442695, %v826_v12  ;;  %v2363_v11 = vld [vmem:[%s2557_s2 + $0x60] ss:$16 sps:$4 sm:$0xff]   ;;  %v1403_v13 = vld [vmem:[%s2559_s1 + $0x58] sm:$0xff] }
 0x4d7   :  { %v782_v15 = vpop.f32.mrf.mxu0  ;;  %v823_v16 = vpop.f32.mrf.mxu1  ;;  %v867_v17 = vunpack.c.h.bf16 %v1403_v13 }
 0x4d8   :  { %1603 = vpow2.f32 %v1400_v6  ;;  %v866_v15 = vunpack.c.l.bf16 %v1403_v13 }
 0x4d9   :  { %1605 = vpow2.f32 %v1401_v42 }
 0x4e3   :  { %v1602_v58 = vpop.eup %1601 }
 0x4e4   :  { %v838_v54 = vadd.f32 1.0, %v1602_v58 }
 0x4e5   :  { %v1604_v40 = vpop.eup %1603 }
 0x4e6   :  { %1607 = vrcp.f32 %v838_v54  ;;  %v839_v47 = vadd.f32 1.0, %v1604_v40  ;;  %v1606_v56 = vpop.eup %1605 }
 0x4e7   :  { %1609 = vtanh.f32 %v828_v55  ;;  %v840_v59 = vadd.f32 1.0, %v1606_v56 }
 0x4e8   :  { %1611 = vrcp.f32 %v839_v47 }
 0x4e9   :  { %1613 = vrcp.f32 %v840_v59 }
 0x4f3   :  { %v1608_v57 = vpop.eup %1607 }
 0x4f4   :  { %v1610_v52 = vpop.eup %1609 }
 0x4f5   :  { %v1612_v41 = vpop.eup %1611  ;;  %v849_v61 = vmul.f32 %v1610_v52, %v1608_v57 }
 0x4f6   :  { %v848_v62 = vmul.f32 %v1612_v41, %v2207_v38  ;;  %v1614_v39 = vpop.eup %1613 }
 0x4f8   :  { %v850_v25 = vadd.f32 %v849_v61, %v848_v62 }
 0x4fa   :  { %1615 = vtanh.f32 %v850_v25  ;;  %v2262_v34 = vsel %vm856_vm4, %v850_v25, %v2207_v38  ;;  %v2281_v38 = vld [vmem:[%s2557_s2 + $0xe8] ss:$16 sps:$4 sm:$0xff]  }
 0x507   :  { %v1616_v63 = vpop.eup %1615 }
 0x508   :  { %v852_v35 = vmul.f32 %v1616_v63, %v1614_v39 }
 0x50a   :  { %v2268_v60 = vsel %vm856_vm4, %v852_v35, %v2213_v51  ;;  %v2301_v51 = vld [vmem:[%s2557_s2 + $0xc0] ss:$16 sps:$4 sm:$0xff]  }
 0x50b   :  { %v868_v36 = vpack.c.bf16 %v2268_v60, %v2268_v60 }
 0x50d   :  { %902 = vmatmul.mubr.bf16.vlgmr.msra.gmra.mxu0 %v868_v36  ;;  %943 = vmatmul.mubr.bf16.vlgmr.msra.gmra.mxu1 %v868_v36 }
 0x50e   :  { %996 = vmatpush1.bf16.msra.mxu0 %v2275_v44  ;;  %1037 = vmatpush1.bf16.msra.mxu1 %v2281_v38 }
 0x50f   :  { %997 = vmatprep.subr.bf16.mxu0 %v2287_v45  ;;  %1038 = vmatprep.subr.bf16.mxu1 %v2293_v49 }
 0x510   :  { %1027 = vmatprep.mubr.bf16.mxu0 %v1701_v1  ;;  %1068 = vmatprep.mubr.bf16.mxu1 %v1701_v1 }
 0x512   :  { %998 = vmatpush1.bf16.msra.mxu0 %v2301_v51  ;;  %1039 = vmatpush1.bf16.msra.mxu1 %v2307_v53 }
 0x513   :  { %999 = vmatprep.subr.bf16.mxu0 %v2313_v2  ;;  %1040 = vmatprep.subr.bf16.mxu1 %v2319_v3 }
 0x516   :  { %1000 = vmatpush1.bf16.msra.mxu0 %v2325_v4  ;;  %1041 = vmatpush1.bf16.msra.mxu1 %v2331_v5 }
 0x517   :  { %1001 = vmatprep.subr.bf16.mxu0 %v2337_v7  ;;  %1042 = vmatprep.subr.bf16.mxu1 %v2343_v8 }
 0x51a   :  { %1002 = vmatpush1.bf16.msra.mxu0 %v2349_v9  ;;  %1043 = vmatpush1.bf16.msra.mxu1 %v1853_v19  ;;  %v2370_v19 = vld [vmem:[%s2557_s2 + $0x44] ss:$16 sps:$4 sm:$0xff]  }
 0x51b   :  { %1003 = vmatprep.subr.bf16.mxu0 %v2356_v10  ;;  %1044 = vmatprep.subr.bf16.mxu1 %v1859_v20  ;;  %v1685_v20 = vld [vmem:[%s2557_s2 + $0xe4] ss:$16 sps:$4 sm:$0xff]  }
 0x51e   :  { %1004 = vmatpush1.bf16.msra.mxu0 %v2363_v11  ;;  %1045 = vmatpush1.bf16.msra.mxu1 %v1877_v23 }
 0x51f   :  { %1005 = vmatprep.subr.bf16.mxu0 %v2370_v19  ;;  %1046 = vmatprep.subr.bf16.mxu1 %v1883_v24 }
 0x522   :  { %1006 = vmatpush1.bf16.msra.mxu0 %v1865_v21  ;;  %1047 = vmatpush1.bf16.msra.mxu1 %v1904_v28  ;;  %v1686_v21 = vld [vmem:[%s2557_s2 + $0xec] ss:$16 sps:$4 sm:$0xff]  }
 0x523   :  { %1007 = vmatprep.subr.bf16.mxu0 %v1870_v22  ;;  %1048 = vmatprep.subr.bf16.mxu1 %v1910_v29  ;;  %v1402_v22 = vld [vmem:[%s2559_s1 + $0x50] sm:$0xff] }
 0x524   :  { %v864_v23 = vunpack.c.l.bf16 %v1402_v22  ;;  %v865_v24 = vunpack.c.h.bf16 %v1402_v22 }
 0x526   :  { %1008 = vmatpush1.bf16.msra.mxu0 %v1892_v26  ;;  %1049 = vmatpush1.bf16.msra.mxu1 %v1923_v31 }
 0x527   :  { %1009 = vmatprep.subr.bf16.mxu0 %v1898_v27  ;;  %1050 = vmatprep.subr.bf16.mxu1 %v1929_v32 }
 0x52a   :  { %1010 = vmatpush1.bf16.msra.mxu0 %v1916_v30  ;;  %1051 = vmatpush1.bf16.msra.mxu1 %v1936_v33 }
 0x52b   :  { %1121 = vmatprep.subr.bf16.mxu0 %v1685_v20  ;;  %1162 = vmatprep.subr.bf16.mxu1 %v1686_v21 }
 0x5cd   :  { %v903_v26 = vpop.f32.mrf.mxu0  ;;  %v944_v27 = vpop.f32.mrf.mxu1 }
 0x5ce   :  { %v951_v28 = vadd.f32 %v903_v26, %v864_v23  ;;  %v953_v16 = vadd.f32 %v944_v27, %v866_v15  ;;  %v1408_v27 = vld [vmem:[%s2559_s1 + $0x68] sm:$0xff] }
 0x5cf   :  { %v905_v29 = vpop.f32.mrf.mxu0  ;;  %v946_v30 = vpop.f32.mrf.mxu1 }
 0x5d0   :  { %v1404_v31 = vmul.f32 -1.442695, %v951_v28  ;;  %v952_v32 = vadd.f32 %v905_v29, %v865_v24  ;;  %v1406_v18 = vmul.f32 -1.442695, %v953_v16  ;;  %v954_v42 = vadd.f32 %v946_v30, %v867_v17 }
 0x5d1   :  { %v907_v33 = vpop.f32.mrf.mxu0  ;;  %v948_v12 = vpop.f32.mrf.mxu1 }
 0x5d2   :  { %1617 = vpow2.f32 %v1404_v31  ;;  %v1405_v14 = vmul.f32 -1.442695, %v952_v32  ;;  %v992_v31 = vunpack.c.l.bf16 %v1408_v27  ;;  %v993_v33 = vunpack.c.h.bf16 %v1408_v27 }
 0x5d3   :  { %v908_v0 = vpop.f32.mrf.mxu0  ;;  %v949_v6 = vpop.f32.mrf.mxu1 }
 0x5d4   :  { %1619 = vpow2.f32 %v1405_v14 }
 0x5d5   :  { %1621 = vpow2.f32 %v1406_v18 }
 0x5df   :  { %v1618_v43 = vpop.eup %1617 }
 0x5e0   :  { %v964_v58 = vadd.f32 1.0, %v1618_v43 }
 0x5e1   :  { %v1620_v55 = vpop.eup %1619 }
 0x5e2   :  { %1623 = vrcp.f32 %v964_v58  ;;  %v965_v54 = vadd.f32 1.0, %v1620_v55  ;;  %v1622_v40 = vpop.eup %1621 }
 0x5e3   :  { %1625 = vtanh.f32 %v954_v42  ;;  %v966_v52 = vadd.f32 1.0, %v1622_v40 }
 0x5e4   :  { %1627 = vrcp.f32 %v965_v54 }
 0x5e5   :  { %1629 = vrcp.f32 %v966_v52 }
 0x5ef   :  { %v1624_v47 = vpop.eup %1623 }
 0x5f0   :  { %v1626_v56 = vpop.eup %1625 }
 0x5f1   :  { %v1628_v57 = vpop.eup %1627  ;;  %v975_v59 = vmul.f32 %v1626_v56, %v1624_v47 }
 0x5f2   :  { %v974_v41 = vmul.f32 %v1628_v57, %v2262_v34  ;;  %v1630_v25 = vpop.eup %1629 }
 0x5f4   :  { %v976_v62 = vadd.f32 %v975_v59, %v974_v41  ;;  %v1710_v59 = vmov 0.0  }
 0x5f6   :  { %1631 = vtanh.f32 %v976_v62  ;;  %v2401_v61 = vsel %vm982_vm6, %v976_v62, %v2262_v34  ;;  %v1689_v34 = vld [vmem:[%s2557_s2 + $0x68] ss:$16 sps:$4 sm:$0xff]  }
 0x5f7   :  { %v1257_v62 = vld [vmem:[%s2560_s3 + $0x78] sm:$0xff] }
 0x603   :  { %v1632_v39 = vpop.eup %1631 }
 0x604   :  { %v978_v63 = vmul.f32 %v1632_v39, %v1630_v25  ;;  %v1254_v25 = vld [vmem:[%s2560_s3 + $0x60] sm:$0xff]  ;;  %v1253_v39 = vld [vmem:[%s2560_s3 + $0x58] sm:$0xff] }
 0x606   :  { %v2407_v35 = vsel %vm982_vm6, %v978_v63, %v2268_v60  ;;  %v1690_v60 = vld [vmem:[%s2557_s2 + $0x4c] ss:$16 sps:$4 sm:$0xff]   ;;  %v1252_v63 = vld [vmem:[%s2560_s3 + $0x50] sm:$0xff] }
 0x607   :  { %v994_v36 = vpack.c.bf16 %v2407_v35, %v2407_v35 }
 0x609   :  { %1028 = vmatmul.mubr.bf16.vlgmr.msra.gmra.mxu0 %v994_v36  ;;  %1069 = vmatmul.mubr.bf16.vlgmr.msra.gmra.mxu1 %v994_v36  ;;  %v1250_v36 = vld [vmem:[%s2560_s3 + $0x40] sm:$0xff] }
 0x60a   :  { %1122 = vmatpush1.bf16.msra.mxu0 %v2275_v44  ;;  %1163 = vmatpush1.bf16.msra.mxu1 %v2281_v38  ;;  %v1691_v44 = vld [vmem:[%s2557_s2 + $0x40] ss:$16 sps:$4 sm:$0xff]   ;;  %v1692_v38 = vld [vmem:[%s2557_s2 + $0x48] ss:$16 sps:$4 sm:$0xff]  }
 0x60b   :  { %1123 = vmatprep.subr.bf16.mxu0 %v2287_v45  ;;  %1164 = vmatprep.subr.bf16.mxu1 %v2293_v49  ;;  %v1693_v45 = vld [vmem:[%s2557_s2 + $0x24] ss:$16 sps:$4 sm:$0xff]   ;;  %v1694_v49 = vld [vmem:[%s2557_s2 + $0x2c] ss:$16 sps:$4 sm:$0xff]  }
 0x60c   :  { %1153 = vmatprep.mubr.bf16.mxu0 %v1701_v1  ;;  %1194 = vmatprep.mubr.bf16.mxu1 %v1701_v1  ;;  %v1687_v1 = vld [vmem:[%s2557_s2 + $0x88] ss:$16 sps:$4 sm:$0xff]  }
 0x60e   :  { %1124 = vmatpush1.bf16.msra.mxu0 %v2301_v51  ;;  %1165 = vmatpush1.bf16.msra.mxu1 %v2307_v53  ;;  %v1695_v51 = vld [vmem:[%s2557_s2 + $0x20] ss:$16 sps:$4 sm:$0xff]   ;;  %v1696_v53 = vld [vmem:[%s2557_s2 + $0x28] ss:$16 sps:$4 sm:$0xff]  }
 0x60f   :  { %1125 = vmatprep.subr.bf16.mxu0 %v2313_v2  ;;  %1166 = vmatprep.subr.bf16.mxu1 %v2319_v3  ;;  %v1697_v2 = vld [vmem:[%s2557_s2 + $0x4] ss:$16 sps:$4 sm:$0xff]   ;;  %v1698_v3 = vld [vmem:[%s2557_s2 + $0xc] ss:$16 sps:$4 sm:$0xff]  }
 0x612   :  { %1126 = vmatpush1.bf16.msra.mxu0 %v2325_v4  ;;  %1167 = vmatpush1.bf16.msra.mxu1 %v2331_v5  ;;  %v1699_v4 = vld [vmem:[%s2557_s2] ss:$16 sps:$4 sm:$0xff]   ;;  %v1700_v5 = vld [vmem:[%s2557_s2 + $0x8] ss:$16 sps:$4 sm:$0xff]  }
 0x613   :  { %1127 = vmatprep.subr.bf16.mxu0 %v2337_v7  ;;  %1168 = vmatprep.subr.bf16.mxu1 %v2343_v8  ;;  %v1407_v7 = vld [vmem:[%s2559_s1 + $0x60] sm:$0xff] }
 0x614   :  { %v990_v8 = vunpack.c.l.bf16 %v1407_v7 }
 0x616   :  { %1128 = vmatpush1.bf16.msra.mxu0 %v2349_v9  ;;  %1169 = vmatpush1.bf16.msra.mxu1 %v1687_v1  ;;  %v991_v9 = vunpack.c.h.bf16 %v1407_v7  ;;  %v1249_v1 = vld [vmem:[%s2560_s3 + $0x38] sm:$0xff] }
 0x617   :  { %1129 = vmatprep.subr.bf16.mxu0 %v2356_v10  ;;  %1170 = vmatprep.subr.bf16.mxu1 %v1688_v48  ;;  %v1248_v48 = vld [vmem:[%s2560_s3 + $0x30] sm:$0xff] }
 0x61a   :  { %1130 = vmatpush1.bf16.msra.mxu0 %v2363_v11  ;;  %1171 = vmatpush1.bf16.msra.mxu1 %v1689_v34  ;;  %v1247_v34 = vld [vmem:[%s2560_s3 + $0x28] sm:$0xff] }
 0x61b   :  { %1131 = vmatprep.subr.bf16.mxu0 %v2370_v19  ;;  %1172 = vmatprep.subr.bf16.mxu1 %v1690_v60  ;;  %v1246_v60 = vld [vmem:[%s2560_s3 + $0x20] sm:$0xff] }
 0x61e   :  { %1132 = vmatpush1.bf16.msra.mxu0 %v1691_v44  ;;  %1173 = vmatpush1.bf16.msra.mxu1 %v1692_v38  ;;  %v1245_v44 = vld [vmem:[%s2560_s3 + $0x18] sm:$0xff]  ;;  %v1244_v38 = vld [vmem:[%s2560_s3 + $0x10] sm:$0xff] }
 0x61f   :  { %1133 = vmatprep.subr.bf16.mxu0 %v1693_v45  ;;  %1174 = vmatprep.subr.bf16.mxu1 %v1694_v49  ;;  %v1243_v45 = vld [vmem:[%s2560_s3 + $0x8] sm:$0xff]  ;;  %v1242_v49 = vld [vmem:[%s2560_s3] sm:$0xff] }
 0x622   :  { %1134 = vmatpush1.bf16.msra.mxu0 %v1695_v51  ;;  %1175 = vmatpush1.bf16.msra.mxu1 %v1696_v53  ;;  %v10_v51 = vstv %s2561_s4  ;;  %v1412_v53 = vld [vmem:[%s2559_s1 + $0x70] sm:$0xff] }
 0x623   :  { %1135 = vmatprep.subr.bf16.mxu0 %v1697_v2  ;;  %1176 = vmatprep.subr.bf16.mxu1 %v1698_v3  ;;  %11 = vst [vmem:[#allocation4] sm:$0x1] %v10_v51  ;;  %v1116_v2 = vunpack.c.l.bf16 %v1412_v53  ;;  %v1117_v3 = vunpack.c.h.bf16 %v1412_v53 }
 0x626   :  { %1136 = vmatpush1.bf16.msra.mxu0 %v1699_v4  ;;  %1177 = vmatpush1.bf16.msra.mxu1 %v1700_v5 }
 0x627   :  { %1442 = vmatprep.subr.mxu0 %v1710_v59 }
 0x6c9   :  { %v1029_v10 = vpop.f32.mrf.mxu0  ;;  %v1070_v11 = vpop.f32.mrf.mxu1 }
 0x6ca   :  { %v1077_v19 = vadd.f32 %v1029_v10, %v990_v8  ;;  %v1079_v32 = vadd.f32 %v1070_v11, %v992_v31 }
 0x6cb   :  { %v1031_v20 = vpop.f32.mrf.mxu0  ;;  %v1072_v21 = vpop.f32.mrf.mxu1 }
 0x6cc   :  { %v1409_v22 = vmul.f32 -1.442695, %v1077_v19  ;;  %v1078_v23 = vadd.f32 %v1031_v20, %v991_v9  ;;  %v1411_v12 = vmul.f32 -1.442695, %v1079_v32  ;;  %v1080_v14 = vadd.f32 %v1072_v21, %v993_v33  ;;  %v1413_v21 = vld [vmem:[%s2559_s1 + $0x78] sm:$0xff] }
 0x6cd   :  { %v1033_v24 = vpop.f32.mrf.mxu0  ;;  %v1074_v26 = vpop.f32.mrf.mxu1 }
 0x6ce   :  { %1633 = vpow2.f32 %v1409_v22  ;;  %v1410_v28 = vmul.f32 -1.442695, %v1078_v23  ;;  %v1118_v26 = vunpack.c.l.bf16 %v1413_v21 }
 0x6cf   :  { %v1034_v29 = vpop.f32.mrf.mxu0  ;;  %v1075_v30 = vpop.f32.mrf.mxu1 }
 0x6d0   :  { %1635 = vpow2.f32 %v1410_v28  ;;  %v1119_v28 = vunpack.c.h.bf16 %v1413_v21 }
 0x6d1   :  { %1637 = vpow2.f32 %v1411_v12 }
 0x6db   :  { %v1634_v13 = vpop.eup %1633 }
 0x6dc   :  { %v1090_v0 = vadd.f32 1.0, %v1634_v13 }
 0x6dd   :  { %v1636_v6 = vpop.eup %1635 }
 0x6de   :  { %1639 = vrcp.f32 %v1090_v0  ;;  %v1091_v15 = vadd.f32 1.0, %v1636_v6  ;;  %v1638_v16 = vpop.eup %1637 }
 0x6df   :  { %1641 = vtanh.f32 %v1080_v14  ;;  %v1092_v42 = vadd.f32 1.0, %v1638_v16 }
 0x6e0   :  { %1643 = vrcp.f32 %v1091_v15 }
 0x6e1   :  { %1645 = vrcp.f32 %v1092_v42 }
 0x6eb   :  { %v1640_v17 = vpop.eup %1639 }
 0x6ec   :  { %v1642_v18 = vpop.eup %1641 }
 0x6ed   :  { %v1644_v43 = vpop.eup %1643  ;;  %v1101_v55 = vmul.f32 %v1642_v18, %v1640_v17 }
 0x6ee   :  { %v1100_v58 = vmul.f32 %v1644_v43, %v2401_v61  ;;  %v1646_v47 = vpop.eup %1645 }
 0x6f0   :  { %v1102_v54 = vadd.f32 %v1101_v55, %v1100_v58 }
 0x6f2   :  { %1647 = vtanh.f32 %v1102_v54  ;;  %v2482_v40 = vsel %vm1108_vm7, %v1102_v54, %v2401_v61  ;;  %v1256_v61 = vld [vmem:[%s2560_s3 + $0x70] sm:$0xff]  ;;  %v1417_v54 = vld [vmem:[#allocation4] ss:$0 sm:$0xff] }
 0x6ff   :  { %v1648_v56 = vpop.eup %1647 }
 0x700   :  { %v1104_v57 = vmul.f32 %v1648_v56, %v1646_v47 }
 0x702   :  { %v2488_v52 = vsel %vm1108_vm7, %v1104_v57, %v2407_v35  ;;  %v1251_v35 = vld [vmem:[%s2560_s3 + $0x48] sm:$0xff] }
 0x703   :  { %v1120_v41 = vpack.c.bf16 %v2488_v52, %v2488_v52 }
 0x705   :  { %1154 = vmatmul.mubr.bf16.vlgmr.msra.gmra.mxu0 %v1120_v41  ;;  %1195 = vmatmul.mubr.bf16.vlgmr.msra.gmra.mxu1 %v1120_v41 }
 0x706   :  { %1443 = vmatpush3.msra.mxu0 %v1257_v62  ;;  %1474 = vmatprep.mubr.msk.f32.mxu0 %vm1711_vm10, %v1710_v59 }
 0x707   :  { %1444 = vmatprep.subr.mxu0 %v1710_v59 }
 0x708   :  { %1445 = vmatpush3.msra.mxu0 %v1256_v61 }
 0x709   :  { %1446 = vmatprep.subr.mxu0 %v1710_v59 }
 0x70a   :  { %1447 = vmatpush3.msra.mxu0 %v1255_v50 }
 0x70b   :  { %1448 = vmatprep.subr.mxu0 %v1710_v59 }
 0x70c   :  { %1449 = vmatpush3.msra.mxu0 %v1254_v25 }
 0x70d   :  { %1450 = vmatprep.subr.mxu0 %v1710_v59 }
 0x70e   :  { %1451 = vmatpush3.msra.mxu0 %v1253_v39 }
 0x70f   :  { %1452 = vmatprep.subr.mxu0 %v1710_v59 }
 0x710   :  { %1453 = vmatpush3.msra.mxu0 %v1252_v63 }
 0x711   :  { %1454 = vmatprep.subr.mxu0 %v1710_v59 }
 0x712   :  { %1455 = vmatpush3.msra.mxu0 %v1251_v35 }
 0x713   :  { %1456 = vmatprep.subr.mxu0 %v1710_v59 }
 0x714   :  { %1457 = vmatpush3.msra.mxu0 %v1250_v36 }
 0x715   :  { %1458 = vmatprep.subr.mxu0 %v1710_v59 }
 0x716   :  { %1459 = vmatpush3.msra.mxu0 %v1249_v1 }
 0x717   :  { %1460 = vmatprep.subr.mxu0 %v1710_v59 }
 0x718   :  { %1461 = vmatpush3.msra.mxu0 %v1248_v48 }
 0x719   :  { %1462 = vmatprep.subr.mxu0 %v1710_v59 }
 0x71a   :  { %1463 = vmatpush3.msra.mxu0 %v1247_v34 }
 0x71b   :  { %1464 = vmatprep.subr.mxu0 %v1710_v59 }
 0x71c   :  { %1465 = vmatpush3.msra.mxu0 %v1246_v60 }
 0x71d   :  { %1466 = vmatprep.subr.mxu0 %v1710_v59 }
 0x71e   :  { %1467 = vmatpush3.msra.mxu0 %v1245_v44 }
 0x71f   :  { %1468 = vmatprep.subr.mxu0 %v1710_v59 }
 0x720   :  { %1469 = vmatpush3.msra.mxu0 %v1244_v38 }
 0x721   :  { %1470 = vmatprep.subr.mxu0 %v1710_v59 }
 0x722   :  { %1471 = vmatpush3.msra.mxu0 %v1243_v45 }
 0x723   :  { %1472 = vmatprep.subr.mxu0 %v1710_v59 }
 0x724   :  { %1473 = vmatpush3.msra.mxu0 %v1242_v49 }
 0x7c5   :  { %v1155_v4 = vpop.f32.mrf.mxu0  ;;  %v1196_v5 = vpop.f32.mrf.mxu1 }
 0x7c6   :  { %v1203_v7 = vadd.f32 %v1155_v4, %v1116_v2  ;;  %v1205_v27 = vadd.f32 %v1196_v5, %v1118_v26 }
 0x7c7   :  { %v1157_v8 = vpop.f32.mrf.mxu0  ;;  %v1198_v9 = vpop.f32.mrf.mxu1 }
 0x7c8   :  { %v1414_v10 = vmul.f32 -1.442695, %v1203_v7  ;;  %v1204_v11 = vadd.f32 %v1157_v8, %v1117_v3  ;;  %v1416_v29 = vmul.f32 -1.442695, %v1205_v27  ;;  %v1206_v31 = vadd.f32 %v1198_v9, %v1119_v28 }
 0x7c9   :  { %v1159_v19 = vpop.f32.mrf.mxu0  ;;  %v1200_v20 = vpop.f32.mrf.mxu1 }
 0x7ca   :  { %1649 = vpow2.f32 %v1414_v10  ;;  %v1415_v22 = vmul.f32 -1.442695, %v1204_v11 }
 0x7cb   :  { %v1160_v23 = vpop.f32.mrf.mxu0  ;;  %v1201_v24 = vpop.f32.mrf.mxu1 }
 0x7cc   :  { %1651 = vpow2.f32 %v1415_v22 }
 0x7cd   :  { %1653 = vpow2.f32 %v1416_v29 }
 0x7d7   :  { %v1650_v30 = vpop.eup %1649 }
 0x7d8   :  { %v1216_v32 = vadd.f32 1.0, %v1650_v30 }
 0x7d9   :  { %v1652_v33 = vpop.eup %1651 }
 0x7da   :  { %1655 = vrcp.f32 %v1216_v32  ;;  %v1217_v12 = vadd.f32 1.0, %v1652_v33  ;;  %v1654_v13 = vpop.eup %1653 }
 0x7db   :  { %1657 = vtanh.f32 %v1206_v31  ;;  %v1218_v15 = vadd.f32 1.0, %v1654_v13 }
 0x7dc   :  { %1659 = vrcp.f32 %v1217_v12 }
 0x7dd   :  { %1661 = vrcp.f32 %v1218_v15 }
 0x7e7   :  { %v1656_v14 = vpop.eup %1655 }
 0x7e8   :  { %v1658_v0 = vpop.eup %1657 }
 0x7e9   :  { %v1660_v6 = vpop.eup %1659  ;;  %v1227_v17 = vmul.f32 %v1658_v0, %v1656_v14 }
 0x7ea   :  { %v1226_v16 = vmul.f32 %v1660_v6, %v2482_v40  ;;  %v1662_v43 = vpop.eup %1661 }
 0x7ec   :  { %v1228_v18 = vadd.f32 %v1227_v17, %v1226_v16 }
 0x7ee   :  { %1663 = vtanh.f32 %v1228_v18 }
 0x7fb   :  { %v1664_v42 = vpop.eup %1663 }
 0x7fc   :  { %v1230_v58 = vmul.f32 %v1664_v42, %v1662_v43 }
 0x7fe   :  { %v1235_v55 = vsel %vm1234_vm5, %v1230_v58, %v2488_v52 }
 0x7ff   :  { %1475 = vmatmul.mubr.f32.vlgmr.msra.gmra.mxu0 %v1235_v55 }
 0x8bf   :  { %v1331_v47 = vpop.f32.mrf.mxu0 }
 0x8c0   :  { %v1332_v56 = vadd.f32 %v1417_v54, %v1331_v47 }
 0x8c1   :  { %v1476_v57 = vpop.f32.mrf.mxu0 }
 0x8c2   :  { %v1418_v41 = vmul.f32 -1.442695, %v1332_v56 }
 0x8c4   :  { %1665 = vpow2.f32 %v1418_v41 }
 0x8d1   :  { %v1666_v40 = vpop.eup %1665 }
 0x8d2   :  { %v1338_v59 = vadd.f32 1.0, %v1666_v40 }
 0x8d4   :  { %1667 = vrcp.f32 %v1338_v59 }
 0x8e1   :  { %v1668_v62 = vpop.eup %1667 }
 0x8e2   :  { %1342 = vst.msk [vmem:[%s2562_s5] sm:$0xff] %vm1341_vm11, %v1668_v62 }

// kernel: lstm_forward.2
= control target key start
LH: loop header
LB: loop body
LE: loop exit
PB: predicated region body
PF: predicated region fallthrough
CT: control target
= control target key end

     0   :  { %v1697_v1 = vmov 0   ;;  %v1698_v34 = vmov 0.0|0.0   ;;  %vm365_vm3 = vcmask 519168   ;;  %s1700_s6 = smov 64   ;;  %s2527_s2 = inlined_call_operand.vmem [shape: bf16[128,512], index: 2, kind: input, shape index: {}]   ;;  %s2528_s0 = inlined_call_operand.vmem [shape: s32[8,1], index: 0, kind: input, shape index: {}]   ;;  %s2529_s1 = inlined_call_operand.vmem [shape: bf16[8,8,512], index: 1, kind: input, shape index: {}]   ;;  %s2530_s3 = inlined_call_operand.vmem [shape: bf16[8,8,64], index: 3, kind: output, shape index: {0}]   ;;  %s2531_s4 = inlined_call_operand.vmem [shape: bf16[8,8,64], index: 4, kind: output, shape index: {1}]  }
   0x1   :  { %v1735_v0 = vld [vmem:[%s2527_s2 + $0xe4] ss:$16 sps:$4 sm:$0xff]   ;;  %275 = vmatprep.mubr.bf16.mxu0 %v1697_v1  ;;  %316 = vmatprep.mubr.bf16.mxu1 %v1697_v1  ;;  %v1742_v2 = vld [vmem:[%s2527_s2 + $0xe0] ss:$16 sps:$4 sm:$0xff]   ;;  %v1766_v6 = vld [vmem:[%s2527_s2 + $0xec] ss:$16 sps:$4 sm:$0xff]  }
   0x2   :  { %1488 = vset.pattern.permute.xlu0 %v1697_v1  ;;  %243 = vmatprep.subr.bf16.mxu0 %v1735_v0  ;;  %v1749_v3 = vld [vmem:[%s2527_s2 + $0xc4] ss:$16 sps:$4 sm:$0xff]   ;;  %v1755_v4 = vld [vmem:[%s2527_s2 + $0xc0] ss:$16 sps:$4 sm:$0xff]   ;;  %v1771_v7 = vld [vmem:[%s2527_s2 + $0xe8] ss:$16 sps:$4 sm:$0xff]  }
   0x3   :  { %244 = vmatpush1.bf16.msra.mxu0 %v1742_v2  ;;  %v1761_v5 = vld [vmem:[%s2527_s2 + $0xa4] ss:$16 sps:$4 sm:$0xff]   ;;  %v1777_v8 = vld [vmem:[%s2527_s2 + $0xa0] ss:$16 sps:$4 sm:$0xff]   ;;  %284 = vmatprep.subr.bf16.mxu1 %v1766_v6  ;;  %v1790_v10 = vld [vmem:[%s2527_s2 + $0xcc] ss:$16 sps:$4 sm:$0xff]  }
   0x4   :  { %245 = vmatprep.subr.bf16.mxu0 %v1749_v3  ;;  %v1784_v9 = vld [vmem:[%s2527_s2 + $0x84] ss:$16 sps:$4 sm:$0xff]   ;;  %285 = vmatpush1.bf16.msra.mxu1 %v1771_v7  ;;  %v1795_v11 = vld [vmem:[%s2527_s2 + $0xc8] ss:$16 sps:$4 sm:$0xff]   ;;  %v1802_v12 = vld [vmem:[%s2527_s2 + $0x80] ss:$16 sps:$4 sm:$0xff]  }
   0x5   :  { %286 = vmatprep.subr.bf16.mxu1 %v1790_v10  ;;  %v1807_v13 = vld [vmem:[%s2527_s2 + $0x64] ss:$16 sps:$4 sm:$0xff]   ;;  %v1812_v14 = vld [vmem:[%s2527_s2 + $0xac] ss:$16 sps:$4 sm:$0xff]   ;;  %v1819_v15 = vld [vmem:[%s2527_s2 + $0xa8] ss:$16 sps:$4 sm:$0xff]  }
   0x6   :  { %v1825_v16 = vld [vmem:[%s2527_s2 + $0x8c] ss:$16 sps:$4 sm:$0xff]   ;;  %v1831_v17 = vld [vmem:[%s2527_s2 + $0x60] ss:$16 sps:$4 sm:$0xff]   ;;  %v1837_v18 = vld [vmem:[%s2527_s2 + $0x44] ss:$16 sps:$4 sm:$0xff]  }
   0x7   :  { %246 = vmatpush1.bf16.msra.mxu0 %v1755_v4  ;;  %v1843_v19 = vld [vmem:[%s2527_s2 + $0x88] ss:$16 sps:$4 sm:$0xff]   ;;  %v1849_v20 = vld [vmem:[%s2527_s2 + $0x6c] ss:$16 sps:$4 sm:$0xff]   ;;  %v1855_v21 = vld [vmem:[%s2527_s2 + $0x40] ss:$16 sps:$4 sm:$0xff]  }
   0x8   :  { %247 = vmatprep.subr.bf16.mxu0 %v1761_v5  ;;  %287 = vmatpush1.bf16.msra.mxu1 %v1795_v11  ;;  %v1860_v22 = vld [vmem:[%s2527_s2 + $0x24] ss:$16 sps:$4 sm:$0xff]   ;;  %v1867_v23 = vld [vmem:[%s2527_s2 + $0x68] ss:$16 sps:$4 sm:$0xff]   ;;  %v1873_v24 = vld [vmem:[%s2527_s2 + $0x4c] ss:$16 sps:$4 sm:$0xff]  }
   0x9   :  { %288 = vmatprep.subr.bf16.mxu1 %v1812_v14  ;;  %v37_v25 = vld [vmem:[%s2528_s0] sm:$0xff]  ;;  %v1894_v28 = vld [vmem:[%s2527_s2 + $0x48] ss:$16 sps:$4 sm:$0xff]   ;;  %v1900_v29 = vld [vmem:[%s2527_s2 + $0x2c] ss:$16 sps:$4 sm:$0xff]  }
   0xa   :  { %358 = vperm.xlu0 %1488, %v37_v25   ;;  %v1882_v26 = vld [vmem:[%s2527_s2 + $0x20] ss:$16 sps:$4 sm:$0xff]   ;;  %v1888_v27 = vld [vmem:[%s2527_s2 + $0x4] ss:$16 sps:$4 sm:$0xff]   ;;  %v1913_v31 = vld [vmem:[%s2527_s2 + $0x28] ss:$16 sps:$4 sm:$0xff]  }
   0xb   :  { %248 = vmatpush1.bf16.msra.mxu0 %v1777_v8  ;;  %v1906_v30 = vld [vmem:[%s2527_s2] ss:$16 sps:$4 sm:$0xff]   ;;  %v1919_v32 = vld [vmem:[%s2527_s2 + $0xc] ss:$16 sps:$4 sm:$0xff]   ;;  %v1926_v33 = vld [vmem:[%s2527_s2 + $0x8] ss:$16 sps:$4 sm:$0xff]  }
   0xc   :  { %249 = vmatprep.subr.bf16.mxu0 %v1784_v9  ;;  %289 = vmatpush1.bf16.msra.mxu1 %v1819_v15  ;;  %v76_v35 = vld [vmem:[%s2529_s1] sm:$0xff]  ;;  %v77_v44 = vld [vmem:[%s2529_s1 + $0x8] sm:$0xff] }
   0xd   :  { %290 = vmatprep.subr.bf16.mxu1 %v1825_v16  ;;  %v78_v36 = vunpack.c.l.bf16 %v76_v35  ;;  %v79_v37 = vunpack.c.h.bf16 %v76_v35  ;;  %v80_v48 = vunpack.c.l.bf16 %v77_v44  ;;  %v81_v53 = vunpack.c.h.bf16 %v77_v44 }
   0xf   :  { %250 = vmatpush1.bf16.msra.mxu0 %v1802_v12 }
  0x10   :  { %251 = vmatprep.subr.bf16.mxu0 %v1807_v13  ;;  %291 = vmatpush1.bf16.msra.mxu1 %v1843_v19 }
  0x11   :  { %292 = vmatprep.subr.bf16.mxu1 %v1849_v20 }
  0x13   :  { %252 = vmatpush1.bf16.msra.mxu0 %v1831_v17 }
  0x14   :  { %253 = vmatprep.subr.bf16.mxu0 %v1837_v18  ;;  %293 = vmatpush1.bf16.msra.mxu1 %v1867_v23 }
  0x15   :  { %294 = vmatprep.subr.bf16.mxu1 %v1873_v24 }
  0x17   :  { %254 = vmatpush1.bf16.msra.mxu0 %v1855_v21 }
  0x18   :  { %255 = vmatprep.subr.bf16.mxu0 %v1860_v22  ;;  %295 = vmatpush1.bf16.msra.mxu1 %v1894_v28 }
  0x19   :  { %296 = vmatprep.subr.bf16.mxu1 %v1900_v29 }
  0x1b   :  { %256 = vmatpush1.bf16.msra.mxu0 %v1882_v26 }
  0x1c   :  { %257 = vmatprep.subr.bf16.mxu0 %v1888_v27  ;;  %297 = vmatpush1.bf16.msra.mxu1 %v1913_v31 }
  0x1d   :  { %298 = vmatprep.subr.bf16.mxu1 %v1919_v32 }
  0x1f   :  { %258 = vmatpush1.bf16.msra.mxu0 %v1906_v30 }
  0x20   :  { %385 = vmatprep.subr.bf16.mxu0 %v1735_v0  ;;  %299 = vmatpush1.bf16.msra.mxu1 %v1926_v33 }
  0x21   :  { %426 = vmatprep.subr.bf16.mxu1 %v1766_v6 }
  0x22   :  { %276 = vmatmul.mubr.bf16.vlgmr.msra.gmra.mxu0 %v1698_v34 }
  0x23   :  { %386 = vmatpush1.bf16.msra.mxu0 %v1742_v2  ;;  %417 = vmatprep.mubr.bf16.mxu0 %v1697_v1 }
  0x24   :  { %387 = vmatprep.subr.bf16.mxu0 %v1749_v3  ;;  %317 = vmatmul.mubr.bf16.vlgmr.msra.gmra.mxu1 %v1698_v34 }
  0x25   :  { %427 = vmatpush1.bf16.msra.mxu1 %v1771_v7  ;;  %458 = vmatprep.mubr.bf16.mxu1 %v1697_v1 }
  0x26   :  { %428 = vmatprep.subr.bf16.mxu1 %v1790_v10 }
  0x27   :  { %388 = vmatpush1.bf16.msra.mxu0 %v1755_v4 }
  0x28   :  { %389 = vmatprep.subr.bf16.mxu0 %v1761_v5 }
  0x29   :  { %429 = vmatpush1.bf16.msra.mxu1 %v1795_v11 }
  0x2a   :  { %430 = vmatprep.subr.bf16.mxu1 %v1812_v14 }
  0x2b   :  { %390 = vmatpush1.bf16.msra.mxu0 %v1777_v8 }
  0x2c   :  { %391 = vmatprep.subr.bf16.mxu0 %v1784_v9 }
  0x2d   :  { %431 = vmatpush1.bf16.msra.mxu1 %v1819_v15 }
  0x2e   :  { %432 = vmatprep.subr.bf16.mxu1 %v1825_v16 }
  0x2f   :  { %392 = vmatpush1.bf16.msra.mxu0 %v1802_v12 }
  0x30   :  { %393 = vmatprep.subr.bf16.mxu0 %v1807_v13 }
  0x31   :  { %433 = vmatpush1.bf16.msra.mxu1 %v1843_v19 }
  0x32   :  { %434 = vmatprep.subr.bf16.mxu1 %v1849_v20 }
  0x33   :  { %394 = vmatpush1.bf16.msra.mxu0 %v1831_v17 }
  0x34   :  { %395 = vmatprep.subr.bf16.mxu0 %v1837_v18 }
  0x35   :  { %435 = vmatpush1.bf16.msra.mxu1 %v1867_v23 }
  0x36   :  { %436 = vmatprep.subr.bf16.mxu1 %v1873_v24 }
  0x37   :  { %396 = vmatpush1.bf16.msra.mxu0 %v1855_v21 }
  0x38   :  { %397 = vmatprep.subr.bf16.mxu0 %v1860_v22 }
  0x39   :  { %437 = vmatpush1.bf16.msra.mxu1 %v1894_v28 }
  0x3a   :  { %438 = vmatprep.subr.bf16.mxu1 %v1900_v29 }
  0x3b   :  { %398 = vmatpush1.bf16.msra.mxu0 %v1882_v26 }
  0x3c   :  { %399 = vmatprep.subr.bf16.mxu0 %v1888_v27 }
  0x3d   :  { %439 = vmatpush1.bf16.msra.mxu1 %v1913_v31 }
  0x3e   :  { %440 = vmatprep.subr.bf16.mxu1 %v1919_v32 }
  0x3f   :  { %400 = vmatpush1.bf16.msra.mxu0 %v1906_v30 }
  0x40   :  { %523 = vmatprep.subr.bf16.mxu0 %v1735_v0 }
  0x41   :  { %441 = vmatpush1.bf16.msra.mxu1 %v1926_v33 }
  0x42   :  { %564 = vmatprep.subr.bf16.mxu1 %v1766_v6 }
  0xe2   :  { %v277_v38 = vpop.f32.mrf.mxu0 }
  0xe3   :  { %v325_v39 = vadd.f32 %v277_v38, %v78_v36 }
  0xe4   :  { %v279_v40 = vpop.f32.mrf.mxu0  ;;  %v318_v46 = vpop.f32.mrf.mxu1 }
  0xe5   :  { %v1404_v41 = vmul.f32 -1.442695, %v325_v39  ;;  %v326_v42 = vadd.f32 %v279_v40, %v79_v37  ;;  %v327_v51 = vadd.f32 %v318_v46, %v80_v48  ;;  %v70_v37 = vlaneseq  ;;  %v1978_v39 = vpop.permute.xlu0 %358 }
  0xe6   :  { %v281_v43 = vpop.f32.mrf.mxu0  ;;  %v320_v49 = vpop.f32.mrf.mxu1  ;;  %v1699_v40 = vmov 7  }
  0xe7   :  { %1537 = vpow2.f32 %v1404_v41  ;;  %v1405_v45 = vmul.f32 -1.442695, %v326_v42  ;;  %v1406_v54 = vmul.f32 -1.442695, %v327_v51  ;;  %v328_v55 = vadd.f32 %v320_v49, %v81_v53  ;;  %v1409_v49 = vld [vmem:[%s2529_s1 + $0x10] sm:$0xff] }
  0xe8   :  { %v282_v47 = vpop.f32.mrf.mxu0  ;;  %v322_v50 = vpop.f32.mrf.mxu1  ;;  %v1975_v38 = vand.u32 127, %v70_v37  ;;  %v381_v51 = vunpack.c.h.bf16 %v1409_v49 }
  0xe9   :  { %1539 = vpow2.f32 %v1405_v45  ;;  %v380_v50 = vunpack.c.l.bf16 %v1409_v49 }
  0xea   :  { %v323_v52 = vpop.f32.mrf.mxu1  ;;  %1541 = vpow2.f32 %v1406_v54  ;;  %vm353_vm0 = vcmp.lt.s32.totalorder %v1975_v38, 64 }
  0xeb   :  { %1543 = vtanh.f32 %v328_v55  ;;  %v1982_v41 = vsel %vm353_vm0, 0, %v1699_v40 }
  0xec   :  { %vm360_vm1 = vcmp.lt.s32.totalorder %v1982_v41, %v1978_v39 }
  0xed   :  { %vm1472_vm2 = vmpackc.low %vm360_vm1, %vm360_vm1 }
  0xf4   :  { %v1538_v56 = vpop.eup %1537 }
  0xf5   :  { %v338_v57 = vadd.f32 1.0, %v1538_v56 }
  0xf6   :  { %v1540_v58 = vpop.eup %1539 }
  0xf7   :  { %1545 = vrcp.f32 %v338_v57  ;;  %v339_v59 = vadd.f32 1.0, %v1540_v58  ;;  %v1542_v60 = vpop.eup %1541 }
  0xf8   :  { %v1544_v61 = vpop.eup %1543  ;;  %v340_v25 = vadd.f32 1.0, %v1542_v60 }
  0xf9   :  { %1547 = vrcp.f32 %v339_v59 }
  0xfa   :  { %1549 = vrcp.f32 %v340_v25 }
 0x104   :  { %v1546_v62 = vpop.eup %1545 }
 0x105   :  { %v349_v35 = vmul.f32 %v1546_v62, %v1544_v61  ;;  %v1410_v61 = vld [vmem:[%s2529_s1 + $0x18] sm:$0xff] }
 0x106   :  { %v1548_v63 = vpop.eup %1547  ;;  %v383_v37 = vunpack.c.h.bf16 %v1410_v61 }
 0x107   :  { %v348_v34 = vmul.f32 0.0, %v1548_v63  ;;  %v1550_v42 = vpop.eup %1549 }
 0x109   :  { %v1972_v36 = vadd.f32 %v349_v35, %v348_v34  ;;  %v382_v34 = vunpack.c.l.bf16 %v1410_v61 }
 0x10b   :  { %1551 = vtanh.f32 %v1972_v36 }
 0x118   :  { %v1552_v43 = vpop.eup %1551 }
 0x119   :  { %v352_v44 = vmul.f32 %v1552_v43, %v1550_v42 }
 0x11b   :  { %v1473_v45 = vpack.c.bf16 %v352_v44, %v352_v44  ;;  %v1993_v46 = vsel %vm360_vm1, %v352_v44, 0.0 }
 0x11c   :  { %v364_v47 = vpack.c.bf16 %v1993_v46, %v1993_v46 }
 0x11d   :  { %1474 = vmatmul.mubr.msk.bf16.vlgmr.msra.gmra.mxu0 %vm1472_vm2, %v1473_v45  ;;  %1477 = vmatmul.mubr.msk.bf16.vlgmr.msra.gmra.mxu1 %vm1472_vm2, %v1473_v45 }
 0x11e   :  { %370 = vrot.lane.b32.xlu0 %v364_v47, %s1700_s6  ;;  %366 = vst.msk [vmem:[%s2530_s3] sm:$0xf] %vm365_vm3, %v364_v47  ;;  %524 = vmatpush1.bf16.msra.mxu0 %v1742_v2 }
 0x11f   :  { %565 = vmatpush1.bf16.msra.mxu1 %v1771_v7  ;;  %525 = vmatprep.subr.bf16.mxu0 %v1749_v3 }
 0x120   :  { %566 = vmatprep.subr.bf16.mxu1 %v1790_v10  ;;  %555 = vmatprep.mubr.bf16.mxu0 %v1697_v1 }
 0x121   :  { %596 = vmatprep.mubr.bf16.mxu1 %v1697_v1 }
 0x122   :  { %526 = vmatpush1.bf16.msra.mxu0 %v1755_v4 }
 0x123   :  { %567 = vmatpush1.bf16.msra.mxu1 %v1795_v11  ;;  %527 = vmatprep.subr.bf16.mxu0 %v1761_v5 }
 0x124   :  { %568 = vmatprep.subr.bf16.mxu1 %v1812_v14 }
 0x126   :  { %528 = vmatpush1.bf16.msra.mxu0 %v1777_v8 }
 0x127   :  { %569 = vmatpush1.bf16.msra.mxu1 %v1819_v15  ;;  %529 = vmatprep.subr.bf16.mxu0 %v1784_v9 }
 0x128   :  { %570 = vmatprep.subr.bf16.mxu1 %v1825_v16 }
 0x12a   :  { %530 = vmatpush1.bf16.msra.mxu0 %v1802_v12 }
 0x12b   :  { %571 = vmatpush1.bf16.msra.mxu1 %v1843_v19  ;;  %531 = vmatprep.subr.bf16.mxu0 %v1807_v13 }
 0x12c   :  { %572 = vmatprep.subr.bf16.mxu1 %v1849_v20 }
 0x12e   :  { %532 = vmatpush1.bf16.msra.mxu0 %v1831_v17 }
 0x12f   :  { %573 = vmatpush1.bf16.msra.mxu1 %v1867_v23  ;;  %533 = vmatprep.subr.bf16.mxu0 %v1837_v18 }
 0x130   :  { %574 = vmatprep.subr.bf16.mxu1 %v1873_v24 }
 0x132   :  { %534 = vmatpush1.bf16.msra.mxu0 %v1855_v21 }
 0x133   :  { %575 = vmatpush1.bf16.msra.mxu1 %v1894_v28  ;;  %535 = vmatprep.subr.bf16.mxu0 %v1860_v22 }
 0x134   :  { %576 = vmatprep.subr.bf16.mxu1 %v1900_v29 }
 0x136   :  { %536 = vmatpush1.bf16.msra.mxu0 %v1882_v26 }
 0x137   :  { %577 = vmatpush1.bf16.msra.mxu1 %v1913_v31  ;;  %537 = vmatprep.subr.bf16.mxu0 %v1888_v27 }
 0x138   :  { %578 = vmatprep.subr.bf16.mxu1 %v1919_v32 }
 0x13a   :  { %538 = vmatpush1.bf16.msra.mxu0 %v1906_v30 }
 0x13b   :  { %579 = vmatpush1.bf16.msra.mxu1 %v1926_v33  ;;  %661 = vmatprep.subr.bf16.mxu0 %v1735_v0 }
 0x13c   :  { %702 = vmatprep.subr.bf16.mxu1 %v1766_v6 }
 0x190   :  { %v371_v48 = vpop.permute.xlu0 %370 }
 0x191   :  { %1408 = vst.msk [vmem:[%s2531_s4 + $0x1c] sm:$0xf] %vm365_vm3, %v371_v48 }
 0x1dd   :  { %v419_v52 = vpop.f32.mrf.mxu0  ;;  %v460_v53 = vpop.f32.mrf.mxu1 }
 0x1de   :  { %v467_v54 = vadd.f32 %v419_v52, %v380_v50  ;;  %v469_v35 = vadd.f32 %v460_v53, %v382_v34  ;;  %v362_v53 = vsel %vm360_vm1, %v1972_v36, 0.0  ;;  %v1417_v34 = vld [vmem:[%s2529_s1 + $0x20] sm:$0xff] }
 0x1df   :  { %v421_v55 = vpop.f32.mrf.mxu0  ;;  %v462_v56 = vpop.f32.mrf.mxu1 }
 0x1e0   :  { %v1411_v57 = vmul.f32 -1.442695, %v467_v54  ;;  %v468_v58 = vadd.f32 %v421_v55, %v381_v51  ;;  %v1413_v40 = vmul.f32 -1.442695, %v469_v35  ;;  %v470_v43 = vadd.f32 %v462_v56, %v383_v37 }
 0x1e1   :  { %v423_v59 = vpop.f32.mrf.mxu0  ;;  %v464_v60 = vpop.f32.mrf.mxu1  ;;  %v1701_v56 = vmov 6   ;;  %v518_v35 = vunpack.c.l.bf16 %v1417_v34  ;;  %v519_v37 = vunpack.c.h.bf16 %v1417_v34 }
 0x1e2   :  { %1553 = vpow2.f32 %v1411_v57  ;;  %v1412_v62 = vmul.f32 -1.442695, %v468_v58  ;;  %v497_v57 = vsel %vm353_vm0, 1, %v1701_v56 }
 0x1e3   :  { %v424_v63 = vpop.f32.mrf.mxu0  ;;  %v465_v25 = vpop.f32.mrf.mxu1  ;;  %vm498_vm4 = vcmp.lt.s32.totalorder %v497_v57, %v1978_v39 }
 0x1e4   :  { %1555 = vpow2.f32 %v1412_v62 }
 0x1e5   :  { %1557 = vpow2.f32 %v1413_v40 }
 0x1ef   :  { %v1554_v42 = vpop.eup %1553 }
 0x1f0   :  { %v480_v44 = vadd.f32 1.0, %v1554_v42 }
 0x1f1   :  { %v1556_v45 = vpop.eup %1555 }
 0x1f2   :  { %1559 = vrcp.f32 %v480_v44  ;;  %v481_v47 = vadd.f32 1.0, %v1556_v45  ;;  %v1558_v48 = vpop.eup %1557 }
 0x1f3   :  { %1561 = vtanh.f32 %v470_v43  ;;  %v482_v52 = vadd.f32 1.0, %v1558_v48 }
 0x1f4   :  { %1563 = vrcp.f32 %v481_v47 }
 0x1f5   :  { %1565 = vrcp.f32 %v482_v52 }
 0x1ff   :  { %v1560_v49 = vpop.eup %1559 }
 0x200   :  { %v1562_v50 = vpop.eup %1561 }
 0x201   :  { %v1564_v51 = vpop.eup %1563  ;;  %v491_v55 = vmul.f32 %v1562_v50, %v1560_v49  ;;  %v1418_v50 = vld [vmem:[%s2529_s1 + $0x28] sm:$0xff] }
 0x202   :  { %v490_v54 = vmul.f32 %v1564_v51, %v362_v53  ;;  %v1566_v60 = vpop.eup %1565  ;;  %v521_v57 = vunpack.c.h.bf16 %v1418_v50 }
 0x204   :  { %v492_v58 = vadd.f32 %v491_v55, %v490_v54  ;;  %v520_v55 = vunpack.c.l.bf16 %v1418_v50 }
 0x206   :  { %1567 = vtanh.f32 %v492_v58  ;;  %v2053_v59 = vsel %vm498_vm4, %v492_v58, %v362_v53 }
 0x213   :  { %v1568_v61 = vpop.eup %1567 }
 0x214   :  { %v494_v62 = vmul.f32 %v1568_v61, %v1566_v60 }
 0x216   :  { %v501_v63 = vsel %vm498_vm4, %v494_v62, 0.0  ;;  %v2056_v41 = vsel %vm498_vm4, %v494_v62, %v1993_v46 }
 0x217   :  { %v502_v36 = vpack.c.bf16 %v501_v63, %v501_v63  ;;  %v522_v25 = vpack.c.bf16 %v2056_v41, %v2056_v41 }
 0x219   :  { %508 = vrot.lane.b32.xlu1 %v502_v36, %s1700_s6  ;;  %1414 = vst.msk [vmem:[%s2530_s3 + $0x4] sm:$0xf] %vm365_vm3, %v502_v36  ;;  %556 = vmatmul.mubr.bf16.vlgmr.msra.gmra.mxu0 %v522_v25 }
 0x21a   :  { %597 = vmatmul.mubr.bf16.vlgmr.msra.gmra.mxu1 %v522_v25  ;;  %662 = vmatpush1.bf16.msra.mxu0 %v1742_v2 }
 0x21b   :  { %703 = vmatpush1.bf16.msra.mxu1 %v1771_v7  ;;  %663 = vmatprep.subr.bf16.mxu0 %v1749_v3 }
 0x21c   :  { %704 = vmatprep.subr.bf16.mxu1 %v1790_v10  ;;  %693 = vmatprep.mubr.bf16.mxu0 %v1697_v1 }
 0x21d   :  { %734 = vmatprep.mubr.bf16.mxu1 %v1697_v1 }
 0x21e   :  { %664 = vmatpush1.bf16.msra.mxu0 %v1755_v4 }
 0x21f   :  { %705 = vmatpush1.bf16.msra.mxu1 %v1795_v11  ;;  %665 = vmatprep.subr.bf16.mxu0 %v1761_v5 }
 0x220   :  { %706 = vmatprep.subr.bf16.mxu1 %v1812_v14 }
 0x222   :  { %666 = vmatpush1.bf16.msra.mxu0 %v1777_v8 }
 0x223   :  { %707 = vmatpush1.bf16.msra.mxu1 %v1819_v15  ;;  %667 = vmatprep.subr.bf16.mxu0 %v1784_v9 }
 0x224   :  { %708 = vmatprep.subr.bf16.mxu1 %v1825_v16 }
 0x226   :  { %668 = vmatpush1.bf16.msra.mxu0 %v1802_v12 }
 0x227   :  { %709 = vmatpush1.bf16.msra.mxu1 %v1843_v19  ;;  %669 = vmatprep.subr.bf16.mxu0 %v1807_v13 }
 0x228   :  { %710 = vmatprep.subr.bf16.mxu1 %v1849_v20 }
 0x22a   :  { %670 = vmatpush1.bf16.msra.mxu0 %v1831_v17 }
 0x22b   :  { %711 = vmatpush1.bf16.msra.mxu1 %v1867_v23  ;;  %671 = vmatprep.subr.bf16.mxu0 %v1837_v18 }
 0x22c   :  { %712 = vmatprep.subr.bf16.mxu1 %v1873_v24 }
 0x22e   :  { %672 = vmatpush1.bf16.msra.mxu0 %v1855_v21 }
 0x22f   :  { %713 = vmatpush1.bf16.msra.mxu1 %v1894_v28  ;;  %673 = vmatprep.subr.bf16.mxu0 %v1860_v22 }
 0x230   :  { %714 = vmatprep.subr.bf16.mxu1 %v1900_v29 }
 0x232   :  { %674 = vmatpush1.bf16.msra.mxu0 %v1882_v26 }
 0x233   :  { %715 = vmatpush1.bf16.msra.mxu1 %v1913_v31  ;;  %675 = vmatprep.subr.bf16.mxu0 %v1888_v27 }
 0x234   :  { %716 = vmatprep.subr.bf16.mxu1 %v1919_v32 }
 0x236   :  { %676 = vmatpush1.bf16.msra.mxu0 %v1906_v30 }
 0x237   :  { %717 = vmatpush1.bf16.msra.mxu1 %v1926_v33  ;;  %799 = vmatprep.subr.bf16.mxu0 %v1735_v0 }
 0x238   :  { %840 = vmatprep.subr.bf16.mxu1 %v1766_v6 }
 0x28b   :  { %v509_v46 = vpop.permute.xlu1 %508 }
 0x28c   :  { %1416 = vst.msk [vmem:[%s2531_s4 + $0x18] sm:$0xf] %vm365_vm3, %v509_v46 }
 0x2d9   :  { %v557_v40 = vpop.f32.mrf.mxu0 }
 0x2da   :  { %v605_v42 = vadd.f32 %v557_v40, %v518_v35  ;;  %v598_v43 = vpop.f32.mrf.mxu1 }
 0x2db   :  { %v559_v44 = vpop.f32.mrf.mxu0  ;;  %v607_v56 = vadd.f32 %v598_v43, %v520_v55  ;;  %v1702_v43 = vmov 5  }
 0x2dc   :  { %v1419_v45 = vmul.f32 -1.442695, %v605_v42  ;;  %v606_v47 = vadd.f32 %v559_v44, %v519_v37  ;;  %v600_v48 = vpop.f32.mrf.mxu1  ;;  %v635_v44 = vsel %vm353_vm0, 2, %v1702_v43 }
 0x2dd   :  { %v561_v49 = vpop.f32.mrf.mxu0  ;;  %v1421_v58 = vmul.f32 -1.442695, %v607_v56  ;;  %v608_v61 = vadd.f32 %v600_v48, %v521_v57  ;;  %vm636_vm5 = vcmp.lt.s32.totalorder %v635_v44, %v1978_v39 }
 0x2de   :  { %1569 = vpow2.f32 %v1419_v45  ;;  %v1420_v51 = vmul.f32 -1.442695, %v606_v47  ;;  %v602_v52 = vpop.f32.mrf.mxu1 }
 0x2df   :  { %v562_v53 = vpop.f32.mrf.mxu0 }
 0x2e0   :  { %1571 = vpow2.f32 %v1420_v51  ;;  %v603_v54 = vpop.f32.mrf.mxu1 }
 0x2e1   :  { %1573 = vpow2.f32 %v1421_v58 }
 0x2eb   :  { %v1570_v60 = vpop.eup %1569 }
 0x2ec   :  { %v618_v62 = vadd.f32 1.0, %v1570_v60 }
 0x2ed   :  { %v1572_v63 = vpop.eup %1571 }
 0x2ee   :  { %1575 = vrcp.f32 %v618_v62  ;;  %v619_v36 = vadd.f32 1.0, %v1572_v63  ;;  %v1574_v25 = vpop.eup %1573 }
 0x2ef   :  { %1577 = vtanh.f32 %v608_v61  ;;  %v620_v37 = vadd.f32 1.0, %v1574_v25  ;;  %v1426_v25 = vld [vmem:[%s2529_s1 + $0x38] sm:$0xff] }
 0x2f0   :  { %1579 = vrcp.f32 %v619_v36  ;;  %v659_v43 = vunpack.c.h.bf16 %v1426_v25 }
 0x2f1   :  { %1581 = vrcp.f32 %v620_v37 }
 0x2fb   :  { %v1576_v46 = vpop.eup %1575 }
 0x2fc   :  { %v1578_v34 = vpop.eup %1577 }
 0x2fd   :  { %v1580_v35 = vpop.eup %1579  ;;  %v629_v40 = vmul.f32 %v1578_v34, %v1576_v46 }
 0x2fe   :  { %v628_v42 = vmul.f32 %v1580_v35, %v2053_v59  ;;  %v1582_v48 = vpop.eup %1581 }
 0x300   :  { %v630_v45 = vadd.f32 %v629_v40, %v628_v42  ;;  %v658_v40 = vunpack.c.l.bf16 %v1426_v25 }
 0x302   :  { %1583 = vtanh.f32 %v630_v45  ;;  %v2114_v47 = vsel %vm636_vm5, %v630_v45, %v2053_v59 }
 0x30f   :  { %v1584_v49 = vpop.eup %1583 }
 0x310   :  { %v632_v50 = vmul.f32 %v1584_v49, %v1582_v48 }
 0x312   :  { %v639_v51 = vsel %vm636_vm5, %v632_v50, 0.0  ;;  %v2117_v52 = vsel %vm636_vm5, %v632_v50, %v2056_v41  ;;  %v1425_v41 = vld [vmem:[%s2529_s1 + $0x30] sm:$0xff] }
 0x313   :  { %v640_v53 = vpack.c.bf16 %v639_v51, %v639_v51  ;;  %v660_v54 = vpack.c.bf16 %v2117_v52, %v2117_v52  ;;  %v656_v55 = vunpack.c.l.bf16 %v1425_v41  ;;  %v657_v56 = vunpack.c.h.bf16 %v1425_v41 }
 0x315   :  { %646 = vrot.lane.b32.xlu1 %v640_v53, %s1700_s6  ;;  %1422 = vst.msk [vmem:[%s2530_s3 + $0x8] sm:$0xf] %vm365_vm3, %v640_v53  ;;  %694 = vmatmul.mubr.bf16.vlgmr.msra.gmra.mxu0 %v660_v54 }
 0x316   :  { %735 = vmatmul.mubr.bf16.vlgmr.msra.gmra.mxu1 %v660_v54  ;;  %800 = vmatpush1.bf16.msra.mxu0 %v1742_v2 }
 0x317   :  { %841 = vmatpush1.bf16.msra.mxu1 %v1771_v7  ;;  %801 = vmatprep.subr.bf16.mxu0 %v1749_v3 }
 0x318   :  { %842 = vmatprep.subr.bf16.mxu1 %v1790_v10  ;;  %831 = vmatprep.mubr.bf16.mxu0 %v1697_v1 }
 0x319   :  { %872 = vmatprep.mubr.bf16.mxu1 %v1697_v1 }
 0x31a   :  { %802 = vmatpush1.bf16.msra.mxu0 %v1755_v4 }
 0x31b   :  { %843 = vmatpush1.bf16.msra.mxu1 %v1795_v11  ;;  %803 = vmatprep.subr.bf16.mxu0 %v1761_v5 }
 0x31c   :  { %844 = vmatprep.subr.bf16.mxu1 %v1812_v14 }
 0x31e   :  { %804 = vmatpush1.bf16.msra.mxu0 %v1777_v8 }
 0x31f   :  { %845 = vmatpush1.bf16.msra.mxu1 %v1819_v15  ;;  %805 = vmatprep.subr.bf16.mxu0 %v1784_v9 }
 0x320   :  { %846 = vmatprep.subr.bf16.mxu1 %v1825_v16 }
 0x322   :  { %806 = vmatpush1.bf16.msra.mxu0 %v1802_v12 }
 0x323   :  { %847 = vmatpush1.bf16.msra.mxu1 %v1843_v19  ;;  %807 = vmatprep.subr.bf16.mxu0 %v1807_v13 }
 0x324   :  { %848 = vmatprep.subr.bf16.mxu1 %v1849_v20 }
 0x326   :  { %808 = vmatpush1.bf16.msra.mxu0 %v1831_v17 }
 0x327   :  { %849 = vmatpush1.bf16.msra.mxu1 %v1867_v23  ;;  %809 = vmatprep.subr.bf16.mxu0 %v1837_v18 }
 0x328   :  { %850 = vmatprep.subr.bf16.mxu1 %v1873_v24 }
 0x32a   :  { %810 = vmatpush1.bf16.msra.mxu0 %v1855_v21 }
 0x32b   :  { %851 = vmatpush1.bf16.msra.mxu1 %v1894_v28  ;;  %811 = vmatprep.subr.bf16.mxu0 %v1860_v22 }
 0x32c   :  { %852 = vmatprep.subr.bf16.mxu1 %v1900_v29 }
 0x32e   :  { %812 = vmatpush1.bf16.msra.mxu0 %v1882_v26 }
 0x32f   :  { %853 = vmatpush1.bf16.msra.mxu1 %v1913_v31  ;;  %813 = vmatprep.subr.bf16.mxu0 %v1888_v27 }
 0x330   :  { %854 = vmatprep.subr.bf16.mxu1 %v1919_v32 }
 0x332   :  { %814 = vmatpush1.bf16.msra.mxu0 %v1906_v30 }
 0x333   :  { %855 = vmatpush1.bf16.msra.mxu1 %v1926_v33  ;;  %937 = vmatprep.subr.bf16.mxu0 %v1735_v0 }
 0x334   :  { %978 = vmatprep.subr.bf16.mxu1 %v1766_v6 }
 0x387   :  { %v647_v59 = vpop.permute.xlu1 %646 }
 0x388   :  { %1424 = vst.msk [vmem:[%s2531_s4 + $0x14] sm:$0xf] %vm365_vm3, %v647_v59 }
 0x3d5   :  { %v695_v57 = vpop.f32.mrf.mxu0 }
 0x3d6   :  { %v743_v58 = vadd.f32 %v695_v57, %v656_v55  ;;  %v736_v60 = vpop.f32.mrf.mxu1 }
 0x3d7   :  { %v697_v61 = vpop.f32.mrf.mxu0  ;;  %v745_v42 = vadd.f32 %v736_v60, %v658_v40 }
 0x3d8   :  { %v1427_v62 = vmul.f32 -1.442695, %v743_v58  ;;  %v744_v0 = vadd.f32 %v697_v61, %v657_v56  ;;  %v738_v63 = vpop.f32.mrf.mxu1  ;;  %v1703_v58 = vmov 4  }
 0x3d9   :  { %v699_v36 = vpop.f32.mrf.mxu0  ;;  %v1429_v44 = vmul.f32 -1.442695, %v745_v42  ;;  %v746_v48 = vadd.f32 %v738_v63, %v659_v43  ;;  %v773_v60 = vsel %vm353_vm0, 3, %v1703_v58  ;;  %v2256_v58 = vld [vmem:[%s2527_s2 + $0xe0] ss:$16 sps:$4 sm:$0xff]  }
 0x3da   :  { %1585 = vpow2.f32 %v1427_v62  ;;  %v1428_v46 = vmul.f32 -1.442695, %v744_v0  ;;  %v740_v34 = vpop.f32.mrf.mxu1  ;;  %vm774_vm6 = vcmp.lt.s32.totalorder %v773_v60, %v1978_v39  ;;  %v2262_v60 = vld [vmem:[%s2527_s2 + $0xe8] ss:$16 sps:$4 sm:$0xff]  }
 0x3db   :  { %v700_v35 = vpop.f32.mrf.mxu0 }
 0x3dc   :  { %1587 = vpow2.f32 %v1428_v46  ;;  %v741_v37 = vpop.f32.mrf.mxu1 }
 0x3dd   :  { %1589 = vpow2.f32 %v1429_v44 }
 0x3e7   :  { %v1586_v45 = vpop.eup %1585 }
 0x3e8   :  { %v756_v49 = vadd.f32 1.0, %v1586_v45 }
 0x3e9   :  { %v1588_v50 = vpop.eup %1587 }
 0x3ea   :  { %1591 = vrcp.f32 %v756_v49  ;;  %v757_v51 = vadd.f32 1.0, %v1588_v50  ;;  %v1590_v53 = vpop.eup %1589 }
 0x3eb   :  { %1593 = vtanh.f32 %v746_v48  ;;  %v758_v55 = vadd.f32 1.0, %v1590_v53  ;;  %v1704_v48 = vmov 3  }
 0x3ec   :  { %1595 = vrcp.f32 %v757_v51  ;;  %v911_v49 = vsel %vm353_vm0, 4, %v1704_v48 }
 0x3ed   :  { %1597 = vrcp.f32 %v758_v55  ;;  %vm912_vm7 = vcmp.lt.s32.totalorder %v911_v49, %v1978_v39 }
 0x3f7   :  { %v1592_v54 = vpop.eup %1591 }
 0x3f8   :  { %v1594_v59 = vpop.eup %1593 }
 0x3f9   :  { %v1596_v41 = vpop.eup %1595  ;;  %v767_v57 = vmul.f32 %v1594_v59, %v1592_v54 }
 0x3fa   :  { %v766_v56 = vmul.f32 %v1596_v41, %v2114_v47  ;;  %v1598_v0 = vpop.eup %1597 }
 0x3fc   :  { %v768_v61 = vadd.f32 %v767_v57, %v766_v56 }
 0x3fe   :  { %1599 = vtanh.f32 %v768_v61  ;;  %v2175_v62 = vsel %vm774_vm6, %v768_v61, %v2114_v47  ;;  %v2268_v61 = vld [vmem:[%s2527_s2 + $0xc4] ss:$16 sps:$4 sm:$0xff]  }
 0x40b   :  { %v1600_v63 = vpop.eup %1599 }
 0x40c   :  { %v770_v36 = vmul.f32 %v1600_v63, %v1598_v0  ;;  %v2282_v0 = vld [vmem:[%s2527_s2 + $0xc0] ss:$16 sps:$4 sm:$0xff]   ;;  %v2288_v63 = vld [vmem:[%s2527_s2 + $0xc8] ss:$16 sps:$4 sm:$0xff]  }
 0x40e   :  { %v2178_v25 = vsel %vm774_vm6, %v770_v36, %v2117_v52  ;;  %v777_v46 = vsel %vm774_vm6, %v770_v36, 0.0  ;;  %v2294_v36 = vld [vmem:[%s2527_s2 + $0xa4] ss:$16 sps:$4 sm:$0xff]  }
 0x40f   :  { %v798_v34 = vpack.c.bf16 %v2178_v25, %v2178_v25  ;;  %v778_v35 = vpack.c.bf16 %v777_v46, %v777_v46  ;;  %v2306_v46 = vld [vmem:[%s2527_s2 + $0xa0] ss:$16 sps:$4 sm:$0xff]  }
 0x411   :  { %832 = vmatmul.mubr.bf16.vlgmr.msra.gmra.mxu0 %v798_v34  ;;  %873 = vmatmul.mubr.bf16.vlgmr.msra.gmra.mxu1 %v798_v34  ;;  %1430 = vst.msk [vmem:[%s2530_s3 + $0xc] sm:$0xf] %vm365_vm3, %v778_v35  ;;  %v2312_v34 = vld [vmem:[%s2527_s2 + $0xa8] ss:$16 sps:$4 sm:$0xff]  }
 0x412   :  { %784 = vrot.lane.b32.xlu0 %v778_v35, %s1700_s6  ;;  %938 = vmatpush1.bf16.msra.mxu0 %v1742_v2  ;;  %v2222_v2 = vld [vmem:[%s2527_s2 + $0xe4] ss:$16 sps:$4 sm:$0xff]  }
 0x413   :  { %979 = vmatpush1.bf16.msra.mxu1 %v1771_v7  ;;  %939 = vmatprep.subr.bf16.mxu0 %v1749_v3  ;;  %v2318_v35 = vld [vmem:[%s2527_s2 + $0x84] ss:$16 sps:$4 sm:$0xff]  }
 0x414   :  { %980 = vmatprep.subr.bf16.mxu1 %v1790_v10  ;;  %969 = vmatprep.mubr.bf16.mxu0 %v1697_v1 }
 0x415   :  { %1010 = vmatprep.mubr.bf16.mxu1 %v1697_v1 }
 0x416   :  { %940 = vmatpush1.bf16.msra.mxu0 %v1755_v4  ;;  %v1433_v4 = vld [vmem:[%s2529_s1 + $0x40] sm:$0xff] }
 0x417   :  { %981 = vmatpush1.bf16.msra.mxu1 %v1795_v11  ;;  %941 = vmatprep.subr.bf16.mxu0 %v1761_v5  ;;  %v794_v5 = vunpack.c.l.bf16 %v1433_v4  ;;  %v795_v7 = vunpack.c.h.bf16 %v1433_v4  ;;  %v2330_v4 = vld [vmem:[%s2527_s2 + $0x80] ss:$16 sps:$4 sm:$0xff]  }
 0x418   :  { %982 = vmatprep.subr.bf16.mxu1 %v1812_v14 }
 0x41a   :  { %942 = vmatpush1.bf16.msra.mxu0 %v1777_v8 }
 0x41b   :  { %983 = vmatpush1.bf16.msra.mxu1 %v1819_v15  ;;  %943 = vmatprep.subr.bf16.mxu0 %v1784_v9 }
 0x41c   :  { %984 = vmatprep.subr.bf16.mxu1 %v1825_v16  ;;  %v1434_v16 = vld [vmem:[%s2529_s1 + $0x48] sm:$0xff] }
 0x41e   :  { %944 = vmatpush1.bf16.msra.mxu0 %v1802_v12 }
 0x41f   :  { %985 = vmatpush1.bf16.msra.mxu1 %v1843_v19  ;;  %945 = vmatprep.subr.bf16.mxu0 %v1807_v13 }
 0x420   :  { %986 = vmatprep.subr.bf16.mxu1 %v1849_v20  ;;  %v796_v20 = vunpack.c.l.bf16 %v1434_v16 }
 0x422   :  { %946 = vmatpush1.bf16.msra.mxu0 %v1831_v17 }
 0x423   :  { %987 = vmatpush1.bf16.msra.mxu1 %v1867_v23  ;;  %947 = vmatprep.subr.bf16.mxu0 %v1837_v18 }
 0x424   :  { %988 = vmatprep.subr.bf16.mxu1 %v1873_v24 }
 0x426   :  { %948 = vmatpush1.bf16.msra.mxu0 %v1855_v21 }
 0x427   :  { %989 = vmatpush1.bf16.msra.mxu1 %v1894_v28  ;;  %949 = vmatprep.subr.bf16.mxu0 %v1860_v22  ;;  %v797_v22 = vunpack.c.h.bf16 %v1434_v16 }
 0x428   :  { %990 = vmatprep.subr.bf16.mxu1 %v1900_v29 }
 0x42a   :  { %950 = vmatpush1.bf16.msra.mxu0 %v1882_v26 }
 0x42b   :  { %991 = vmatpush1.bf16.msra.mxu1 %v1913_v31  ;;  %951 = vmatprep.subr.bf16.mxu0 %v1888_v27 }
 0x42c   :  { %992 = vmatprep.subr.bf16.mxu1 %v1919_v32 }
 0x42e   :  { %952 = vmatpush1.bf16.msra.mxu0 %v1906_v30 }
 0x42f   :  { %993 = vmatpush1.bf16.msra.mxu1 %v1926_v33  ;;  %1075 = vmatprep.subr.bf16.mxu0 %v2222_v2 }
 0x430   :  { %1116 = vmatprep.subr.bf16.mxu1 %v1766_v6 }
 0x484   :  { %v785_v3 = vpop.permute.xlu0 %784 }
 0x485   :  { %1432 = vst.msk [vmem:[%s2531_s4 + $0x10] sm:$0xf] %vm365_vm3, %v785_v3  ;;  %v2324_v3 = vld [vmem:[%s2527_s2 + $0x8c] ss:$16 sps:$4 sm:$0xff]  }
 0x4d1   :  { %v833_v8 = vpop.f32.mrf.mxu0  ;;  %v874_v9 = vpop.f32.mrf.mxu1 }
 0x4d2   :  { %v881_v10 = vadd.f32 %v833_v8, %v794_v5  ;;  %v883_v21 = vadd.f32 %v874_v9, %v796_v20  ;;  %v2336_v5 = vld [vmem:[%s2527_s2 + $0x88] ss:$16 sps:$4 sm:$0xff]   ;;  %v2348_v8 = vld [vmem:[%s2527_s2 + $0x6c] ss:$16 sps:$4 sm:$0xff]   ;;  %v2354_v9 = vld [vmem:[%s2527_s2 + $0x60] ss:$16 sps:$4 sm:$0xff]  }
 0x4d3   :  { %v835_v11 = vpop.f32.mrf.mxu0  ;;  %v876_v12 = vpop.f32.mrf.mxu1 }
 0x4d4   :  { %v1435_v13 = vmul.f32 -1.442695, %v881_v10  ;;  %v882_v14 = vadd.f32 %v835_v11, %v795_v7  ;;  %v1437_v23 = vmul.f32 -1.442695, %v883_v21  ;;  %v884_v26 = vadd.f32 %v876_v12, %v797_v22  ;;  %v2342_v7 = vld [vmem:[%s2527_s2 + $0x64] ss:$16 sps:$4 sm:$0xff]  }
 0x4d5   :  { %v837_v6 = vpop.f32.mrf.mxu0  ;;  %v878_v15 = vpop.f32.mrf.mxu1  ;;  %v2360_v10 = vld [vmem:[%s2527_s2 + $0x68] ss:$16 sps:$4 sm:$0xff]   ;;  %v2366_v11 = vld [vmem:[%s2527_s2 + $0x44] ss:$16 sps:$4 sm:$0xff]   ;;  %v2372_v12 = vld [vmem:[%s2527_s2 + $0x4c] ss:$16 sps:$4 sm:$0xff]  }
 0x4d6   :  { %1601 = vpow2.f32 %v1435_v13  ;;  %v1436_v17 = vmul.f32 -1.442695, %v882_v14  ;;  %v2378_v13 = vld [vmem:[%s2527_s2 + $0x40] ss:$16 sps:$4 sm:$0xff]   ;;  %v2385_v14 = vld [vmem:[%s2527_s2 + $0x24] ss:$16 sps:$4 sm:$0xff]  }
 0x4d7   :  { %v838_v18 = vpop.f32.mrf.mxu0  ;;  %v879_v19 = vpop.f32.mrf.mxu1  ;;  %v2392_v6 = vld [vmem:[%s2527_s2 + $0x20] ss:$16 sps:$4 sm:$0xff]  }
 0x4d8   :  { %1603 = vpow2.f32 %v1436_v17 }
 0x4d9   :  { %1605 = vpow2.f32 %v1437_v23 }
 0x4e3   :  { %v1602_v24 = vpop.eup %1601 }
 0x4e4   :  { %v894_v27 = vadd.f32 1.0, %v1602_v24  ;;  %v1442_v24 = vld [vmem:[%s2529_s1 + $0x58] sm:$0xff] }
 0x4e5   :  { %v1604_v30 = vpop.eup %1603 }
 0x4e6   :  { %1607 = vrcp.f32 %v894_v27  ;;  %v895_v47 = vadd.f32 1.0, %v1604_v30  ;;  %v1606_v52 = vpop.eup %1605 }
 0x4e7   :  { %1609 = vtanh.f32 %v884_v26  ;;  %v896_v43 = vadd.f32 1.0, %v1606_v52  ;;  %v934_v52 = vunpack.c.l.bf16 %v1442_v24 }
 0x4e8   :  { %1611 = vrcp.f32 %v895_v47 }
 0x4e9   :  { %1613 = vrcp.f32 %v896_v43 }
 0x4f3   :  { %v1608_v37 = vpop.eup %1607 }
 0x4f4   :  { %v1610_v40 = vpop.eup %1609 }
 0x4f5   :  { %v1612_v42 = vpop.eup %1611  ;;  %v905_v44 = vmul.f32 %v1610_v40, %v1608_v37  ;;  %v935_v40 = vunpack.c.h.bf16 %v1442_v24 }
 0x4f6   :  { %v904_v45 = vmul.f32 %v1612_v42, %v2175_v62  ;;  %v1614_v53 = vpop.eup %1613 }
 0x4f8   :  { %v906_v50 = vadd.f32 %v905_v44, %v904_v45 }
 0x4fa   :  { %1615 = vtanh.f32 %v906_v50  ;;  %v2241_v51 = vsel %vm912_vm7, %v906_v50, %v2175_v62  ;;  %v2274_v62 = vld [vmem:[%s2527_s2 + $0xcc] ss:$16 sps:$4 sm:$0xff]  }
 0x507   :  { %v1616_v54 = vpop.eup %1615 }
 0x508   :  { %v908_v59 = vmul.f32 %v1616_v54, %v1614_v53 }
 0x50a   :  { %v915_v41 = vsel %vm912_vm7, %v908_v59, 0.0  ;;  %v2244_v55 = vsel %vm912_vm7, %v908_v59, %v2178_v25  ;;  %v2300_v25 = vld [vmem:[%s2527_s2 + $0xac] ss:$16 sps:$4 sm:$0xff]  }
 0x50b   :  { %v916_v56 = vpack.c.bf16 %v915_v41, %v915_v41  ;;  %v936_v57 = vpack.c.bf16 %v2244_v55, %v2244_v55 }
 0x50d   :  { %922 = vrot.lane.b32.xlu1 %v916_v56, %s1700_s6  ;;  %1438 = vst.msk [vmem:[%s2530_s3 + $0x10] sm:$0xf] %vm365_vm3, %v916_v56  ;;  %970 = vmatmul.mubr.bf16.vlgmr.msra.gmra.mxu0 %v936_v57 }
 0x50e   :  { %1011 = vmatmul.mubr.bf16.vlgmr.msra.gmra.mxu1 %v936_v57  ;;  %1076 = vmatpush1.bf16.msra.mxu0 %v2256_v58 }
 0x50f   :  { %1117 = vmatpush1.bf16.msra.mxu1 %v2262_v60  ;;  %1077 = vmatprep.subr.bf16.mxu0 %v2268_v61 }
 0x510   :  { %1118 = vmatprep.subr.bf16.mxu1 %v2274_v62  ;;  %1107 = vmatprep.mubr.bf16.mxu0 %v1697_v1 }
 0x511   :  { %1148 = vmatprep.mubr.bf16.mxu1 %v1697_v1 }
 0x512   :  { %1078 = vmatpush1.bf16.msra.mxu0 %v2282_v0 }
 0x513   :  { %1119 = vmatpush1.bf16.msra.mxu1 %v2288_v63  ;;  %1079 = vmatprep.subr.bf16.mxu0 %v2294_v36 }
 0x514   :  { %1120 = vmatprep.subr.bf16.mxu1 %v2300_v25 }
 0x516   :  { %1080 = vmatpush1.bf16.msra.mxu0 %v2306_v46 }
 0x517   :  { %1121 = vmatpush1.bf16.msra.mxu1 %v2312_v34  ;;  %1081 = vmatprep.subr.bf16.mxu0 %v2318_v35 }
 0x518   :  { %1122 = vmatprep.subr.bf16.mxu1 %v2324_v3 }
 0x51a   :  { %1082 = vmatpush1.bf16.msra.mxu0 %v2330_v4 }
 0x51b   :  { %1123 = vmatpush1.bf16.msra.mxu1 %v2336_v5  ;;  %1083 = vmatprep.subr.bf16.mxu0 %v2342_v7 }
 0x51c   :  { %1124 = vmatprep.subr.bf16.mxu1 %v2348_v8 }
 0x51e   :  { %1084 = vmatpush1.bf16.msra.mxu0 %v2354_v9 }
 0x51f   :  { %1125 = vmatpush1.bf16.msra.mxu1 %v2360_v10  ;;  %1085 = vmatprep.subr.bf16.mxu0 %v2366_v11 }
 0x520   :  { %1126 = vmatprep.subr.bf16.mxu1 %v2372_v12 }
 0x522   :  { %1086 = vmatpush1.bf16.msra.mxu0 %v2378_v13 }
 0x523   :  { %1127 = vmatpush1.bf16.msra.mxu1 %v1894_v28  ;;  %1087 = vmatprep.subr.bf16.mxu0 %v2385_v14  ;;  %v2399_v28 = vld [vmem:[%s2527_s2 + $0x4] ss:$16 sps:$4 sm:$0xff]  }
 0x524   :  { %1128 = vmatprep.subr.bf16.mxu1 %v1900_v29  ;;  %v2406_v29 = vld [vmem:[%s2527_s2] ss:$16 sps:$4 sm:$0xff]  }
 0x526   :  { %1088 = vmatpush1.bf16.msra.mxu0 %v2392_v6 }
 0x527   :  { %1129 = vmatpush1.bf16.msra.mxu1 %v1913_v31  ;;  %1089 = vmatprep.subr.bf16.mxu0 %v2399_v28  ;;  %v1691_v31 = vld [vmem:[%s2527_s2 + $0xec] ss:$16 sps:$4 sm:$0xff]  }
 0x528   :  { %1130 = vmatprep.subr.bf16.mxu1 %v1919_v32  ;;  %v1441_v32 = vld [vmem:[%s2529_s1 + $0x50] sm:$0xff] }
 0x529   :  { %v932_v16 = vunpack.c.l.bf16 %v1441_v32  ;;  %v933_v17 = vunpack.c.h.bf16 %v1441_v32 }
 0x52a   :  { %1090 = vmatpush1.bf16.msra.mxu0 %v2406_v29 }
 0x52b   :  { %1131 = vmatpush1.bf16.msra.mxu1 %v1926_v33  ;;  %1213 = vmatprep.subr.bf16.mxu0 %v2222_v2 }
 0x52c   :  { %1254 = vmatprep.subr.bf16.mxu1 %v1691_v31  ;;  %v1705_v31 = vmov 2  }
 0x57f   :  { %v923_v15 = vpop.permute.xlu1 %922 }
 0x580   :  { %1440 = vst.msk [vmem:[%s2531_s4 + $0xc] sm:$0xf] %vm365_vm3, %v923_v15  ;;  %v1049_v15 = vsel %vm353_vm0, 5, %v1705_v31  ;;  %v1457_v31 = vld [vmem:[%s2529_s1 + $0x70] sm:$0xff] }
 0x581   :  { %vm1050_vm8 = vcmp.lt.s32.totalorder %v1049_v15, %v1978_v39  ;;  %v1208_v15 = vunpack.c.l.bf16 %v1457_v31 }
 0x5cd   :  { %v971_v33 = vpop.f32.mrf.mxu0 }
 0x5ce   :  { %v1019_v18 = vadd.f32 %v971_v33, %v932_v16  ;;  %v1012_v2 = vpop.f32.mrf.mxu1 }
 0x5cf   :  { %v973_v19 = vpop.f32.mrf.mxu0  ;;  %v1021_v37 = vadd.f32 %v1012_v2, %v934_v52 }
 0x5d0   :  { %v1443_v20 = vmul.f32 -1.442695, %v1019_v18  ;;  %v1020_v21 = vadd.f32 %v973_v19, %v933_v17  ;;  %v1014_v22 = vpop.f32.mrf.mxu1 }
 0x5d1   :  { %v975_v23 = vpop.f32.mrf.mxu0  ;;  %v1445_v42 = vmul.f32 -1.442695, %v1021_v37  ;;  %v1022_v44 = vadd.f32 %v1014_v22, %v935_v40 }
 0x5d2   :  { %1617 = vpow2.f32 %v1443_v20  ;;  %v1444_v26 = vmul.f32 -1.442695, %v1020_v21  ;;  %v1016_v27 = vpop.f32.mrf.mxu1 }
 0x5d3   :  { %v976_v30 = vpop.f32.mrf.mxu0 }
 0x5d4   :  { %1619 = vpow2.f32 %v1444_v26  ;;  %v1017_v47 = vpop.f32.mrf.mxu1 }
 0x5d5   :  { %1621 = vpow2.f32 %v1445_v42 }
 0x5df   :  { %v1618_v43 = vpop.eup %1617 }
 0x5e0   :  { %v1032_v45 = vadd.f32 1.0, %v1618_v43  ;;  %v1706_v43 = vmov 1  }
 0x5e1   :  { %v1620_v48 = vpop.eup %1619 }
 0x5e2   :  { %1623 = vrcp.f32 %v1032_v45  ;;  %v1033_v49 = vadd.f32 1.0, %v1620_v48  ;;  %v1622_v50 = vpop.eup %1621 }
 0x5e3   :  { %1625 = vtanh.f32 %v1022_v44  ;;  %v1034_v41 = vadd.f32 1.0, %v1622_v50  ;;  %v1187_v44 = vsel %vm353_vm0, 6, %v1706_v43 }
 0x5e4   :  { %1627 = vrcp.f32 %v1033_v49  ;;  %vm1188_vm9 = vcmp.lt.s32.totalorder %v1187_v44, %v1978_v39 }
 0x5e5   :  { %1629 = vrcp.f32 %v1034_v41 }
 0x5ef   :  { %v1624_v53 = vpop.eup %1623 }
 0x5f0   :  { %v1626_v54 = vpop.eup %1625 }
 0x5f1   :  { %v1628_v59 = vpop.eup %1627  ;;  %v1043_v57 = vmul.f32 %v1626_v54, %v1624_v53 }
 0x5f2   :  { %v1042_v56 = vmul.f32 %v1628_v59, %v2241_v51  ;;  %v1630_v17 = vpop.eup %1629 }
 0x5f4   :  { %v1044_v32 = vadd.f32 %v1043_v57, %v1042_v56 }
 0x5f6   :  { %1631 = vtanh.f32 %v1044_v32  ;;  %v2429_v16 = vsel %vm1050_vm8, %v1044_v32, %v2241_v51  ;;  %v1692_v51 = vld [vmem:[%s2527_s2 + $0x48] ss:$16 sps:$4 sm:$0xff]   ;;  %v1209_v32 = vunpack.c.h.bf16 %v1457_v31 }
 0x603   :  { %v1632_v33 = vpop.eup %1631 }
 0x604   :  { %v1046_v18 = vmul.f32 %v1632_v33, %v1630_v17 }
 0x606   :  { %v2432_v2 = vsel %vm1050_vm8, %v1046_v18, %v2244_v55  ;;  %v1053_v19 = vsel %vm1050_vm8, %v1046_v18, 0.0  ;;  %v1693_v55 = vld [vmem:[%s2527_s2 + $0x2c] ss:$16 sps:$4 sm:$0xff]  }
 0x607   :  { %v1074_v20 = vpack.c.bf16 %v2432_v2, %v2432_v2  ;;  %v1054_v21 = vpack.c.bf16 %v1053_v19, %v1053_v19 }
 0x609   :  { %1108 = vmatmul.mubr.bf16.vlgmr.msra.gmra.mxu0 %v1074_v20  ;;  %1149 = vmatmul.mubr.bf16.vlgmr.msra.gmra.mxu1 %v1074_v20  ;;  %1446 = vst.msk [vmem:[%s2530_s3 + $0x14] sm:$0xf] %vm365_vm3, %v1054_v21 }
 0x60a   :  { %1060 = vrot.lane.b32.xlu0 %v1054_v21, %s1700_s6  ;;  %1214 = vmatpush1.bf16.msra.mxu0 %v2256_v58  ;;  %v1694_v58 = vld [vmem:[%s2527_s2 + $0x28] ss:$16 sps:$4 sm:$0xff]  }
 0x60b   :  { %1255 = vmatpush1.bf16.msra.mxu1 %v2262_v60  ;;  %1215 = vmatprep.subr.bf16.mxu0 %v2268_v61  ;;  %v1695_v60 = vld [vmem:[%s2527_s2 + $0xc] ss:$16 sps:$4 sm:$0xff]   ;;  %v1696_v61 = vld [vmem:[%s2527_s2 + $0x8] ss:$16 sps:$4 sm:$0xff]  }
 0x60c   :  { %1256 = vmatprep.subr.bf16.mxu1 %v2274_v62  ;;  %1245 = vmatprep.mubr.bf16.mxu0 %v1697_v1 }
 0x60d   :  { %1286 = vmatprep.mubr.bf16.mxu1 %v1697_v1 }
 0x60e   :  { %1216 = vmatpush1.bf16.msra.mxu0 %v2282_v0  ;;  %v1449_v0 = vld [vmem:[%s2529_s1 + $0x60] sm:$0xff] }
 0x60f   :  { %1257 = vmatpush1.bf16.msra.mxu1 %v2288_v63  ;;  %1217 = vmatprep.subr.bf16.mxu0 %v2294_v36  ;;  %v1070_v63 = vunpack.c.l.bf16 %v1449_v0  ;;  %v1071_v36 = vunpack.c.h.bf16 %v1449_v0 }
 0x610   :  { %1258 = vmatprep.subr.bf16.mxu1 %v2300_v25 }
 0x612   :  { %1218 = vmatpush1.bf16.msra.mxu0 %v2306_v46 }
 0x613   :  { %1259 = vmatpush1.bf16.msra.mxu1 %v2312_v34  ;;  %1219 = vmatprep.subr.bf16.mxu0 %v2318_v35 }
 0x614   :  { %1260 = vmatprep.subr.bf16.mxu1 %v2324_v3 }
 0x616   :  { %1220 = vmatpush1.bf16.msra.mxu0 %v2330_v4 }
 0x617   :  { %1261 = vmatpush1.bf16.msra.mxu1 %v2336_v5  ;;  %1221 = vmatprep.subr.bf16.mxu0 %v2342_v7 }
 0x618   :  { %1262 = vmatprep.subr.bf16.mxu1 %v2348_v8 }
 0x61a   :  { %1222 = vmatpush1.bf16.msra.mxu0 %v2354_v9  ;;  %v1450_v9 = vld [vmem:[%s2529_s1 + $0x68] sm:$0xff] }
 0x61b   :  { %1263 = vmatpush1.bf16.msra.mxu1 %v2360_v10  ;;  %1223 = vmatprep.subr.bf16.mxu0 %v2366_v11 }
 0x61c   :  { %1264 = vmatprep.subr.bf16.mxu1 %v2372_v12 }
 0x61e   :  { %1224 = vmatpush1.bf16.msra.mxu0 %v2378_v13  ;;  %v1072_v13 = vunpack.c.l.bf16 %v1450_v9 }
 0x61f   :  { %1265 = vmatpush1.bf16.msra.mxu1 %v1692_v51  ;;  %1225 = vmatprep.subr.bf16.mxu0 %v2385_v14  ;;  %v1458_v51 = vld [vmem:[%s2529_s1 + $0x78] sm:$0xff] }
 0x620   :  { %1266 = vmatprep.subr.bf16.mxu1 %v1693_v55 }
 0x622   :  { %1226 = vmatpush1.bf16.msra.mxu0 %v2392_v6  ;;  %v1073_v6 = vunpack.c.h.bf16 %v1450_v9 }
 0x623   :  { %1267 = vmatpush1.bf16.msra.mxu1 %v1694_v58  ;;  %1227 = vmatprep.subr.bf16.mxu0 %v2399_v28 }
 0x624   :  { %1268 = vmatprep.subr.bf16.mxu1 %v1695_v60 }
 0x626   :  { %1228 = vmatpush1.bf16.msra.mxu0 %v2406_v29 }
 0x627   :  { %1269 = vmatpush1.bf16.msra.mxu1 %v1696_v61 }
 0x67c   :  { %v1061_v62 = vpop.permute.xlu0 %1060 }
 0x67d   :  { %1448 = vst.msk [vmem:[%s2531_s4 + $0x8] sm:$0xf] %vm365_vm3, %v1061_v62  ;;  %v1210_v62 = vunpack.c.l.bf16 %v1458_v51 }
 0x6c9   :  { %v1109_v25 = vpop.f32.mrf.mxu0  ;;  %v1150_v46 = vpop.f32.mrf.mxu1 }
 0x6ca   :  { %v1157_v34 = vadd.f32 %v1109_v25, %v1070_v63  ;;  %v1159_v14 = vadd.f32 %v1150_v46, %v1072_v13  ;;  %v1211_v63 = vunpack.c.h.bf16 %v1458_v51 }
 0x6cb   :  { %v1111_v35 = vpop.f32.mrf.mxu0  ;;  %v1152_v3 = vpop.f32.mrf.mxu1 }
 0x6cc   :  { %v1451_v4 = vmul.f32 -1.442695, %v1157_v34  ;;  %v1158_v5 = vadd.f32 %v1111_v35, %v1071_v36  ;;  %v1453_v28 = vmul.f32 -1.442695, %v1159_v14  ;;  %v1160_v22 = vadd.f32 %v1152_v3, %v1073_v6 }
 0x6cd   :  { %v1113_v7 = vpop.f32.mrf.mxu0  ;;  %v1154_v8 = vpop.f32.mrf.mxu1  ;;  %v1325_v14 = vsel %vm353_vm0, 7, %v1697_v1 }
 0x6ce   :  { %1633 = vpow2.f32 %v1451_v4  ;;  %v1452_v10 = vmul.f32 -1.442695, %v1158_v5  ;;  %vm1326_vm10 = vcmp.lt.s32.totalorder %v1325_v14, %v1978_v39 }
 0x6cf   :  { %v1114_v11 = vpop.f32.mrf.mxu0  ;;  %v1155_v12 = vpop.f32.mrf.mxu1 }
 0x6d0   :  { %1635 = vpow2.f32 %v1452_v10 }
 0x6d1   :  { %1637 = vpow2.f32 %v1453_v28 }
 0x6db   :  { %v1634_v29 = vpop.eup %1633 }
 0x6dc   :  { %v1170_v23 = vadd.f32 1.0, %v1634_v29 }
 0x6dd   :  { %v1636_v24 = vpop.eup %1635 }
 0x6de   :  { %1639 = vrcp.f32 %v1170_v23  ;;  %v1171_v26 = vadd.f32 1.0, %v1636_v24  ;;  %v1638_v27 = vpop.eup %1637 }
 0x6df   :  { %1641 = vtanh.f32 %v1160_v22  ;;  %v1172_v37 = vadd.f32 1.0, %v1638_v27 }
 0x6e0   :  { %1643 = vrcp.f32 %v1171_v26 }
 0x6e1   :  { %1645 = vrcp.f32 %v1172_v37 }
 0x6eb   :  { %v1640_v30 = vpop.eup %1639 }
 0x6ec   :  { %v1642_v47 = vpop.eup %1641 }
 0x6ed   :  { %v1644_v52 = vpop.eup %1643  ;;  %v1181_v40 = vmul.f32 %v1642_v47, %v1640_v30 }
 0x6ee   :  { %v1180_v42 = vmul.f32 %v1644_v52, %v2429_v16  ;;  %v1646_v49 = vpop.eup %1645 }
 0x6f0   :  { %v1182_v45 = vadd.f32 %v1181_v40, %v1180_v42 }
 0x6f2   :  { %1647 = vtanh.f32 %v1182_v45  ;;  %v1190_v48 = vsel %vm1188_vm9, %v1182_v45, %v2429_v16 }
 0x6ff   :  { %v1648_v50 = vpop.eup %1647 }
 0x700   :  { %v1184_v53 = vmul.f32 %v1648_v50, %v1646_v49 }
 0x702   :  { %v1191_v54 = vsel %vm1188_vm9, %v1184_v53, 0.0  ;;  %v1189_v59 = vsel %vm1188_vm9, %v1184_v53, %v2432_v2 }
 0x703   :  { %v1192_v41 = vpack.c.bf16 %v1191_v54, %v1191_v54  ;;  %v1212_v56 = vpack.c.bf16 %v1189_v59, %v1189_v59 }
 0x705   :  { %1198 = vrot.lane.b32.xlu1 %v1192_v41, %s1700_s6  ;;  %1454 = vst.msk [vmem:[%s2530_s3 + $0x18] sm:$0xf] %vm365_vm3, %v1192_v41  ;;  %1246 = vmatmul.mubr.bf16.vlgmr.msra.gmra.mxu0 %v1212_v56 }
 0x706   :  { %1287 = vmatmul.mubr.bf16.vlgmr.msra.gmra.mxu1 %v1212_v56 }
 0x777   :  { %v1199_v57 = vpop.permute.xlu1 %1198 }
 0x778   :  { %1456 = vst.msk [vmem:[%s2531_s4 + $0x4] sm:$0xf] %vm365_vm3, %v1199_v57 }
 0x7c5   :  { %v1247_v16 = vpop.f32.mrf.mxu0 }
 0x7c6   :  { %v1295_v17 = vadd.f32 %v1247_v16, %v1208_v15  ;;  %v1288_v33 = vpop.f32.mrf.mxu1 }
 0x7c7   :  { %v1249_v18 = vpop.f32.mrf.mxu0  ;;  %v1297_v0 = vadd.f32 %v1288_v33, %v1210_v62 }
 0x7c8   :  { %v1459_v2 = vmul.f32 -1.442695, %v1295_v17  ;;  %v1296_v19 = vadd.f32 %v1249_v18, %v1209_v32  ;;  %v1290_v20 = vpop.f32.mrf.mxu1 }
 0x7c9   :  { %v1251_v21 = vpop.f32.mrf.mxu0  ;;  %v1461_v36 = vmul.f32 -1.442695, %v1297_v0  ;;  %v1298_v46 = vadd.f32 %v1290_v20, %v1211_v63 }
 0x7ca   :  { %1649 = vpow2.f32 %v1459_v2  ;;  %v1460_v55 = vmul.f32 -1.442695, %v1296_v19  ;;  %v1292_v58 = vpop.f32.mrf.mxu1 }
 0x7cb   :  { %v1252_v60 = vpop.f32.mrf.mxu0 }
 0x7cc   :  { %1651 = vpow2.f32 %v1460_v55  ;;  %v1293_v61 = vpop.f32.mrf.mxu1 }
 0x7cd   :  { %1653 = vpow2.f32 %v1461_v36 }
 0x7d7   :  { %v1650_v25 = vpop.eup %1649 }
 0x7d8   :  { %v1308_v34 = vadd.f32 1.0, %v1650_v25 }
 0x7d9   :  { %v1652_v35 = vpop.eup %1651 }
 0x7da   :  { %1655 = vrcp.f32 %v1308_v34  ;;  %v1309_v3 = vadd.f32 1.0, %v1652_v35  ;;  %v1654_v4 = vpop.eup %1653 }
 0x7db   :  { %1657 = vtanh.f32 %v1298_v46  ;;  %v1310_v9 = vadd.f32 1.0, %v1654_v4 }
 0x7dc   :  { %1659 = vrcp.f32 %v1309_v3 }
 0x7dd   :  { %1661 = vrcp.f32 %v1310_v9 }
 0x7e7   :  { %v1656_v5 = vpop.eup %1655 }
 0x7e8   :  { %v1658_v7 = vpop.eup %1657 }
 0x7e9   :  { %v1660_v8 = vpop.eup %1659  ;;  %v1319_v11 = vmul.f32 %v1658_v7, %v1656_v5 }
 0x7ea   :  { %v1318_v10 = vmul.f32 %v1660_v8, %v1190_v48  ;;  %v1662_v13 = vpop.eup %1661 }
 0x7ec   :  { %v1320_v12 = vadd.f32 %v1319_v11, %v1318_v10 }
 0x7ee   :  { %1663 = vtanh.f32 %v1320_v12 }
 0x7fb   :  { %v1664_v6 = vpop.eup %1663 }
 0x7fc   :  { %v1322_v28 = vmul.f32 %v1664_v6, %v1662_v13 }
 0x7fe   :  { %v1329_v29 = vsel %vm1326_vm10, %v1322_v28, 0.0 }
 0x7ff   :  { %v1330_v22 = vpack.c.bf16 %v1329_v29, %v1329_v29 }
 0x801   :  { %1462 = vst.msk [vmem:[%s2530_s3 + $0x1c] sm:$0xf] %vm365_vm3, %v1330_v22  ;;  %1336 = vrot.lane.b32.xlu0 %v1330_v22, %s1700_s6 }
 0x873   :  { %v1337_v23 = vpop.permute.xlu0 %1336 }
 0x874   :  { %1339 = vst.msk [vmem:[%s2531_s4] sm:$0xf] %vm365_vm3, %v1337_v23 }

</bundles_post_ra>
